<compile_context>
chip_gen: v6e
topology: v6e:2x2x1
jax: 0.10.0
libtpu: 0.0.40
codegen_flags: <defaults>
</compile_context>

<pallas_src>
import jax
import jax.numpy as jnp
from jax.experimental import pallas as pl
from jax.experimental.pallas import tpu as pltpu


# ---------------------------------------------------------------------------
# Fused kernel: attention + LSTM cell on grid step 0, fc vocab tile every step
# ---------------------------------------------------------------------------
def _fused_decoder_kernel(xh_ref, c0_ref, enc_ref,
                          wah_ref, wae_ref, ba_ref, v_ref,
                          wxh_ref, wctx_ref, bg_ref,
                          wfc_ref, bfc_ref,
                          logits_ref, h1_ref, c1_ref,
                          h_act_scr):
    """
    xh_ref  : (B, H+Ep)   [h0 | emb_pad]  (h0 first -> 128-aligned lane slice)
    c0_ref  : (B, H)      previous cell state
    enc_ref : (B, S, 2H)  encoder outputs (resident; TODO(synk): S-tile for large S)
    wah_ref : (H, H)      attn.weight[:, :H].T     (ht part)
    wae_ref : (2H, H)     attn.weight[:, H:].T     (encoder part)
    ba_ref  : (1, H)      attn.bias
    v_ref   : (1, H)      v.weight
    wxh_ref : (H+Ep, 4H)  [W_hh^T ; W_ih^T[:E] ; 0] fused gate weight for [h0 | emb_pad]
    wctx_ref: (2H, 4H)    W_ih^T[E:]                gate weight for context
    bg_ref  : (1, 4H)     b_ih + b_hh
    wfc_ref : (H, tv)     streamed bf16 fc weight tile
    bfc_ref : (1, tv)     fc bias tile
    logits_ref : (B, tv)  lane-dense fc output tile
    h1_ref / c1_ref : (B, H) resident outputs (constant index_map across the grid)
    h_act_scr : (B, H)    h1 cast once to the fc weight dtype, reused every fc tile
    """
    H = c0_ref.shape[-1]
    B, S, K2 = enc_ref.shape

    # ---- step 0: attention + LSTM cell (everything else is waiting on W_fc DMA) ----
    @pl.when(pl.program_id(0) == 0)
    def _():
        xh = xh_ref[...]                          # (B, H+Ep)
        h0 = xh[:, :H]                            # aligned lane slice (no relayout)
        enc = enc_ref[...]                        # (B, S, 2H)

        # relu(cat([h0_rep, enc]) @ W_attn^T + b) == relu(h0 @ Wah + enc @ Wae + b)
        e_h = jnp.dot(h0, wah_ref[...], preferred_element_type=jnp.float32)       # (B,H)
        e_e = jnp.dot(enc.reshape(B * S, K2), wae_ref[...],
                      preferred_element_type=jnp.float32).reshape(B, S, H)         # (B,S,H)
        energy = jax.nn.relu(e_e + e_h[:, None, :] + ba_ref[...][None])            # (B,S,H)

        # scores = energy @ v^T (XLU lane reduce, keepdims keeps lane/sublane layout).
        scores = jnp.sum(energy * v_ref[...][None], axis=-1, keepdims=True)        # (B,S,1)
        m = jnp.max(scores, axis=1, keepdims=True)                                 # (B,1,1)
        p = jnp.exp(scores - m)                                                    # (B,S,1)
        denom = jnp.sum(p, axis=1, keepdims=True).reshape(B, 1)                    # (B,1)

        # Deferred softmax normalization: one (B,2H) scale instead of (B,S) divides.
        # (pl.reciprocal(..., approx=True) is available when S is large; exact here.)
        ctx_un = jnp.sum(p * enc, axis=1)                                          # (B,2H)
        context = ctx_un * pl.reciprocal(denom, approx=False)

        # LSTM cell: fused matmul for [h0 | emb_pad] + context matmul.
        gates = (jnp.dot(xh, wxh_ref[...], preferred_element_type=jnp.float32)
                 + jnp.dot(context, wctx_ref[...], preferred_element_type=jnp.float32)
                 + bg_ref[...])                                                    # (B,4H)

        # torch gate order: i, f, g, o  (H multiple of 128 -> lane-aligned slices)
        i_g = jax.nn.sigmoid(gates[:, 0 * H:1 * H])
        f_g = jax.nn.sigmoid(gates[:, 1 * H:2 * H])
        g_g = jnp.tanh(gates[:, 2 * H:3 * H])
        o_g = jax.nn.sigmoid(gates[:, 3 * H:4 * H])

        c1 = f_g * c0_ref[...] + i_g * g_g
        h1 = o_g * jnp.tanh(c1)

        h1_ref[...] = h1
        c1_ref[...] = c1
        h_act_scr[...] = h1.astype(h_act_scr.dtype)       # cast once, reused per tile

    # ---- every step: one vocab tile of the fc projection on the resident h1 ----
    logits_ref[...] = (jnp.dot(h_act_scr[...], wfc_ref[...],
                               preferred_element_type=jnp.float32)
                       + bfc_ref[...])


# ---------------------------------------------------------------------------
# Wrapper
# ---------------------------------------------------------------------------
def lstm_attn_decoder_forward(x_tokens, h0_c0, encoder_out, params, *, vocab_tile=2048):
    """
    x_tokens    : (B,) int32
    h0_c0       : (h0, c0), each (1, B, H) float32
    encoder_out : (B, S, 2H) float32
    returns logits (B, 1, V), (h1, c1) each (1, B, H)
    """
    h0, c0 = h0_c0
    B = x_tokens.shape[0]
    H = h0.shape[-1]
    Ep = params["embedding"].shape[1]            # embed dim, already lane-padded to 128
    V = params["b_fc"].shape[-1]
    S = encoder_out.shape[1]
    K2 = encoder_out.shape[2]
    fc_dtype = params["w_fc_t"].dtype

    # Glue: embedding gather (padded table -> padded emb) + eval-mode dropout (identity).
    emb = jnp.take(params["embedding"], x_tokens, axis=0)        # (B, Ep)
    xh = jnp.concatenate([h0.reshape(B, H), emb], axis=1)        # (B, H+Ep), h0 first
    c0_2d = c0.reshape(B, H)

    # ---- VMEM budgeting (v7x fallback 64 MiB if the query is unavailable) ----
    try:
        phys_vmem = int(pltpu.get_tpu_info().vmem_capacity_bytes)
    except Exception:
        phys_vmem = 64 * 1024 * 1024

    def _resident_bytes():
        return 4 * (B * (H + Ep) + B * H + B * S * K2               # xh, c0, enc
                    + H * H + K2 * H + 2 * H                        # attn weights
                    + (H + Ep) * 4 * H + K2 * 4 * H + 4 * H         # gate weights
                    + 2 * B * H) + B * H * 2                        # h1/c1 out + scratch

    def _fc_stream_bytes(t):
        # double-buffered bf16 weight tile + f32 logits tile + (padded) bias tile
        return 2 * (H * t * 2) + 2 * (max(B, 8) * t * 4) + 2 * (8 * t * 4)

    tv = max(128, (int(min(vocab_tile, V)) // 128) * 128)
    budget = int(phys_vmem * 0.6)
    while tv > 128 and 2 * _resident_bytes() + _fc_stream_bytes(tv) > budget:
        tv //= 2

    # Ragged vocab: pad V up to a multiple of tv (zero columns, sliced off afterwards).
    v_pad = pl.cdiv(V, tv) * tv
    w_fc_t = params["w_fc_t"]
    b_fc = params["b_fc"]
    if v_pad != V:
        # TODO(synk): pre-pad W_fc at init to avoid the per-call pad copy.
        w_fc_t = jnp.pad(w_fc_t, ((0, 0), (0, v_pad - V)))
        b_fc = jnp.pad(b_fc, ((0, 0), (0, v_pad - V)))
    n_tiles = v_pad // tv

    vmem_limit = int(min(max(2 * _resident_bytes() + 2 * _fc_stream_bytes(tv),
                             16 * 1024 * 1024),
                         int(phys_vmem * 0.9)))

    full2 = lambda j: (0, 0)
    full3 = lambda j: (0, 0, 0)

    cell_flops = 2 * B * (H * H + S * K2 * H + (H + Ep) * 4 * H + K2 * 4 * H)
    fc_flops = 2 * B * H * v_pad
    bytes_accessed = (H * v_pad * 2 + B * v_pad * 4 + B * S * K2 * 4
                      + ((H + Ep) * 4 * H + K2 * 4 * H + 3 * H * H) * 4
                      + 4 * B * H * 4)

    logits, h1, c1 = pl.pallas_call(
        _fused_decoder_kernel,
        out_shape=(jax.ShapeDtypeStruct((B, v_pad), jnp.float32),
                   jax.ShapeDtypeStruct((B, H), jnp.float32),
                   jax.ShapeDtypeStruct((B, H), jnp.float32)),
        grid=(n_tiles,),
        in_specs=[
            pl.BlockSpec((B, H + Ep), full2),          # xh       (resident)
            pl.BlockSpec((B, H), full2),               # c0       (resident)
            pl.BlockSpec((B, S, K2), full3),           # enc      (resident)
            pl.BlockSpec((H, H), full2),               # W_attn_h (resident)
            pl.BlockSpec((K2, H), full2),              # W_attn_e (resident)
            pl.BlockSpec((1, H), full2),               # b_attn
            pl.BlockSpec((1, H), full2),               # v
            pl.BlockSpec((H + Ep, 4 * H), full2),      # W_xh     (resident)
            pl.BlockSpec((K2, 4 * H), full2),          # W_ctx    (resident)
            pl.BlockSpec((1, 4 * H), full2),           # b_gates
            pl.BlockSpec((H, tv), lambda j: (0, j)),   # streamed bf16 W_fc tile
            pl.BlockSpec((1, tv), lambda j: (0, j)),   # streamed b_fc tile
        ],
        out_specs=(
            pl.BlockSpec((B, tv), lambda j: (0, j)),   # lane-dense logits tile
            pl.BlockSpec((B, H), full2),               # h1 resident across the grid
            pl.BlockSpec((B, H), full2),               # c1 resident across the grid
        ),
        scratch_shapes=[pltpu.VMEM((B, H), fc_dtype)],
        compiler_params=pltpu.CompilerParams(
            # h1/c1 are resident accumulator-style outputs and the fc depends on
            # step-0 scratch, so the vocab axis must be sequential ("arbitrary").
            dimension_semantics=("arbitrary",),
            vmem_limit_bytes=vmem_limit),
        cost_estimate=pl.CostEstimate(
            flops=cell_flops + fc_flops,
            transcendentals=B * (S + 5 * H),
            bytes_accessed=bytes_accessed),
    )(xh, c0_2d, encoder_out,
      params["w_attn_h_t"], params["w_attn_e_t"], params["b_attn"], params["v_vec"],
      params["w_xh"], params["w_ctx"], params["b_gates"],
      w_fc_t, b_fc)

    logits = logits[:, :V]
    return logits[:, None, :], (h1[None, :, :], c1[None, :, :])


# ---------------------------------------------------------------------------
# Pure-JAX reference (same math, same fc weight dtype) for correctness checking
# ---------------------------------------------------------------------------
def _reference_forward(x_tokens, h0_c0, encoder_out, params):
    h0, c0 = h0_c0
    H = h0.shape[-1]
    hi = jax.lax.Precision.HIGHEST
    emb = jnp.take(params["embedding"], x_tokens, axis=0)        # (B, Ep) zero-padded
    ht = h0[0]
    e_h = jnp.dot(ht, params["w_attn_h_t"], precision=hi)
    e_e = jnp.einsum("bsk,kh->bsh", encoder_out, params["w_attn_e_t"], precision=hi)
    energy = jax.nn.relu(e_e + e_h[:, None, :] + params["b_attn"][None])
    scores = jnp.sum(energy * params["v_vec"][None], axis=-1)            # (B, S)
    attn = jax.nn.softmax(scores, axis=1)
    context = jnp.sum(attn[:, :, None] * encoder_out, axis=1)            # (B, 2H)
    xh = jnp.concatenate([ht, emb], axis=1)
    gates = (jnp.dot(xh, params["w_xh"], precision=hi)
             + jnp.dot(context, params["w_ctx"], precision=hi)
             + params["b_gates"])
    i_g = jax.nn.sigmoid(gates[:, 0 * H:1 * H])
    f_g = jax.nn.sigmoid(gates[:, 1 * H:2 * H])
    g_g = jnp.tanh(gates[:, 2 * H:3 * H])
    o_g = jax.nn.sigmoid(gates[:, 3 * H:4 * H])
    c1 = f_g * c0[0] + i_g * g_g
    h1 = o_g * jnp.tanh(c1)
    logits = (jnp.dot(h1.astype(params["w_fc_t"].dtype), params["w_fc_t"],
                      preferred_element_type=jnp.float32, precision=hi)
              + params["b_fc"])
    return logits[:, None, :], (h1[None], c1[None])


# ---------------------------------------------------------------------------
# Synthetic parameters (torch layout -> kernel packing)
# ---------------------------------------------------------------------------
def init_params(key, vocab_size, embed_dim, hidden_units, *, fc_dtype=jnp.bfloat16):
    E, H, V = embed_dim, hidden_units, vocab_size
    e_pad = ((E + 127) // 128) * 128              # lane-pad embed dim to a 128 multiple
    k = jax.random.split(key, 9)
    sc = 0.1
    emb = sc * jax.random.normal(k[0], (V, E), jnp.float32)
    emb = emb.at[0].set(0.0)                                        # padding_idx = 0
    emb = jnp.pad(emb, ((0, 0), (0, e_pad - E)))                    # zero pad lanes
    # torch layouts:
    w_attn = sc * jax.random.normal(k[1], (H, 3 * H), jnp.float32)  # attn.weight (H, 3H)
    b_attn = sc * jax.random.normal(k[2], (H,), jnp.float32)
    w_v = sc * jax.random.normal(k[3], (1, H), jnp.float32)         # v.weight (1, H)
    w_ih = sc * jax.random.normal(k[4], (4 * H, E + 2 * H), jnp.float32)
    w_hh = sc * jax.random.normal(k[5], (4 * H, H), jnp.float32)
    b_ih = sc * jax.random.normal(k[6], (4 * H,), jnp.float32)
    b_hh = sc * jax.random.normal(k[7], (4 * H,), jnp.float32)
    w_fc = sc * jax.random.normal(k[8], (V, H), jnp.float32)        # fc.weight (V, H)
    b_fc = jnp.zeros((V,), jnp.float32)

    w_ih_t = w_ih.T                                                 # (E+2H, 4H)
    w_emb_part = jnp.pad(w_ih_t[:E], ((0, e_pad - E), (0, 0)))      # zero rows for pad lanes
    return {
        "embedding": emb,                                           # (V, Ep)
        "w_attn_h_t": w_attn[:, :H].T,                              # (H, H)
        "w_attn_e_t": w_attn[:, H:].T,                              # (2H, H)
        "b_attn": b_attn[None, :],                                  # (1, H)
        "v_vec": w_v,                                               # (1, H)
        # fused gate weight for [h0 | emb_pad], plus separate context weight
        "w_xh": jnp.concatenate([w_hh.T, w_emb_part], axis=0),      # (H+Ep, 4H)
        "w_ctx": w_ih_t[E:],                                        # (2H, 4H)
        "b_gates": (b_ih + b_hh)[None, :],                          # (1, 4H)
        # bf16 fc weights halve the dominant weight DMA (fc is HBM-BW bound);
        # pass fc_dtype=jnp.float32 for bit-parity with the PyTorch f32 fc.weight.
        "w_fc_t": w_fc.T.astype(fc_dtype),                          # (H, V)
        "b_fc": b_fc[None, :],                                      # (1, V) f32
    }


if __name__ == "__main__":
    # Small, TPU-friendly sizes (H, 2H, 4H, V, tile all multiples of 128).
    B = 8          # batch
    VOCAB = 4096   # input_size (2 vocab tiles at vocab_tile=2048)
    E = 32         # embed_dim (lane-padded to 128 internally)
    H = 128        # hidden_units
    S = 16         # encoder sequence length

    key = jax.random.PRNGKey(0)
    kp, kx, kh, kc, ke = jax.random.split(key, 5)

    params = init_params(kp, VOCAB, E, H)
    x_tokens = jax.random.randint(kx, (B,), 1, VOCAB, dtype=jnp.int32)
    h0 = jax.random.normal(kh, (1, B, H), jnp.float32)
    c0 = jax.random.normal(kc, (1, B, H), jnp.float32)
    encoder_out = jax.random.normal(ke, (B, S, 2 * H), jnp.float32)

    logits, (h1, c1) = lstm_attn_decoder_forward(
        x_tokens, (h0, c0), encoder_out, params, vocab_tile=2048)
    jax.block_until_ready((logits, h1, c1))

    ref_logits, (ref_h1, ref_c1) = _reference_forward(
        x_tokens, (h0, c0), encoder_out, params)

    assert logits.shape == (B, 1, VOCAB)
    assert h1.shape == (1, B, H) and c1.shape == (1, B, H)
    assert jnp.allclose(h1, ref_h1, atol=2e-4, rtol=2e-4), \
        f"h1 max err {jnp.max(jnp.abs(h1 - ref_h1))}"
    assert jnp.allclose(c1, ref_c1, atol=2e-4, rtol=2e-4), \
        f"c1 max err {jnp.max(jnp.abs(c1 - ref_c1))}"
    assert jnp.allclose(logits, ref_logits, atol=1e-2, rtol=1e-2), \
        f"logits max err {jnp.max(jnp.abs(logits - ref_logits))}"

    print("KERNEL_OK")
</pallas_src>

<mosaic_0001>
module attributes {stable_mosaic.version = 11 : i64} {
  func.func @_fused_decoder_kernel(%arg0: i32, %arg1: memref<8x256xf32, #tpu.memory_space<vmem>>, %arg2: memref<8x128xf32, #tpu.memory_space<vmem>>, %arg3: memref<8x16x256xf32, #tpu.memory_space<vmem>>, %arg4: memref<128x128xf32, #tpu.memory_space<vmem>>, %arg5: memref<256x128xf32, #tpu.memory_space<vmem>>, %arg6: memref<1x128xf32, #tpu.memory_space<vmem>>, %arg7: memref<1x128xf32, #tpu.memory_space<vmem>>, %arg8: memref<256x512xf32, #tpu.memory_space<vmem>>, %arg9: memref<256x512xf32, #tpu.memory_space<vmem>>, %arg10: memref<1x512xf32, #tpu.memory_space<vmem>>, %arg11: memref<128x2048xbf16, #tpu.memory_space<vmem>>, %arg12: memref<1x2048xf32, #tpu.memory_space<vmem>>, %arg13: memref<8x2048xf32, #tpu.memory_space<vmem>>, %arg14: memref<8x128xf32, #tpu.memory_space<vmem>>, %arg15: memref<8x128xf32, #tpu.memory_space<vmem>>, %arg16: memref<8x128xbf16, #tpu.memory_space<vmem>>) attributes {dimension_semantics = [#tpu.dimension_semantics<arbitrary>], iteration_bounds = array<i64: 2>, scalar_prefetch = 0 : i64, scratch_operands = 1 : i64, tpu.core_type = #tpu.core_type<tc>, window_params = [{pipeline_mode = #tpu.pipeline_mode<synchronous>, transform_indices = @transform_0, window_bounds = array<i64: 8, 256>}, {pipeline_mode = #tpu.pipeline_mode<synchronous>, transform_indices = @transform_1, window_bounds = array<i64: 8, 128>}, {pipeline_mode = #tpu.pipeline_mode<synchronous>, transform_indices = @transform_2, window_bounds = array<i64: 8, 16, 256>}, {pipeline_mode = #tpu.pipeline_mode<synchronous>, transform_indices = @transform_3, window_bounds = array<i64: 128, 128>}, {pipeline_mode = #tpu.pipeline_mode<synchronous>, transform_indices = @transform_4, window_bounds = array<i64: 256, 128>}, {pipeline_mode = #tpu.pipeline_mode<synchronous>, transform_indices = @transform_5, window_bounds = array<i64: 1, 128>}, {pipeline_mode = #tpu.pipeline_mode<synchronous>, transform_indices = @transform_6, window_bounds = array<i64: 1, 128>}, {pipeline_mode = #tpu.pipeline_mode<synchronous>, transform_indices = @transform_7, window_bounds = array<i64: 256, 512>}, {pipeline_mode = #tpu.pipeline_mode<synchronous>, transform_indices = @transform_8, window_bounds = array<i64: 256, 512>}, {pipeline_mode = #tpu.pipeline_mode<synchronous>, transform_indices = @transform_9, window_bounds = array<i64: 1, 512>}, {transform_indices = @transform_10, window_bounds = array<i64: 128, 2048>}, {transform_indices = @transform_11, window_bounds = array<i64: 1, 2048>}, {transform_indices = @transform_12, window_bounds = array<i64: 8, 2048>}, {pipeline_mode = #tpu.pipeline_mode<synchronous>, transform_indices = @transform_13, window_bounds = array<i64: 8, 128>}, {pipeline_mode = #tpu.pipeline_mode<synchronous>, transform_indices = @transform_14, window_bounds = array<i64: 8, 128>}]} {
    %c0_i32 = arith.constant 0 : i32
    %0 = arith.cmpi eq, %arg0, %c0_i32 : i32
    %1 = arith.extui %0 : i1 to i32
    %c0_i32_0 = arith.constant 0 : i32
    %2 = arith.cmpi ne, %1, %c0_i32_0 : i32
    scf.if %2 {
      %c0_8 = arith.constant 0 : index
      %c0_9 = arith.constant 0 : index
      %10 = vector.load %arg1[%c0_8, %c0_9] : memref<8x256xf32, #tpu.memory_space<vmem>>, vector<8x256xf32>
      %11 = vector.extract_strided_slice %10 {offsets = [0, 0], sizes = [8, 128], strides = [1, 1]} : vector<8x256xf32> to vector<8x128xf32>
      %c0_10 = arith.constant 0 : index
      %c0_11 = arith.constant 0 : index
      %c0_12 = arith.constant 0 : index
      %12 = vector.load %arg3[%c0_10, %c0_11, %c0_12] : memref<8x16x256xf32, #tpu.memory_space<vmem>>, vector<8x16x256xf32>
      %c0_13 = arith.constant 0 : index
      %c0_14 = arith.constant 0 : index
      %13 = vector.load %arg4[%c0_13, %c0_14] : memref<128x128xf32, #tpu.memory_space<vmem>>, vector<128x128xf32>
      %cst_15 = arith.constant dense<0.000000e+00> : vector<8x128xf32>
      %14 = tpu.matmul %11, %13, %cst_15 {dimension_numbers = #tpu.dot_dimension_numbers<[1], [0], [0], [1], [0, 0, 1, 1], [], []>} : vector<8x128xf32>, vector<128x128xf32>, vector<8x128xf32> -> vector<8x128xf32>
      %15 = vector.shape_cast %12 : vector<8x16x256xf32> to vector<128x256xf32>
      %c0_16 = arith.constant 0 : index
      %c0_17 = arith.constant 0 : index
      %16 = vector.load %arg5[%c0_16, %c0_17] : memref<256x128xf32, #tpu.memory_space<vmem>>, vector<256x128xf32>
      %cst_18 = arith.constant dense<0.000000e+00> : vector<128x128xf32>
      %17 = tpu.matmul %15, %16, %cst_18 {dimension_numbers = #tpu.dot_dimension_numbers<[1], [0], [0], [1], [0, 0, 1, 1], [], []>} : vector<128x256xf32>, vector<256x128xf32>, vector<128x128xf32> -> vector<128x128xf32>
      %18 = vector.shape_cast %17 : vector<128x128xf32> to vector<8x16x128xf32>
      %19 = vector.shape_cast %14 : vector<8x128xf32> to vector<8x1x128xf32>
      %20 = vector.broadcast %19 : vector<8x1x128xf32> to vector<8x16x128xf32>
      %21 = arith.addf %18, %20 : vector<8x16x128xf32>
      %c0_19 = arith.constant 0 : index
      %c0_20 = arith.constant 0 : index
      %22 = vector.load %arg6[%c0_19, %c0_20] : memref<1x128xf32, #tpu.memory_space<vmem>>, vector<1x128xf32>
      %23 = vector.shape_cast %22 : vector<1x128xf32> to vector<1x1x128xf32>
      %24 = vector.broadcast %23 : vector<1x1x128xf32> to vector<8x16x128xf32>
      %25 = arith.addf %21, %24 : vector<8x16x128xf32>
      %cst_21 = arith.constant 0.000000e+00 : f32
      %26 = vector.broadcast %cst_21 : f32 to vector<8x16x128xf32>
      %27 = arith.maximumf %25, %26 : vector<8x16x128xf32>
      %c0_22 = arith.constant 0 : index
      %c0_23 = arith.constant 0 : index
      %28 = vector.load %arg7[%c0_22, %c0_23] : memref<1x128xf32, #tpu.memory_space<vmem>>, vector<1x128xf32>
      %29 = vector.shape_cast %28 : vector<1x128xf32> to vector<1x1x128xf32>
      %30 = vector.broadcast %29 : vector<1x1x128xf32> to vector<8x16x128xf32>
      %31 = arith.mulf %27, %30 : vector<8x16x128xf32>
      %cst_24 = arith.constant dense<0.000000e+00> : vector<8x16xf32>
      %32 = vector.multi_reduction <add>, %31, %cst_24 [2] : vector<8x16x128xf32> to vector<8x16xf32>
      %33 = vector.shape_cast %32 : vector<8x16xf32> to vector<8x16x1xf32>
      %cst_25 = arith.constant dense<0xFF800000> : vector<8x1xf32>
      %34 = vector.multi_reduction <maximumf>, %33, %cst_25 [1] : vector<8x16x1xf32> to vector<8x1xf32>
      %35 = vector.shape_cast %34 : vector<8x1xf32> to vector<8x1x1xf32>
      %36 = vector.broadcast %35 : vector<8x1x1xf32> to vector<8x16x1xf32>
      %37 = arith.subf %33, %36 : vector<8x16x1xf32>
      %38 = math.exp %37 : vector<8x16x1xf32>
      %cst_26 = arith.constant dense<0.000000e+00> : vector<8x1xf32>
      %39 = vector.multi_reduction <add>, %38, %cst_26 [1] : vector<8x16x1xf32> to vector<8x1xf32>
      %40 = vector.shape_cast %39 : vector<8x1xf32> to vector<8x1x1xf32>
      %41 = vector.shape_cast %40 : vector<8x1x1xf32> to vector<8x1xf32>
      %42 = vector.broadcast %38 : vector<8x16x1xf32> to vector<8x16x256xf32>
      %43 = arith.mulf %42, %12 : vector<8x16x256xf32>
      %cst_27 = arith.constant dense<0.000000e+00> : vector<8x256xf32>
      %44 = vector.multi_reduction <add>, %43, %cst_27 [1] : vector<8x16x256xf32> to vector<8x256xf32>
      %45 = tpu.reciprocal %41 : vector<8x1xf32> -> vector<8x1xf32>
      %46 = vector.broadcast %45 : vector<8x1xf32> to vector<8x256xf32>
      %47 = arith.mulf %44, %46 : vector<8x256xf32>
      %c0_28 = arith.constant 0 : index
      %c0_29 = arith.constant 0 : index
      %48 = vector.load %arg8[%c0_28, %c0_29] : memref<256x512xf32, #tpu.memory_space<vmem>>, vector<256x512xf32>
      %cst_30 = arith.constant dense<0.000000e+00> : vector<8x512xf32>
      %49 = tpu.matmul %10, %48, %cst_30 {dimension_numbers = #tpu.dot_dimension_numbers<[1], [0], [0], [1], [0, 0, 1, 1], [], []>} : vector<8x256xf32>, vector<256x512xf32>, vector<8x512xf32> -> vector<8x512xf32>
      %c0_31 = arith.constant 0 : index
      %c0_32 = arith.constant 0 : index
      %50 = vector.load %arg9[%c0_31, %c0_32] : memref<256x512xf32, #tpu.memory_space<vmem>>, vector<256x512xf32>
      %cst_33 = arith.constant dense<0.000000e+00> : vector<8x512xf32>
      %51 = tpu.matmul %47, %50, %cst_33 {dimension_numbers = #tpu.dot_dimension_numbers<[1], [0], [0], [1], [0, 0, 1, 1], [], []>} : vector<8x256xf32>, vector<256x512xf32>, vector<8x512xf32> -> vector<8x512xf32>
      %52 = arith.addf %49, %51 : vector<8x512xf32>
      %c0_34 = arith.constant 0 : index
      %c0_35 = arith.constant 0 : index
      %53 = vector.load %arg10[%c0_34, %c0_35] : memref<1x512xf32, #tpu.memory_space<vmem>>, vector<1x512xf32>
      %54 = vector.broadcast %53 : vector<1x512xf32> to vector<8x512xf32>
      %55 = arith.addf %52, %54 : vector<8x512xf32>
      %56 = vector.extract_strided_slice %55 {offsets = [0, 0], sizes = [8, 128], strides = [1, 1]} : vector<8x512xf32> to vector<8x128xf32>
      %57 = arith.negf %56 : vector<8x128xf32>
      %58 = math.exp %57 : vector<8x128xf32>
      %cst_36 = arith.constant 1.000000e+00 : f32
      %59 = vector.broadcast %cst_36 : f32 to vector<8x128xf32>
      %60 = arith.addf %59, %58 : vector<8x128xf32>
      %61 = arith.divf %59, %60 : vector<8x128xf32>
      %62 = vector.extract_strided_slice %55 {offsets = [0, 128], sizes = [8, 128], strides = [1, 1]} : vector<8x512xf32> to vector<8x128xf32>
      %63 = arith.negf %62 : vector<8x128xf32>
      %64 = math.exp %63 : vector<8x128xf32>
      %cst_37 = arith.constant 1.000000e+00 : f32
      %65 = vector.broadcast %cst_37 : f32 to vector<8x128xf32>
      %66 = arith.addf %65, %64 : vector<8x128xf32>
      %67 = arith.divf %65, %66 : vector<8x128xf32>
      %68 = vector.extract_strided_slice %55 {offsets = [0, 256], sizes = [8, 128], strides = [1, 1]} : vector<8x512xf32> to vector<8x128xf32>
      %69 = math.tanh %68 : vector<8x128xf32>
      %70 = vector.extract_strided_slice %55 {offsets = [0, 384], sizes = [8, 128], strides = [1, 1]} : vector<8x512xf32> to vector<8x128xf32>
      %71 = arith.negf %70 : vector<8x128xf32>
      %72 = math.exp %71 : vector<8x128xf32>
      %cst_38 = arith.constant 1.000000e+00 : f32
      %73 = vector.broadcast %cst_38 : f32 to vector<8x128xf32>
      %74 = arith.addf %73, %72 : vector<8x128xf32>
      %75 = arith.divf %73, %74 : vector<8x128xf32>
      %c0_39 = arith.constant 0 : index
      %c0_40 = arith.constant 0 : index
      %76 = vector.load %arg2[%c0_39, %c0_40] : memref<8x128xf32, #tpu.memory_space<vmem>>, vector<8x128xf32>
      %77 = arith.mulf %67, %76 : vector<8x128xf32>
      %78 = arith.mulf %61, %69 : vector<8x128xf32>
      %79 = arith.addf %77, %78 : vector<8x128xf32>
      %80 = math.tanh %79 : vector<8x128xf32>
      %81 = arith.mulf %75, %80 : vector<8x128xf32>
      %c0_41 = arith.constant 0 : index
      %c0_42 = arith.constant 0 : index
      %82 = vector.load %arg14[%c0_41, %c0_42] : memref<8x128xf32, #tpu.memory_space<vmem>>, vector<8x128xf32>
      tpu.vector_store %arg14[%c0_41, %c0_42], %81 {strides = array<i32>} : memref<8x128xf32, #tpu.memory_space<vmem>>, vector<8x128xf32>,
      %c0_43 = arith.constant 0 : index
      %c0_44 = arith.constant 0 : index
      %83 = vector.load %arg15[%c0_43, %c0_44] : memref<8x128xf32, #tpu.memory_space<vmem>>, vector<8x128xf32>
      tpu.vector_store %arg15[%c0_43, %c0_44], %79 {strides = array<i32>} : memref<8x128xf32, #tpu.memory_space<vmem>>, vector<8x128xf32>,
      %84 = arith.truncf %81 : vector<8x128xf32> to vector<8x128xbf16>
      %c0_45 = arith.constant 0 : index
      %c0_46 = arith.constant 0 : index
      %85 = vector.load %arg16[%c0_45, %c0_46] : memref<8x128xbf16, #tpu.memory_space<vmem>>, vector<8x128xbf16>
      tpu.vector_store %arg16[%c0_45, %c0_46], %84 {strides = array<i32>} : memref<8x128xbf16, #tpu.memory_space<vmem>>, vector<8x128xbf16>,
    } else {
    }
    %c0 = arith.constant 0 : index
    %c0_1 = arith.constant 0 : index
    %3 = vector.load %arg16[%c0, %c0_1] : memref<8x128xbf16, #tpu.memory_space<vmem>>, vector<8x128xbf16>
    %c0_2 = arith.constant 0 : index
    %c0_3 = arith.constant 0 : index
    %4 = vector.load %arg11[%c0_2, %c0_3] : memref<128x2048xbf16, #tpu.memory_space<vmem>>, vector<128x2048xbf16>
    %cst = arith.constant dense<0.000000e+00> : vector<8x2048xf32>
    %5 = tpu.matmul %3, %4, %cst {dimension_numbers = #tpu.dot_dimension_numbers<[1], [0], [0], [1], [0, 0, 1, 1], [], []>} : vector<8x128xbf16>, vector<128x2048xbf16>, vector<8x2048xf32> -> vector<8x2048xf32>
    %c0_4 = arith.constant 0 : index
    %c0_5 = arith.constant 0 : index
    %6 = vector.load %arg12[%c0_4, %c0_5] : memref<1x2048xf32, #tpu.memory_space<vmem>>, vector<1x2048xf32>
    %7 = vector.broadcast %6 : vector<1x2048xf32> to vector<8x2048xf32>
    %8 = arith.addf %5, %7 : vector<8x2048xf32>
    %c0_6 = arith.constant 0 : index
    %c0_7 = arith.constant 0 : index
    %9 = vector.load %arg13[%c0_6, %c0_7] : memref<8x2048xf32, #tpu.memory_space<vmem>>, vector<8x2048xf32>
    tpu.vector_store %arg13[%c0_6, %c0_7], %8 {strides = array<i32>} : memref<8x2048xf32, #tpu.memory_space<vmem>>, vector<8x2048xf32>,
    return
  }
  func.func @transform_0(%arg0: i32) -> (i32, i32) {
    %c0_i32 = arith.constant 0 : i32
    %c0_i32_0 = arith.constant 0 : i32
    %c0_i32_1 = arith.constant 0 : i32
    return %c0_i32, %c0_i32_0 : i32, i32
  }
  func.func @transform_1(%arg0: i32) -> (i32, i32) {
    %c0_i32 = arith.constant 0 : i32
    %c0_i32_0 = arith.constant 0 : i32
    %c0_i32_1 = arith.constant 0 : i32
    return %c0_i32, %c0_i32_0 : i32, i32
  }
  func.func @transform_2(%arg0: i32) -> (i32, i32, i32) {
    %c0_i32 = arith.constant 0 : i32
    %c0_i32_0 = arith.constant 0 : i32
    %c0_i32_1 = arith.constant 0 : i32
    %c0_i32_2 = arith.constant 0 : i32
    return %c0_i32, %c0_i32_0, %c0_i32_1 : i32, i32, i32
  }
  func.func @transform_3(%arg0: i32) -> (i32, i32) {
    %c0_i32 = arith.constant 0 : i32
    %c0_i32_0 = arith.constant 0 : i32
    %c0_i32_1 = arith.constant 0 : i32
    return %c0_i32, %c0_i32_0 : i32, i32
  }
  func.func @transform_4(%arg0: i32) -> (i32, i32) {
    %c0_i32 = arith.constant 0 : i32
    %c0_i32_0 = arith.constant 0 : i32
    %c0_i32_1 = arith.constant 0 : i32
    return %c0_i32, %c0_i32_0 : i32, i32
  }
  func.func @transform_5(%arg0: i32) -> (i32, i32) {
    %c0_i32 = arith.constant 0 : i32
    %c0_i32_0 = arith.constant 0 : i32
    %c0_i32_1 = arith.constant 0 : i32
    return %c0_i32, %c0_i32_0 : i32, i32
  }
  func.func @transform_6(%arg0: i32) -> (i32, i32) {
    %c0_i32 = arith.constant 0 : i32
    %c0_i32_0 = arith.constant 0 : i32
    %c0_i32_1 = arith.constant 0 : i32
    return %c0_i32, %c0_i32_0 : i32, i32
  }
  func.func @transform_7(%arg0: i32) -> (i32, i32) {
    %c0_i32 = arith.constant 0 : i32
    %c0_i32_0 = arith.constant 0 : i32
    %c0_i32_1 = arith.constant 0 : i32
    return %c0_i32, %c0_i32_0 : i32, i32
  }
  func.func @transform_8(%arg0: i32) -> (i32, i32) {
    %c0_i32 = arith.constant 0 : i32
    %c0_i32_0 = arith.constant 0 : i32
    %c0_i32_1 = arith.constant 0 : i32
    return %c0_i32, %c0_i32_0 : i32, i32
  }
  func.func @transform_9(%arg0: i32) -> (i32, i32) {
    %c0_i32 = arith.constant 0 : i32
    %c0_i32_0 = arith.constant 0 : i32
    %c0_i32_1 = arith.constant 0 : i32
    return %c0_i32, %c0_i32_0 : i32, i32
  }
  func.func @transform_10(%arg0: i32) -> (i32, i32) {
    %c0_i32 = arith.constant 0 : i32
    %c0_i32_0 = arith.constant 0 : i32
    return %c0_i32, %arg0 : i32, i32
  }
  func.func @transform_11(%arg0: i32) -> (i32, i32) {
    %c0_i32 = arith.constant 0 : i32
    %c0_i32_0 = arith.constant 0 : i32
    return %c0_i32, %arg0 : i32, i32
  }
  func.func @transform_12(%arg0: i32) -> (i32, i32) {
    %c0_i32 = arith.constant 0 : i32
    %c0_i32_0 = arith.constant 0 : i32
    return %c0_i32, %arg0 : i32, i32
  }
  func.func @transform_13(%arg0: i32) -> (i32, i32) {
    %c0_i32 = arith.constant 0 : i32
    %c0_i32_0 = arith.constant 0 : i32
    %c0_i32_1 = arith.constant 0 : i32
    return %c0_i32, %c0_i32_0 : i32, i32
  }
  func.func @transform_14(%arg0: i32) -> (i32, i32) {
    %c0_i32 = arith.constant 0 : i32
    %c0_i32_0 = arith.constant 0 : i32
    %c0_i32_1 = arith.constant 0 : i32
    return %c0_i32, %c0_i32_0 : i32, i32
  }
}

</mosaic_0001>

<bundles_post_ra>
// kernel: tpu_custom_call.1
= control target key start
LH: loop header
LB: loop body
LE: loop exit
PB: predicated region body
PF: predicated region fallthrough
CT: control target
= control target key end

     0   :  { %s5237_s0 = inlined_call_operand.hbm [shape: f32[8,256], index: 0, kind: input, shape index: {}]   ;;  %s5238_s1 = inlined_call_operand.hbm [shape: f32[8,128], index: 1, kind: input, shape index: {}]   ;;  %s5239_s2 = inlined_call_operand.hbm [shape: f32[8,16,256], index: 2, kind: input, shape index: {}]   ;;  %s5240_s3 = inlined_call_operand.hbm [shape: f32[128,128], index: 3, kind: input, shape index: {}]   ;;  %s5241_s4 = inlined_call_operand.hbm [shape: f32[256,128], index: 4, kind: input, shape index: {}]   ;;  %s5242_s5 = inlined_call_operand.vmem [shape: f32[1,128], index: 5, kind: input, shape index: {}]   ;;  %s5243_s6 = inlined_call_operand.vmem [shape: f32[1,128], index: 6, kind: input, shape index: {}]   ;;  %s5244_s7 = inlined_call_operand.hbm [shape: f32[256,512], index: 7, kind: input, shape index: {}]   ;;  %s5245_s8 = inlined_call_operand.hbm [shape: f32[256,512], index: 8, kind: input, shape index: {}]   ;;  %s5246_s9 = inlined_call_operand.vmem [shape: f32[1,512], index: 9, kind: input, shape index: {}]   ;;  %s5247_s10 = inlined_call_operand.hbm [shape: bf16[128,4096], index: 10, kind: input, shape index: {}]   ;;  %s5248_s11 = inlined_call_operand.hbm [shape: f32[1,4096], index: 11, kind: input, shape index: {}]   ;;  %s5249_s12 = inlined_call_operand.hbm [shape: f32[8,4096], index: 12, kind: output, shape index: {0}]   ;;  %s5250_s13 = inlined_call_operand.hbm [shape: f32[8,128], index: 13, kind: output, shape index: {1}]   ;;  %s5251_s14 = inlined_call_operand.hbm [shape: f32[8,128], index: 14, kind: output, shape index: {2}]  }
   0x1   :  { %5274 = sst [smem:[#allocation34_spill]] %s5238_s1 }
   0x2   :  { %5275 = sst [smem:[#allocation35_spill]] %s5240_s3 }
   0x3   :  { %5276 = sst [smem:[#allocation36_spill]] %s5244_s7 }
   0x4   :  { %5277 = sst [smem:[#allocation37_spill]] %s5247_s10 }
   0x5   :  { %5278 = sst [smem:[#allocation38_spill]] %s5249_s12 }
   0x6   :  { %5279 = sst [smem:[#allocation39_spill]] %s5251_s14 }
   0x7   :  { %20 = vsyncpa [#allocation4], 0 }
   0x8   :  { %21 = vsyncpa [#allocation7], 0 }
   0x9   :  { %22 = vsyncpa [#allocation10], 0 }
   0xa   :  { %23 = vsyncpa [#allocation13], 0 }
   0xb   :  { %24 = vsyncpa [#allocation16], 0 }
   0xc   :  { %26 = vsyncpa [#allocation16 + $0x1], 0 }
   0xd   :  { %27 = vsyncpa [#allocation5], 0 }
   0xe   :  { %29 = vsyncpa [#allocation5 + $0x1], 0 }
   0xf   :  { %30 = vsyncpa [#allocation20], 0  ;;  %s4519_s29 = smov 0   ;;  %s4521_s30 = smov 0  }
  0x10   :  { %s4523_s15 = smov 0   ;;  %s4525_s16 = smov 0  }
  0x11 LB: > { %5280 = sst [smem:[#allocation29_spill]] %s4405_s29  ;;  %s4419_s17 = smov [#allocation6]   ;;  %s4417_s16 = sphi %s4525_s16, %s5330_s16   ;;  %s4413_s15 = sphi %s4523_s15, %s5334_s15   ;;  %s4409_s30 = sphi %s4521_s30, %s5333_s30   ;;  %s4405_s29 = sphi %s4519_s29, %s5332_s29  }
  0x12   : > { %s395_s18 = sshll.u32 %s4419_s17, 4  ;;  %s4540_s19 = sadd.s32 4294967295, %s4417_s16   ;;  %s396_s18 = int_to_ptr.vmem [resolvable:$true] %s395_s18 }
  0x13   : > { %p3497_p0 = scmp.ge.s32.totalorder %s4417_s16, 1  ;;  %p5266_p1 = scmp.eq.s32.totalorder %s4540_s19, 0 }
  0x14   : > { %p371_p2 = scmp.lt.s32.totalorder %s4417_s16, 3  ;;  %s4420_s21 = smov [#allocation9]  }
  0x15   : > { %s418_s22 = sshll.u32 %s4420_s21, 4  ;;  %s4421_s24 = smov [#allocation12]   ;;  %s4553_s22 = int_to_ptr.vmem [resolvable:$true] %s418_s22 }
  0x16   : > { %p4546_p4 = pnand %p3497_p0, %p371_p2  ;;  %s450_s25 = sshll.u32 %s4421_s24, 4  ;;  %s4561_s25 = int_to_ptr.vmem [resolvable:$true] %s450_s25 }
  0x17   : > { %s4058_s27 = scalar_lea.vmem %s396_s18, 128  ;;  %p4066_p12 = scmp.lt.s32.totalorder %s396_s18, %s396_s18 }
  0x18   : > { %s5281_s20 = scalar_select %p4546_p4, 1, 0 }
  0x19   : > { %p3843_p6 = pneg %p4546_p4  ;;  %p4059_p9 = scmp.ne.s32.totalorder %s396_s18, %s4058_s27 }
  0x1a   : > { %p4067_p13 = scmp.lt.s32.totalorder %s4058_s27, %s4058_s27 }
  0x1b   : > { %p4557_p7 = pnand %p3843_p6, %p5266_p1 }
  0x1c   : > { %p4068_p0 = por %p4067_p13, %p4066_p12 }
  0x1d   : > { %s5282_s23 = scalar_select %p4557_p7, 1, 0 }
  0x1e   : > { %p4565_p8 = pneg %p4557_p7 }
  0x20   : > { %p4061_p10 = pnand %p4059_p9, %p4565_p8 }
  0x22   : > { %p4062_p11 = pneg %p4061_p10 }
  0x24   : > { %p4069_p2 = pnand %p4068_p0, %p4062_p11 }
  0x26   : > { %4072 = shalt.err (!%p4069_p2)
}
  0x27   : > { %s5284_s1 = sld [smem:[#allocation34_spill]]  ;;  %s4084_s21 = scalar_lea.vmem %s4553_s22, 2048 }
  0x28   : > { %p4085_p6 = scmp.ne.s32.totalorder %s4553_s22, %s4084_s21  ;;  %p4092_p5 = scmp.lt.s32.totalorder %s4553_s22, %s4553_s22 }
  0x29   : > { %p4093_p12 = scmp.lt.s32.totalorder %s4084_s21, %s4084_s21 }
  0x2a   : > { %p4087_p9 = pnand %p4085_p6, %p4565_p8 }
  0x2b   : > { %p4094_p11 = por %p4093_p12, %p4092_p5 }
  0x2c   : > { %p4088_p10 = pneg %p4087_p9 }
  0x2d   : > { %3849 = dma.hbm_to_vmem [thread:$0]  (!%p4557_p7), %s5284_s1, 128, %s396_s18, [#allocation7]  }
  0x2e   : > { %p4095_p13 = pnand %p4094_p11, %p4088_p10 }
  0x30   : > { %4098 = shalt.err (!%p4095_p13)
}
  0x31   : > { %s5252_s24 = smov 128   ;;  %s5253_s27 = smov 8  }
  0x32   : > { %s5285_s3 = sld [smem:[#allocation35_spill]]  ;;  %s4110_s17 = scalar_lea.vmem %s4561_s25, 16384 }
  0x33   : > { %p4111_p5 = scmp.ne.s32.totalorder %s4561_s25, %s4110_s17  ;;  %p4118_p6 = scmp.lt.s32.totalorder %s4561_s25, %s4561_s25 }
  0x34   : > { %p4119_p9 = scmp.lt.s32.totalorder %s4110_s17, %s4110_s17 }
  0x35   : > { %p4113_p0 = pnand %p4111_p5, %p4565_p8 }
  0x36   : > { %p4120_p10 = por %p4119_p9, %p4118_p6 }
  0x37   : > { %p4114_p2 = pneg %p4113_p0 }
  0x38   : > { %3855 = dma.hbm_to_vmem [thread:$0]  (!%p4557_p7), %s5285_s3, 2048, %s4553_s22, [#allocation10], %s5252_s24, %s5252_s24, %s5253_s27  }
  0x39   : > { %p4121_p12 = pnand %p4120_p10, %p4114_p2 }
  0x3b   : > { %4124 = shalt.err (!%p4121_p12)
}
  0x3c   : > { %s5255_s21 = smov 512   ;;  %s5256_s22 = smov 32  }
  0x3d   : > { %s5286_s7 = sld [smem:[#allocation36_spill]]  ;;  %s3496_s17 = sadd.s32 4294967294, %s4417_s16  }
  0x3e   : > { %s4608_s24 = sadd.s32 1, %s4417_s16   ;;  %s253_s27 = sadd.s32 1, %s4413_s15 }
  0x3f   : > { %5287 = sst [smem:[#allocation30_spill]] %s4608_s24  ;;  %s250_s1 = ssub.s32 %s4417_s16, %s4608_s24 }
  0x40   : > { %p260_p11 = scmp.ne.s32.totalorder %s4413_s15, %s4409_s30  ;;  %p251_p13 = scmp.eq.s32.totalorder %s250_s1, 0 }
  0x41   : > { %p261_p5 = scmp.eq.s32.totalorder %s4417_s16, 0  ;;  %p266_p0 = scmp.ne.s32.totalorder %s4409_s30, %s4405_s29 }
  0x42   : > { %p5265_p2 = scmp.eq.s32.totalorder %s4540_s19, 1  ;;  %p322_p12 = scmp.eq.s32.totalorder %s3496_s17, 1 }
  0x43   : > { %3861 = dma.hbm_to_vmem [thread:$0]  (!%p4557_p7), %s5286_s7, 16384, %s4561_s25, [#allocation13], %s5255_s21, %s5255_s21, %s5256_s22  }
  0x44   : > { %s4620_s3 = scalar_select %p251_p13, %s4413_s15, %s253_s27  }
  0x45   : > { %p262_p6 = por %p261_p5, %p260_p11  ;;  %p4624_p9 = por %p5266_p1, %p266_p0 }
  0x46   : > { %5288 = sst [smem:[#allocation31_spill]] %s4620_s3  ;;  %p4630_p10 = por %p5265_p2, %p260_p11 }
  0x47   : > { %s5289_s25 = scalar_select %p4624_p9, 1, 0 }
  0x48   : > { %s5290_s18 = scalar_select %p4630_p10, 1, 0 }
  0x49   : > { %p3883_p3 = scmp.lt.s32.totalorder %s4417_s16, 2  ;;  %s480_s28 = sand.u32 1, %s4417_s16  }
  0x4a   : > { %5291 = sst [smem:[#allocation32_spill]] %s5290_s18  ;;  %p4636_p4 = por %p322_p12, %p266_p0 }
  0x4b   : > { %s5262_s27 = sand.u32 1, %s4413_s15   ;;  %s3666_s21 = sshll.u32 %s4417_s16, 10 }
  0x4c   : > { %s5292_s1 = scalar_select %p4636_p4, 1, 0 }
  0x4d   : > { %s3506_s22 = sshll.u32 %s5262_s27, 10  ;;  %s5294_s10 = sld [smem:[#allocation37_spill]] }
  0x4e   : > { %5293 = sst [smem:[#allocation33_spill]] %s5292_s1  ;;  %p4649_p11 = pnand %p3883_p3, %p262_p6 }
  0x4f   : > { %s484_s29 = scalar_lea.vmem [#allocation15], %s3506_s22  ;;  %s4655_s12 = scalar_lea.sflag [#allocation16], %s480_s28 }
  0x50   : > { %s5295_s17 = scalar_select %p4649_p11, 1, 0 }
  0x51   : > { %s491_s1 = sshll.u32 %s484_s29, 4  ;;  %p5271_p5 = pneg %p4649_p11  ;;  %s4653_s1 = int_to_ptr.vmem [resolvable:$true] %s491_s1 }
  0x53   : > { %s4647_s24 = scalar_lea.hbm %s5294_s10, %s3666_s21  ;;  %s4130_s21 = scalar_lea.hbm %s5294_s10, 32768 }
  0x54   : > { %s4125_s27 = scalar_lea.hbm %s4647_s24, 16384  ;;  %p4131_p3 = scmp.lt.s32.totalorder %s4647_s24, %s5294_s10 }
  0x55   : > { %p4126_p13 = scmp.ne.s32.totalorder %s4647_s24, %s4125_s27  ;;  %p4132_p6 = scmp.lt.s32.totalorder %s4130_s21, %s4125_s27 }
  0x57   : > { %p4128_p0 = pnand %p5271_p5, %p4126_p13  ;;  %p4133_p2 = por %p4132_p6, %p4131_p3 }
  0x59   : > { %p4129_p12 = pneg %p4128_p0 }
  0x5b   : > { %p4134_p1 = pnand %p4133_p2, %p4129_p12 }
  0x5d   : > { %4137 = shalt.err (!%p4134_p1)
}
  0x5e   : > { %s4138_s29 = scalar_lea.vmem %s4653_s1, 16384  ;;  %s4426_s22 = smov [#allocation15]  }
  0x5f   : > { %p4139_p4 = scmp.ne.s32.totalorder %s4653_s1, %s4138_s29  ;;  %s4143_s28 = sshll.u32 %s4426_s22, 4  ;;  %s4144_s28 = int_to_ptr.vmem [resolvable:$false] %s4143_s28 }
  0x60   : > { %s4145_s3 = scalar_lea.vmem %s4144_s28, 32768  ;;  %p4146_p10 = scmp.lt.s32.totalorder %s4653_s1, %s4144_s28 }
  0x61   : > { %p4141_p13 = pnand %p4139_p4, %p5271_p5  ;;  %p4147_p9 = scmp.lt.s32.totalorder %s4145_s3, %s4138_s29 }
  0x63   : > { %p4142_p0 = pneg %p4141_p13  ;;  %p4148_p7 = por %p4147_p9, %p4146_p10 }
  0x65   : > { %p4149_p3 = pnand %p4148_p7, %p4142_p0 }
  0x67   : > { %4152 = shalt.err (!%p4149_p3)
}
  0x68   : > { %s4427_s14 = smov 2048   ;;  %s4428_s18 = smov 1024  }
  0x69   : > { %s4429_s27 = smov 64   ;;  %s4430_s7 = smov [#allocation3]  }
  0x6a   : > { %3868 = dma.hbm_to_vmem [thread:$0]  (!%p4649_p11), %s4647_s24, 16384, %s4653_s1, %s4655_s12, %s4427_s14, %s4428_s18, %s4429_s27  }
  0x6b   : > { %s384_s21 = sshll.u32 %s4430_s7, 4  ;;  %s4431_s22 = smov [#allocation8]   ;;  %s385_s21 = int_to_ptr.vmem [resolvable:$true] %s384_s21 }
  0x6c   : > { %s405_s10 = sshll.u32 %s4431_s22, 4  ;;  %s4164_s29 = scalar_lea.vmem %s385_s21, 256  ;;  %s406_s10 = int_to_ptr.vmem [resolvable:$true] %s405_s10 }
  0x6d   : > { %p4165_p1 = scmp.ne.s32.totalorder %s385_s21, %s4164_s29  ;;  %p4172_p2 = scmp.lt.s32.totalorder %s385_s21, %s385_s21 }
  0x6e   : > { %p4173_p9 = scmp.lt.s32.totalorder %s4164_s29, %s4164_s29 }
  0x6f   : > { %p4167_p4 = pnand %p4165_p1, %p4565_p8 }
  0x70   : > { %p4174_p10 = por %p4173_p9, %p4172_p2 }
  0x71   : > { %p4168_p7 = pneg %p4167_p4 }
  0x73   : > { %p4175_p12 = pnand %p4174_p10, %p4168_p7 }
  0x75   : > { %4178 = shalt.err (!%p4175_p12)
}
  0x76   : > { %p5296_p6 = scmp.ne.s32.totalorder %s5282_s23, 0  ;;  %s4190_s1 = scalar_lea.vmem %s406_s10, 4096 }
  0x77   : > { %p4191_p13 = scmp.ne.s32.totalorder %s406_s10, %s4190_s1  ;;  %p4198_p5 = scmp.lt.s32.totalorder %s406_s10, %s406_s10 }
  0x78   : > { %3846 = dma.hbm_to_vmem [thread:$0]  (!%p5296_p6), %s5237_s0, 256, %s385_s21, [#allocation4]  }
  0x79   : > { %p4193_p0 = pnand %p4191_p13, %p4565_p8  ;;  %p4199_p1 = scmp.lt.s32.totalorder %s4190_s1, %s4190_s1 }
  0x7b   : > { %p4194_p3 = pneg %p4193_p0  ;;  %p4200_p4 = por %p4199_p1, %p4198_p5 }
  0x7d   : > { %p4201_p11 = pnand %p4200_p4, %p4194_p3 }
  0x7f   : > { %4204 = shalt.err (!%p4201_p11)
}
  0x80   : > { %s4432_s3 = smov 256   ;;  %s4433_s14 = smov 16  }
  0x81   : > { %3852 = dma.hbm_to_vmem [thread:$0]  (!%p5296_p6), %s5239_s2, 4096, %s406_s10, [#allocation7], %s4432_s3, %s4432_s3, %s4433_s14  }
  0x82   : > { %s4434_s7 = smov [#allocation11]   ;;  %s4435_s22 = smov [#allocation14]  }
  0x83   : > { %s431_s21 = sshll.u32 %s4434_s7, 4  ;;  %s463_s29 = sshll.u32 %s4435_s22, 4  ;;  %s432_s21 = int_to_ptr.vmem [resolvable:$true] %s431_s21  ;;  %s464_s29 = int_to_ptr.vmem [resolvable:$true] %s463_s29 }
  0x84   : > { %s4216_s28 = scalar_lea.vmem %s432_s21, 4096  ;;  %p4224_p2 = scmp.lt.s32.totalorder %s432_s21, %s432_s21 }
  0x85   : > { %p4217_p7 = scmp.ne.s32.totalorder %s432_s21, %s4216_s28  ;;  %p4225_p9 = scmp.lt.s32.totalorder %s4216_s28, %s4216_s28 }
  0x87   : > { %p4219_p5 = pnand %p4217_p7, %p4565_p8  ;;  %p4226_p10 = por %p4225_p9, %p4224_p2 }
  0x89   : > { %p4220_p11 = pneg %p4219_p5 }
  0x8b   : > { %p4227_p12 = pnand %p4226_p10, %p4220_p11 }
  0x8d   : > { %4230 = shalt.err (!%p4227_p12)
}
  0x8e   : > { %s5297_s24 = smov 8   ;;  %s5298_s10 = smov 128  }
  0x8f   : > { %3858 = dma.hbm_to_vmem [thread:$0]  (!%p5296_p6), %s5241_s4, 4096, %s432_s21, [#allocation10], %s5298_s10, %s5298_s10, %s5297_s24  }
  0x90   : > { %s4242_s14 = scalar_lea.vmem %s464_s29, 16384  ;;  %p4250_p1 = scmp.lt.s32.totalorder %s464_s29, %s464_s29 }
  0x91   : > { %p4243_p13 = scmp.ne.s32.totalorder %s464_s29, %s4242_s14  ;;  %p4251_p4 = scmp.lt.s32.totalorder %s4242_s14, %s4242_s14 }
  0x93   : > { %p4245_p0 = pnand %p4243_p13, %p4565_p8  ;;  %p4252_p7 = por %p4251_p4, %p4250_p1 }
  0x95   : > { %p4246_p3 = pneg %p4245_p0 }
  0x97   : > { %p4253_p5 = pnand %p4252_p7, %p4246_p3 }
  0x99   : > { %4256 = shalt.err (!%p4253_p5)
}
  0x9a   : > { %s5299_s18 = smov 32   ;;  %s5300_s27 = smov 512  }
  0x9b   : > { %3864 = dma.hbm_to_vmem [thread:$0]  (!%p5296_p6), %s5245_s8, 16384, %s464_s29, [#allocation13], %s5300_s27, %s5300_s27, %s5299_s18  }
  0x9c   : > { %s5301_s26 = sand.u32 1, %s4413_s15   ;;  %s3667_s28 = sshll.u32 %s4417_s16, 8 }
  0x9d   : > { %s3509_s21 = sshll.u32 %s5301_s26, 4  ;;  %s511_s1 = scalar_lea.hbm %s5248_s11, %s3667_s28 }
  0x9e   : > { %s505_s3 = scalar_lea.vmem [#allocation17], %s3509_s21  ;;  %s4257_s23 = scalar_lea.hbm %s511_s1, 256 }
  0x9f   : > { %s513_s14 = sshll.u32 %s505_s3, 4  ;;  %p4258_p8 = scmp.ne.s32.totalorder %s511_s1, %s4257_s23  ;;  %s514_s14 = int_to_ptr.vmem [resolvable:$true] %s513_s14 }
  0xa0   : > { %p5302_p11 = scmp.ne.s32.totalorder %s5295_s17, 0  ;;  %s4262_s29 = scalar_lea.hbm %s5248_s11, 512 }
  0xa1   : > { %p4263_p6 = scmp.lt.s32.totalorder %s511_s1, %s5248_s11  ;;  %p4264_p12 = scmp.lt.s32.totalorder %s4262_s29, %s4257_s23 }
  0xa2   : > { %p5303_p2 = pneg %p5302_p11 }
  0xa3   : > { %p4265_p13 = por %p4264_p12, %p4263_p6 }
  0xa4   : > { %p4260_p9 = pnand %p4258_p8, %p5303_p2 }
  0xa6   : > { %p4261_p10 = pneg %p4260_p9 }
  0xa8   : > { %p4266_p0 = pnand %p4265_p13, %p4261_p10 }
  0xaa   : > { %4269 = shalt.err (!%p4266_p0)
}
  0xab   : > { %s4270_s26 = scalar_lea.vmem %s514_s14, 256  ;;  %p5304_p1 = pmov %p5303_p2 }
  0xac   : > { %p4271_p3 = scmp.ne.s32.totalorder %s514_s14, %s4270_s26  ;;  %s4436_s21 = smov [#allocation17]  }
  0xad   : > { %s4275_s28 = sshll.u32 %s4436_s21, 4  ;;  %s4276_s28 = int_to_ptr.vmem [resolvable:$false] %s4275_s28 }
  0xae   : > { %p4273_p4 = pnand %p4271_p3, %p5304_p1  ;;  %s4277_s24 = scalar_lea.vmem %s4276_s28, 512 }
  0xaf   : > { %p4278_p5 = scmp.lt.s32.totalorder %s514_s14, %s4276_s28  ;;  %p4279_p8 = scmp.lt.s32.totalorder %s4277_s24, %s4270_s26 }
  0xb0   : > { %p4274_p7 = pneg %p4273_p4 }
  0xb1   : > { %p4280_p2 = por %p4279_p8, %p4278_p5 }
  0xb3   : > { %p4281_p9 = pnand %p4280_p2, %p4274_p7 }
  0xb5   : > { %4284 = shalt.err (!%p4281_p9)
}
  0xb6   : > { %3871 = dma.hbm_to_vmem [thread:$0]  (!%p5302_p11), %s511_s1, 256, %s514_s14, %s4655_s12  }
  0xb7   : > { %p5305_p10 = scmp.ne.s32.totalorder %s5281_s20, 0 }
  0xb8   : > { %p5306_p6 = scmp.eq.s32.totalorder (!%p5305_p10), %s4540_s19, 0 }
  0xb9   : > { %522 = sbr.rel (%p5305_p10) target bundleno = 1384 (0x568), region = 68 }
  0xbe   : > { %4376 = dma.done.wait (%p5306_p6), [#allocation4], 256   ;;  %p5307_p12 = pmov %p5306_p6 }
  0xbf   : > { %p5308_p13 = pmov %p5306_p6 }
  0xc0   : > { %4378 = vsyncadd (%p5307_p12), [#allocation4], 4294967040 }
  0xc1   : > { %4380 = dma.done.wait (%p5308_p13), [#allocation7], 4224   ;;  %p5309_p0 = pmov %p5306_p6 }
  0xc3   : > { %4382 = vsyncadd (%p5309_p0), [#allocation7], 4294963072  ;;  %p5310_p3 = pmov %p5309_p0 }
  0xc4   : > { %p5311_p11 = pmov %p5309_p0 }
  0xc5   : > { %4384 = dma.done.wait (%p5310_p3), [#allocation10], 6144  }
  0xc6   : > { %4386 = vsyncadd (%p5311_p11), [#allocation10], 4294961152  ;;  %p5312_p1 = pmov %p5309_p0 }
  0xc7   : > { %p5313_p4 = pmov %p5309_p0 }
  0xc8   : > { %4388 = dma.done.wait (%p5312_p1), [#allocation13], 32768  }
  0xc9   : > { %4390 = vsyncadd (%p5313_p4), [#allocation13], 4294934528  ;;  %s552_s12 = sand.u32 1, %s4540_s19   ;;  %s4757_s20 = sand.u32 1, %s4409_s30  }
  0xca   : > { %s3520_s17 = sshll.u32 %s4757_s20, 10  ;;  %s553_s10 = scalar_lea.sflag [#allocation16], %s552_s12 }
  0xcb   : > { %s4760_s1 = scalar_lea.vmem [#allocation15], %s3520_s17  ;;  %p5314_p7 = scmp.ne.s32.totalorder %s5289_s25, 0 }
  0xcd   : > { %4392 = dma.done.wait (%p5314_p7), %s553_s10, 16640  }
  0xce   : > { %4394 = vsyncadd (%p5314_p7), %s553_s10, 4294950656  ;;  %s3521_s3 = sshll.u32 %s4757_s20, 4  ;;  %s3522_s14 = sshll.u32 %s4757_s20, 7 }
  0xcf   : > { %s4768_s23 = scalar_lea.vmem [#allocation17], %s3521_s3  ;;  %s4770_s7 = scalar_lea.vmem [#allocation18], %s3522_s14 }
  0xd0   : > { %p5315_p5 = scmp.ne.s32.totalorder %s4540_s19, 0 }
  0xd2   : > { %622 = sbr.rel (%p5315_p5) target bundleno = 1036 (0x40c), region = 108 }
  0xd7   : > { %v774_v0 = vld [vmem:[#allocation11 + $0xf8] sm:$0xff]  ;;  %v4437_v3 = vmov 0.0   ;;  %v773_v4 = vld [vmem:[#allocation11 + $0xf0] sm:$0xff]  ;;  %v772_v7 = vld [vmem:[#allocation11 + $0xe8] sm:$0xff]  ;;  %vm4438_vm0 = vmmov 0   ;;  %vm1720_vm1 = vcmask 1041409  }
  0xd8   : > { %v672_v1 = vld [vmem:[#allocation9 + $0x78] sm:$0xff]  ;;  %3766 = vmatprep.subr.mxu0 %v4437_v3  ;;  %3686 = vmatprep.subr.mxu1 %v774_v0  ;;  %v671_v5 = vld [vmem:[#allocation9 + $0x70] sm:$0xff]  ;;  %v670_v8 = vld [vmem:[#allocation9 + $0x68] sm:$0xff]  ;;  %vm1722_vm2 = vcmask 1042434   ;;  %vm1724_vm3 = vcmask 1043459   ;;  %vm1726_vm4 = vcmask 1044484  }
  0xd9   : > { %v758_v2 = vld [vmem:[#allocation11 + $0x78] sm:$0xff]  ;;  %v757_v6 = vld [vmem:[#allocation11 + $0x70] sm:$0xff]  ;;  %3767 = vmatpush3.msra.mxu0 %v672_v1  ;;  %v756_v9 = vld [vmem:[#allocation11 + $0x68] sm:$0xff]  ;;  %3798 = vmatprep.mubr.msk.f32.mxu0 %vm4438_vm0, %v4437_v3  ;;  %vm1728_vm5 = vcmask 1045509   ;;  %vm1730_vm6 = vcmask 1046534   ;;  %vm1732_vm7 = vcmask 1047559  }
  0xda   : > { %3687 = vmatpush3.msra.mxu1 %v758_v2  ;;  %3768 = vmatprep.subr.mxu0 %v4437_v3  ;;  %v771_v10 = vld [vmem:[#allocation11 + $0xe0] sm:$0xff]  ;;  %v770_v13 = vld [vmem:[#allocation11 + $0xd8] sm:$0xff]  ;;  %v769_v16 = vld [vmem:[#allocation11 + $0xd0] sm:$0xff] }
  0xdb   : > { %3688 = vmatprep.subr.mxu1 %v773_v4  ;;  %3769 = vmatpush3.msra.mxu0 %v671_v5  ;;  %v669_v11 = vld [vmem:[#allocation9 + $0x60] sm:$0xff]  ;;  %v668_v14 = vld [vmem:[#allocation9 + $0x58] sm:$0xff]  ;;  %v667_v17 = vld [vmem:[#allocation9 + $0x50] sm:$0xff] }
  0xdc   : > { %3689 = vmatpush3.msra.mxu1 %v757_v6  ;;  %3770 = vmatprep.subr.mxu0 %v4437_v3  ;;  %v755_v12 = vld [vmem:[#allocation11 + $0x60] sm:$0xff]  ;;  %v754_v15 = vld [vmem:[#allocation11 + $0x58] sm:$0xff]  ;;  %v753_v18 = vld [vmem:[#allocation11 + $0x50] sm:$0xff] }
  0xdd   : > { %3690 = vmatprep.subr.mxu1 %v772_v7  ;;  %3771 = vmatpush3.msra.mxu0 %v670_v8  ;;  %v768_v19 = vld [vmem:[#allocation11 + $0xc8] sm:$0xff]  ;;  %v767_v22 = vld [vmem:[#allocation11 + $0xc0] sm:$0xff]  ;;  %v766_v25 = vld [vmem:[#allocation11 + $0xb8] sm:$0xff] }
  0xde   : > { %3691 = vmatpush3.msra.mxu1 %v756_v9  ;;  %3772 = vmatprep.subr.mxu0 %v4437_v3  ;;  %v666_v20 = vld [vmem:[#allocation9 + $0x48] sm:$0xff]  ;;  %v665_v23 = vld [vmem:[#allocation9 + $0x40] sm:$0xff]  ;;  %v664_v26 = vld [vmem:[#allocation9 + $0x38] sm:$0xff] }
  0xdf   : > { %3692 = vmatprep.subr.mxu1 %v771_v10  ;;  %3773 = vmatpush3.msra.mxu0 %v669_v11  ;;  %v752_v21 = vld [vmem:[#allocation11 + $0x48] sm:$0xff]  ;;  %v751_v24 = vld [vmem:[#allocation11 + $0x40] sm:$0xff]  ;;  %v750_v27 = vld [vmem:[#allocation11 + $0x38] sm:$0xff] }
  0xe0   : > { %3693 = vmatpush3.msra.mxu1 %v755_v12  ;;  %3774 = vmatprep.subr.mxu0 %v4437_v3  ;;  %v765_v28 = vld [vmem:[#allocation11 + $0xb0] sm:$0xff]  ;;  %v764_v31 = vld [vmem:[#allocation11 + $0xa8] sm:$0xff]  ;;  %v763_v34 = vld [vmem:[#allocation11 + $0xa0] sm:$0xff] }
  0xe1   : > { %3694 = vmatprep.subr.mxu1 %v770_v13  ;;  %3775 = vmatpush3.msra.mxu0 %v668_v14  ;;  %v663_v29 = vld [vmem:[#allocation9 + $0x30] sm:$0xff]  ;;  %v662_v32 = vld [vmem:[#allocation9 + $0x28] sm:$0xff]  ;;  %v661_v35 = vld [vmem:[#allocation9 + $0x20] sm:$0xff] }
  0xe2   : > { %3695 = vmatpush3.msra.mxu1 %v754_v15  ;;  %3776 = vmatprep.subr.mxu0 %v4437_v3  ;;  %v749_v30 = vld [vmem:[#allocation11 + $0x30] sm:$0xff]  ;;  %v748_v33 = vld [vmem:[#allocation11 + $0x28] sm:$0xff]  ;;  %v747_v36 = vld [vmem:[#allocation11 + $0x20] sm:$0xff] }
  0xe3   : > { %3696 = vmatprep.subr.mxu1 %v769_v16  ;;  %3777 = vmatpush3.msra.mxu0 %v667_v17  ;;  %v762_v37 = vld [vmem:[#allocation11 + $0x98] sm:$0xff]  ;;  %v761_v40 = vld [vmem:[#allocation11 + $0x90] sm:$0xff]  ;;  %v760_v43 = vld [vmem:[#allocation11 + $0x88] sm:$0xff] }
  0xe4   : > { %3697 = vmatpush3.msra.mxu1 %v753_v18  ;;  %3778 = vmatprep.subr.mxu0 %v4437_v3  ;;  %v660_v38 = vld [vmem:[#allocation9 + $0x18] sm:$0xff]  ;;  %v659_v41 = vld [vmem:[#allocation9 + $0x10] sm:$0xff]  ;;  %v658_v44 = vld [vmem:[#allocation9 + $0x8] sm:$0xff]  ;;  %v4439_v18 = vmov 1966171168  }
  0xe5   : > { %3698 = vmatprep.subr.mxu1 %v768_v19  ;;  %3779 = vmatpush3.msra.mxu0 %v666_v20  ;;  %v746_v39 = vld [vmem:[#allocation11 + $0x18] sm:$0xff]  ;;  %v745_v42 = vld [vmem:[#allocation11 + $0x10] sm:$0xff]  ;;  %v744_v45 = vld [vmem:[#allocation11 + $0x8] sm:$0xff]  ;;  %v923_v19 = vunpack.c.l.s4 %v4439_v18  ;;  %v925_v20 = vlaneseq }
  0xe6   : > { %3699 = vmatpush3.msra.mxu1 %v752_v21  ;;  %3780 = vmatprep.subr.mxu0 %v4437_v3  ;;  %v759_v46 = vld [vmem:[#allocation11 + $0x80] sm:$0xff]  ;;  %v626_v49 = vld [vmem:[#allocation8 + $0x8] sm:$0xff]  ;;  %v628_v52 = vld [vmem:[#allocation8 + $0x18] sm:$0xff] }
  0xe7   : > { %3700 = vmatprep.subr.mxu1 %v767_v22  ;;  %3781 = vmatpush3.msra.mxu0 %v665_v23  ;;  %v657_v47 = vld [vmem:[#allocation9] sm:$0xff]  ;;  %v623_v50 = vld [vmem:[#allocation3] sm:$0xff]  ;;  %v627_v53 = vld [vmem:[#allocation8 + $0x10] sm:$0xff]  ;;  %v924_v21 = vunpack.c.0.s8 %v923_v19  ;;  %v4791_v22 = vshrl.u32 %v925_v20, 7 }
  0xe8   : > { %3701 = vmatpush3.msra.mxu1 %v751_v24  ;;  %3782 = vmatprep.subr.mxu0 %v4437_v3  ;;  %v743_v48 = vld [vmem:[#allocation11] sm:$0xff]  ;;  %v630_v54 = vld [vmem:[#allocation8 + $0x28] sm:$0xff]  ;;  %v632_v56 = vld [vmem:[#allocation8 + $0x38] sm:$0xff] }
  0xe9   : > { %3702 = vmatprep.subr.mxu1 %v766_v25  ;;  %3783 = vmatpush3.msra.mxu0 %v664_v26  ;;  %v625_v51 = vld [vmem:[#allocation8] sm:$0xff]  ;;  %v631_v57 = vld [vmem:[#allocation8 + $0x30] sm:$0xff]  ;;  %v634_v58 = vld [vmem:[#allocation8 + $0x48] sm:$0xff]  ;;  %v4794_v23 = vsub.s32 %v924_v21, %v4791_v22 }
  0xea   : > { %3703 = vmatpush3.msra.mxu1 %v750_v27  ;;  %3784 = vmatprep.subr.mxu0 %v4437_v3  ;;  %v629_v55 = vld [vmem:[#allocation8 + $0x20] sm:$0xff]  ;;  %v636_v60 = vld [vmem:[#allocation8 + $0x58] sm:$0xff]  ;;  %v635_v61 = vld [vmem:[#allocation8 + $0x50] sm:$0xff]  ;;  %v4798_v27 = vsub.s32 0, %v4791_v22 }
  0xeb   : > { %3704 = vmatprep.subr.mxu1 %v765_v28  ;;  %3785 = vmatpush3.msra.mxu0 %v663_v29  ;;  %v633_v59 = vld [vmem:[#allocation8 + $0x40] sm:$0xff]  ;;  %v638_v62 = vld [vmem:[#allocation8 + $0x68] sm:$0xff]  ;;  %v640_v0 = vld [vmem:[#allocation8 + $0x78] sm:$0xff] }
  0xec   : > { %3705 = vmatpush3.msra.mxu1 %v749_v30  ;;  %3786 = vmatprep.subr.mxu0 %v4437_v3  ;;  %v637_v63 = vld [vmem:[#allocation8 + $0x60] sm:$0xff]  ;;  %v639_v1 = vld [vmem:[#allocation8 + $0x70] sm:$0xff]  ;;  %v642_v2 = vld [vmem:[#allocation8 + $0x88] sm:$0xff] }
  0xed   : > { %3706 = vmatprep.subr.mxu1 %v764_v31  ;;  %3787 = vmatpush3.msra.mxu0 %v662_v32  ;;  %v644_v4 = vld [vmem:[#allocation8 + $0x98] sm:$0xff]  ;;  %v643_v5 = vld [vmem:[#allocation8 + $0x90] sm:$0xff]  ;;  %v646_v6 = vld [vmem:[#allocation8 + $0xa8] sm:$0xff] }
  0xee   : > { %3707 = vmatpush3.msra.mxu1 %v748_v33  ;;  %3788 = vmatprep.subr.mxu0 %v4437_v3  ;;  %v645_v7 = vld [vmem:[#allocation8 + $0xa0] sm:$0xff]  ;;  %v648_v8 = vld [vmem:[#allocation8 + $0xb8] sm:$0xff]  ;;  %v647_v9 = vld [vmem:[#allocation8 + $0xb0] sm:$0xff] }
  0xef   : > { %3708 = vmatprep.subr.mxu1 %v763_v34  ;;  %3789 = vmatpush3.msra.mxu0 %v661_v35  ;;  %v650_v10 = vld [vmem:[#allocation8 + $0xc8] sm:$0xff]  ;;  %v649_v11 = vld [vmem:[#allocation8 + $0xc0] sm:$0xff]  ;;  %v652_v12 = vld [vmem:[#allocation8 + $0xd8] sm:$0xff] }
  0xf0   : > { %3709 = vmatpush3.msra.mxu1 %v747_v36  ;;  %3790 = vmatprep.subr.mxu0 %v4437_v3  ;;  %v651_v13 = vld [vmem:[#allocation8 + $0xd0] sm:$0xff]  ;;  %v654_v14 = vld [vmem:[#allocation8 + $0xe8] sm:$0xff]  ;;  %v653_v15 = vld [vmem:[#allocation8 + $0xe0] sm:$0xff] }
  0xf1   : > { %3710 = vmatprep.subr.mxu1 %v762_v37  ;;  %3791 = vmatpush3.msra.mxu0 %v660_v38  ;;  %v656_v16 = vld [vmem:[#allocation8 + $0xf8] sm:$0xff]  ;;  %v655_v17 = vld [vmem:[#allocation8 + $0xf0] sm:$0xff]  ;;  %v4806_v38 = vld [vmem:[%s5242_s5] ss:$0 sm:$0xff] }
  0xf2   : > { %3711 = vmatpush3.msra.mxu1 %v746_v39  ;;  %3792 = vmatprep.subr.mxu0 %v4437_v3 }
  0xf3   : > { %3712 = vmatprep.subr.mxu1 %v761_v40  ;;  %3793 = vmatpush3.msra.mxu0 %v659_v41 }
  0xf4   : > { %3713 = vmatpush3.msra.mxu1 %v745_v42  ;;  %3794 = vmatprep.subr.mxu0 %v4437_v3 }
  0xf5   : > { %3714 = vmatprep.subr.mxu1 %v760_v43  ;;  %3795 = vmatpush3.msra.mxu0 %v658_v44 }
  0xf6   : > { %3715 = vmatpush3.msra.mxu1 %v744_v45  ;;  %3796 = vmatprep.subr.mxu0 %v4437_v3  ;;  %v641_v3 = vld [vmem:[#allocation8 + $0x80] sm:$0xff] }
  0xf7   : > { %3716 = vmatprep.subr.mxu1 %v759_v46  ;;  %3797 = vmatpush3.msra.mxu0 %v657_v47  ;;  %v4813_v46 = vld [vmem:[%s5243_s6] ss:$0 sm:$0xff] }
  0xf8   : > { %3717 = vmatpush3.msra.mxu1 %v743_v48  ;;  %839 = vmatprep.mubr.f32.mxu1 %v626_v49 }
  0xf9   : > { %3799 = vmatmul.mubr.f32.vlgmr.msra.gmra.mxu0 %v623_v50  ;;  %840 = vmatmul.mubr.f32.vlgmr.msra.gmra.mxu1 %v625_v51 }
  0xfa   : > { %844 = vmatprep.mubr.f32.mxu1 %v628_v52 }
  0xfd   : > { %845 = vmatmul.mubr.f32.gmra.mxu1 %v627_v53 }
  0xfe   : > { %849 = vmatprep.mubr.f32.mxu1 %v630_v54 }
 0x101   : > { %850 = vmatmul.mubr.f32.gmra.mxu1 %v629_v55 }
 0x102   : > { %854 = vmatprep.mubr.f32.mxu1 %v632_v56 }
 0x105   : > { %855 = vmatmul.mubr.f32.gmra.mxu1 %v631_v57 }
 0x106   : > { %859 = vmatprep.mubr.f32.mxu1 %v634_v58 }
 0x109   : > { %860 = vmatmul.mubr.f32.gmra.mxu1 %v633_v59 }
 0x10a   : > { %864 = vmatprep.mubr.f32.mxu1 %v636_v60 }
 0x10d   : > { %865 = vmatmul.mubr.f32.gmra.mxu1 %v635_v61 }
 0x10e   : > { %869 = vmatprep.mubr.f32.mxu1 %v638_v62 }
 0x111   : > { %870 = vmatmul.mubr.f32.gmra.mxu1 %v637_v63 }
 0x112   : > { %874 = vmatprep.mubr.f32.mxu1 %v640_v0 }
 0x115   : > { %875 = vmatmul.mubr.f32.gmra.mxu1 %v639_v1 }
 0x116   : > { %879 = vmatprep.mubr.f32.mxu1 %v642_v2 }
 0x119   : > { %880 = vmatmul.mubr.f32.gmra.mxu1 %v641_v3 }
 0x11a   : > { %884 = vmatprep.mubr.f32.mxu1 %v644_v4 }
 0x11d   : > { %885 = vmatmul.mubr.f32.gmra.mxu1 %v643_v5 }
 0x11e   : > { %889 = vmatprep.mubr.f32.mxu1 %v646_v6 }
 0x121   : > { %890 = vmatmul.mubr.f32.gmra.mxu1 %v645_v7 }
 0x122   : > { %894 = vmatprep.mubr.f32.mxu1 %v648_v8 }
 0x125   : > { %895 = vmatmul.mubr.f32.gmra.mxu1 %v647_v9 }
 0x126   : > { %899 = vmatprep.mubr.f32.mxu1 %v650_v10 }
 0x129   : > { %900 = vmatmul.mubr.f32.gmra.mxu1 %v649_v11 }
 0x12a   : > { %904 = vmatprep.mubr.f32.mxu1 %v652_v12 }
 0x12d   : > { %905 = vmatmul.mubr.f32.gmra.mxu1 %v651_v13 }
 0x12e   : > { %909 = vmatprep.mubr.f32.mxu1 %v654_v14 }
 0x131   : > { %910 = vmatmul.mubr.f32.gmra.mxu1 %v653_v15 }
 0x132   : > { %914 = vmatprep.mubr.f32.mxu1 %v656_v16 }
 0x135   : > { %915 = vmatmul.mubr.f32.gmra.mxu1 %v655_v17 }
 0x1b9   : > { %v739_v24 = vpop.f32.mrf.mxu0  ;;  %v3718_v25 = vpop.f32.mrf.mxu1 }
 0x1ba   : > { %v928_v26 = vrot.slane %v739_v24, %v4794_v23  ;;  %v921_v3 = vcombine.high %v739_v24, %v739_v24 }
 0x1bb   : > { %v3719_v28 = vpop.f32.mrf.mxu1  ;;  %v3800_v29 = vpop.f32.mrf.mxu0 }
 0x1bc   : > { %v936_v30 = vcombine.high %v928_v26, %v928_v26  ;;  %v944_v31 = vrot.slane %v928_v26, %v4794_v23  ;;  %v3720_v34 = vadd.f32 %v3719_v28, %v3718_v25  ;;  %v935_v12 = vrot.slane %v921_v3, %v4794_v23 }
 0x1bd   : > { %v3721_v32 = vpop.f32.mrf.mxu1 }
 0x1be   : > { %v958_v33 = vrot.slane %v936_v30, %v4794_v23  ;;  %v973_v35 = vrot.slane %v944_v31, %v4798_v27  ;;  %v966_v50 = vcombine.high %v944_v31, %v944_v31  ;;  %v951_v21 = vrot.slane %v935_v12, %v4794_v23 }
 0x1bf   : > { %v3722_v36 = vpop.f32.mrf.mxu1 }
 0x1c0   : > { %v3723_v37 = vadd.f32 %v3722_v36, %v3721_v32  ;;  %v1010_v39 = vadd.f32 %v3720_v34, %v973_v35  ;;  %v977_v42 = vrot.slane %v958_v33, %v4798_v27  ;;  %v981_v59 = vrot.slane %v966_v50, %v4798_v27 }
 0x1c1   : > { %v3724_v40 = vpop.f32.mrf.mxu1  ;;  %v968_v6 = vcombine.high %v958_v33, %v958_v33  ;;  %v989_v33 = vrot.slane %v951_v21, %v4798_v27  ;;  %v937_v36 = vcombine.high %v935_v12, %v935_v12 }
 0x1c2   : > { %v1011_v41 = vadd.f32 %v3723_v37, %v973_v35  ;;  %v1033_v44 = vadd.f32 %v4806_v38, %v1010_v39 }
 0x1c3   : > { %v3725_v43 = vpop.f32.mrf.mxu1  ;;  %v985_v14 = vrot.slane %v968_v6, %v4798_v27 }
 0x1c4   : > { %v3726_v45 = vadd.f32 %v3725_v43, %v3724_v40  ;;  %v1034_v47 = vadd.f32 %v4806_v38, %v1011_v41  ;;  %v1049_v49 = vmax.f32 %v1033_v44, 0.0 }
 0x1c5   : > { %v3727_v48 = vpop.f32.mrf.mxu1 }
 0x1c6   : > { %v1012_v51 = vadd.f32 %v3726_v45, %v977_v42  ;;  %v1072_v53 = vmul.f32 %v4813_v46, %v1049_v49  ;;  %v1050_v54 = vmax.f32 %v1034_v47, 0.0 }
 0x1c7   : > { %v3728_v52 = vpop.f32.mrf.mxu1 }
 0x1c8   : > { %v3729_v55 = vadd.f32 %v3728_v52, %v3727_v48  ;;  %v1035_v56 = vadd.f32 %v4806_v38, %v1012_v51  ;;  %1088 = vadd.xlane.f32.xlu0 %v1072_v53  ;;  %v1073_v62 = vmul.f32 %v4813_v46, %v1050_v54  ;;  %v965_v48 = vrot.slane %v937_v36, %v4794_v23 }
 0x1c9   : > { %v3730_v57 = vpop.f32.mrf.mxu1 }
 0x1ca   : > { %v1013_v58 = vadd.f32 %v3729_v55, %v977_v42  ;;  %v1051_v60 = vmax.f32 %v1035_v56, 0.0  ;;  %v993_v55 = vrot.slane %v965_v48, %v4798_v27 }
 0x1cb   : > { %v3731_v61 = vpop.f32.mrf.mxu1 }
 0x1cc   : > { %v3732_v63 = vadd.f32 %v3731_v61, %v3730_v57  ;;  %v1074_v0 = vmul.f32 %v4813_v46, %v1051_v60  ;;  %v1036_v1 = vadd.f32 %v4806_v38, %v1013_v58  ;;  %1090 = vadd.xlane.f32.xlu0 %v1073_v62 }
 0x1cd   : > { %v3733_v2 = vpop.f32.mrf.mxu1 }
 0x1ce   : > { %v1014_v4 = vadd.f32 %v3732_v63, %v981_v59  ;;  %1092 = vadd.xlane.f32.xlu1 %v1074_v0  ;;  %v1052_v5 = vmax.f32 %v1036_v1, 0.0  ;;  %v967_v63 = vcombine.high %v951_v21, %v951_v21 }
 0x1cf   : > { %v3734_v7 = vpop.f32.mrf.mxu1 }
 0x1d0   : > { %v3735_v8 = vadd.f32 %v3734_v7, %v3733_v2  ;;  %v1075_v9 = vmul.f32 %v4813_v46, %v1052_v5  ;;  %v1037_v10 = vadd.f32 %v4806_v38, %v1014_v4  ;;  %v997_v6 = vrot.slane %v967_v63, %v4798_v27  ;;  %v1618_v63 = vld [vmem:[#allocation14 + $0x150] sm:$0xff] }
 0x1d1   : > { %v3736_v11 = vpop.f32.mrf.mxu1 }
 0x1d2   : > { %v1015_v13 = vadd.f32 %v3735_v8, %v981_v59  ;;  %1094 = vadd.xlane.f32.xlu1 %v1075_v9  ;;  %v1053_v15 = vmax.f32 %v1037_v10, 0.0 }
 0x1d3   : > { %v3737_v16 = vpop.f32.mrf.mxu1 }
 0x1d4   : > { %v3738_v17 = vadd.f32 %v3737_v16, %v3736_v11  ;;  %v1076_v18 = vmul.f32 %v4813_v46, %v1053_v15  ;;  %v1038_v19 = vadd.f32 %v4806_v38, %v1015_v13  ;;  %v969_v15 = vcombine.high %v965_v48, %v965_v48  ;;  %v1635_v48 = vld [vmem:[#allocation14 + $0x1d8] sm:$0xff] }
 0x1d5   : > { %v3739_v20 = vpop.f32.mrf.mxu1 }
 0x1d6   : > { %v1016_v24 = vadd.f32 %v3738_v17, %v985_v14  ;;  %1096 = vadd.xlane.f32.xlu0 %v1076_v18  ;;  %v1054_v25 = vmax.f32 %v1038_v19, 0.0 }
 0x1d7   : > { %v3740_v26 = vpop.f32.mrf.mxu1 }
 0x1d8   : > { %v3741_v28 = vadd.f32 %v3740_v26, %v3739_v20  ;;  %v1077_v29 = vmul.f32 %v4813_v46, %v1054_v25  ;;  %v1039_v30 = vadd.f32 %v4806_v38, %v1016_v24  ;;  %v1001_v24 = vrot.slane %v969_v15, %v4798_v27  ;;  %v1602_v15 = vld [vmem:[#allocation14 + $0xd0] sm:$0xff] }
 0x1d9   : > { %v3742_v31 = vpop.f32.mrf.mxu1 }
 0x1da   : > { %v1017_v32 = vadd.f32 %v3741_v28, %v985_v14  ;;  %1098 = vadd.xlane.f32.xlu1 %v1077_v29  ;;  %v1055_v34 = vmax.f32 %v1039_v30, 0.0 }
 0x1db   : > { %v3743_v35 = vpop.f32.mrf.mxu1 }
 0x1dc   : > { %v3744_v37 = vadd.f32 %v3743_v35, %v3742_v31  ;;  %v1078_v39 = vmul.f32 %v4813_v46, %v1055_v34  ;;  %v1040_v40 = vadd.f32 %v4806_v38, %v1017_v32 }
 0x1dd   : > { %v3745_v41 = vpop.f32.mrf.mxu1 }
 0x1de   : > { %v1018_v42 = vadd.f32 %v3744_v37, %v989_v33  ;;  %1100 = vadd.xlane.f32.xlu0 %v1078_v39  ;;  %v1056_v43 = vmax.f32 %v1040_v40, 0.0 }
 0x1df   : > { %v3746_v44 = vpop.f32.mrf.mxu1 }
 0x1e0   : > { %v3747_v45 = vadd.f32 %v3746_v44, %v3745_v41  ;;  %v1079_v47 = vmul.f32 %v4813_v46, %v1056_v43  ;;  %v1041_v49 = vadd.f32 %v4806_v38, %v1018_v42  ;;  %v1637_v42 = vld [vmem:[#allocation14 + $0x1e8] sm:$0xff]  ;;  %v1639_v43 = vld [vmem:[#allocation14 + $0x1f8] sm:$0xff]  ;;  %v1636_v44 = vld [vmem:[#allocation14 + $0x1e0] sm:$0xff] }
 0x1e1   : > { %v3748_v50 = vpop.f32.mrf.mxu1  ;;  %1743 = vmatprep.subr.mxu0 %v1637_v42  ;;  %1814 = vmatprep.subr.mxu1 %v1639_v43  ;;  %v1576_v42 = vld [vmem:[#allocation14] sm:$0xff]  ;;  %v1578_v43 = vld [vmem:[#allocation14 + $0x10] sm:$0xff] }
 0x1e2   : > { %v1019_v51 = vadd.f32 %v3747_v45, %v989_v33  ;;  %1102 = vadd.xlane.f32.xlu1 %v1079_v47  ;;  %v1057_v52 = vmax.f32 %v1041_v49, 0.0  ;;  %v1638_v45 = vld [vmem:[#allocation14 + $0x1f0] sm:$0xff]  ;;  %1744 = vmatpush1.msra.mxu0 %v1636_v44  ;;  %v1633_v47 = vld [vmem:[#allocation14 + $0x1c8] sm:$0xff]  ;;  %v1632_v49 = vld [vmem:[#allocation14 + $0x1c0] sm:$0xff] }
 0x1e3   : > { %v3749_v53 = vpop.f32.mrf.mxu1  ;;  %1815 = vmatpush1.msra.mxu1 %v1638_v45  ;;  %1745 = vmatprep.subr.mxu0 %v1633_v47  ;;  %v1701_v44 = vld [vmem:[#allocation14 + $0x3e8] sm:$0xff]  ;;  %v1703_v45 = vld [vmem:[#allocation14 + $0x3f8] sm:$0xff]  ;;  %v1700_v47 = vld [vmem:[#allocation14 + $0x3e0] sm:$0xff] }
 0x1e4   : > { %v3750_v54 = vadd.f32 %v3749_v53, %v3748_v50  ;;  %v1080_v56 = vmul.f32 %v4813_v46, %v1057_v52  ;;  %v1042_v57 = vadd.f32 %v4806_v38, %v1019_v51  ;;  %1816 = vmatprep.subr.mxu1 %v1635_v48  ;;  %v1634_v50 = vld [vmem:[#allocation14 + $0x1d0] sm:$0xff]  ;;  %1746 = vmatpush1.msra.mxu0 %v1632_v49  ;;  %v1631_v51 = vld [vmem:[#allocation14 + $0x1b8] sm:$0xff]  ;;  %v1625_v53 = vld [vmem:[#allocation14 + $0x188] sm:$0xff] }
 0x1e5   : > { %v3751_v58 = vpop.f32.mrf.mxu1  ;;  %1817 = vmatpush1.msra.mxu1 %v1634_v50  ;;  %v1630_v52 = vld [vmem:[#allocation14 + $0x1b0] sm:$0xff]  ;;  %v1697_v49 = vld [vmem:[#allocation14 + $0x3c8] sm:$0xff]  ;;  %v1699_v50 = vld [vmem:[#allocation14 + $0x3d8] sm:$0xff] }
 0x1e6   : > { %v1020_v59 = vadd.f32 %v3750_v54, %v993_v55  ;;  %1104 = vadd.xlane.f32.xlu0 %v1080_v56  ;;  %v1058_v60 = vmax.f32 %v1042_v57, 0.0  ;;  %1818 = vmatprep.subr.mxu1 %v1631_v51  ;;  %v1627_v54 = vld [vmem:[#allocation14 + $0x198] sm:$0xff]  ;;  %v1626_v56 = vld [vmem:[#allocation14 + $0x190] sm:$0xff]  ;;  %v1621_v57 = vld [vmem:[#allocation14 + $0x168] sm:$0xff] }
 0x1e7   : > { %v3752_v61 = vpop.f32.mrf.mxu1  ;;  %1819 = vmatpush1.msra.mxu1 %v1630_v52  ;;  %v1702_v48 = vld [vmem:[#allocation14 + $0x3f0] sm:$0xff]  ;;  %v1695_v52 = vld [vmem:[#allocation14 + $0x3b8] sm:$0xff] }
 0x1e8   : > { %v3753_v23 = vadd.f32 %v3752_v61, %v3751_v58  ;;  %v1081_v62 = vmul.f32 %v4813_v46, %v1058_v60  ;;  %v1043_v0 = vadd.f32 %v4806_v38, %v1020_v59  ;;  %1820 = vmatprep.subr.mxu1 %v1627_v54  ;;  %v1623_v58 = vld [vmem:[#allocation14 + $0x178] sm:$0xff]  ;;  %v1620_v59 = vld [vmem:[#allocation14 + $0x160] sm:$0xff]  ;;  %v1622_v60 = vld [vmem:[#allocation14 + $0x170] sm:$0xff] }
 0x1e9   : > { %v3754_v1 = vpop.f32.mrf.mxu1  ;;  %1821 = vmatpush1.msra.mxu1 %v1626_v56  ;;  %v1617_v61 = vld [vmem:[#allocation14 + $0x148] sm:$0xff]  ;;  %v1698_v51 = vld [vmem:[#allocation14 + $0x3d0] sm:$0xff]  ;;  %v1691_v56 = vld [vmem:[#allocation14 + $0x398] sm:$0xff] }
 0x1ea   : > { %v1021_v2 = vadd.f32 %v3753_v23, %v993_v55  ;;  %1106 = vadd.xlane.f32.xlu1 %v1081_v62  ;;  %v1059_v3 = vmax.f32 %v1043_v0, 0.0  ;;  %v1624_v55 = vld [vmem:[#allocation14 + $0x180] sm:$0xff]  ;;  %1822 = vmatprep.subr.mxu1 %v1623_v58  ;;  %v1619_v23 = vld [vmem:[#allocation14 + $0x158] sm:$0xff]  ;;  %v1613_v0 = vld [vmem:[#allocation14 + $0x128] sm:$0xff] }
 0x1eb   : > { %v3755_v4 = vpop.f32.mrf.mxu1  ;;  %1823 = vmatpush1.msra.mxu1 %v1622_v60  ;;  %v1616_v62 = vld [vmem:[#allocation14 + $0x140] sm:$0xff]  ;;  %v1694_v54 = vld [vmem:[#allocation14 + $0x3b0] sm:$0xff]  ;;  %v1687_v60 = vld [vmem:[#allocation14 + $0x378] sm:$0xff] }
 0x1ec   : > { %v3756_v5 = vadd.f32 %v3755_v4, %v3754_v1  ;;  %v1082_v7 = vmul.f32 %v4813_v46, %v1059_v3  ;;  %v1044_v8 = vadd.f32 %v4806_v38, %v1021_v2  ;;  %1824 = vmatprep.subr.mxu1 %v1619_v23  ;;  %v1615_v1 = vld [vmem:[#allocation14 + $0x138] sm:$0xff]  ;;  %v1612_v2 = vld [vmem:[#allocation14 + $0x120] sm:$0xff]  ;;  %v1614_v3 = vld [vmem:[#allocation14 + $0x130] sm:$0xff] }
 0x1ed   : > { %v3757_v9 = vpop.f32.mrf.mxu1  ;;  %1825 = vmatpush1.msra.mxu1 %v1618_v63  ;;  %v1609_v4 = vld [vmem:[#allocation14 + $0x108] sm:$0xff]  ;;  %v1690_v58 = vld [vmem:[#allocation14 + $0x390] sm:$0xff]  ;;  %v1683_v63 = vld [vmem:[#allocation14 + $0x358] sm:$0xff] }
 0x1ee   : > { %v1022_v10 = vadd.f32 %v3756_v5, %v997_v6  ;;  %1108 = vadd.xlane.f32.xlu0 %v1082_v7  ;;  %v1060_v11 = vmax.f32 %v1044_v8, 0.0  ;;  %1826 = vmatprep.subr.mxu1 %v1615_v1  ;;  %v1611_v5 = vld [vmem:[#allocation14 + $0x118] sm:$0xff]  ;;  %v1610_v7 = vld [vmem:[#allocation14 + $0x110] sm:$0xff]  ;;  %v1605_v8 = vld [vmem:[#allocation14 + $0xe8] sm:$0xff] }
 0x1ef   : > { %v3758_v12 = vpop.f32.mrf.mxu1  ;;  %1827 = vmatpush1.msra.mxu1 %v1614_v3  ;;  %v1686_v23 = vld [vmem:[#allocation14 + $0x370] sm:$0xff]  ;;  %v1679_v3 = vld [vmem:[#allocation14 + $0x338] sm:$0xff] }
 0x1f0   : > { %v3759_v13 = vadd.f32 %v3758_v12, %v3757_v9  ;;  %v1083_v14 = vmul.f32 %v4813_v46, %v1060_v11  ;;  %v1045_v16 = vadd.f32 %v4806_v38, %v1022_v10  ;;  %1828 = vmatprep.subr.mxu1 %v1611_v5  ;;  %v1607_v9 = vld [vmem:[#allocation14 + $0xf8] sm:$0xff]  ;;  %v1604_v10 = vld [vmem:[#allocation14 + $0xe0] sm:$0xff]  ;;  %v1606_v11 = vld [vmem:[#allocation14 + $0xf0] sm:$0xff] }
 0x1f1   : > { %v3760_v17 = vpop.f32.mrf.mxu1  ;;  %1829 = vmatpush1.msra.mxu1 %v1610_v7  ;;  %v1601_v12 = vld [vmem:[#allocation14 + $0xc8] sm:$0xff]  ;;  %v1682_v1 = vld [vmem:[#allocation14 + $0x350] sm:$0xff]  ;;  %v1675_v7 = vld [vmem:[#allocation14 + $0x318] sm:$0xff] }
 0x1f2   : > { %v1023_v18 = vadd.f32 %v3759_v13, %v997_v6  ;;  %1110 = vadd.xlane.f32.xlu1 %v1083_v14  ;;  %v1061_v19 = vmax.f32 %v1045_v16, 0.0  ;;  %v1608_v6 = vld [vmem:[#allocation14 + $0x100] sm:$0xff]  ;;  %1830 = vmatprep.subr.mxu1 %v1607_v9  ;;  %v1603_v13 = vld [vmem:[#allocation14 + $0xd8] sm:$0xff]  ;;  %v1597_v16 = vld [vmem:[#allocation14 + $0xa8] sm:$0xff] }
 0x1f3   : > { %v3761_v20 = vpop.f32.mrf.mxu1  ;;  %1831 = vmatpush1.msra.mxu1 %v1606_v11  ;;  %v1600_v14 = vld [vmem:[#allocation14 + $0xc0] sm:$0xff]  ;;  %v1678_v5 = vld [vmem:[#allocation14 + $0x330] sm:$0xff]  ;;  %v1671_v11 = vld [vmem:[#allocation14 + $0x2f8] sm:$0xff] }
 0x1f4   : > { %v3762_v21 = vadd.f32 %v3761_v20, %v3760_v17  ;;  %v1084_v25 = vmul.f32 %v4813_v46, %v1061_v19  ;;  %v1046_v26 = vadd.f32 %v4806_v38, %v1023_v18  ;;  %1832 = vmatprep.subr.mxu1 %v1603_v13  ;;  %v1599_v17 = vld [vmem:[#allocation14 + $0xb8] sm:$0xff]  ;;  %v1596_v18 = vld [vmem:[#allocation14 + $0xa0] sm:$0xff]  ;;  %v1598_v19 = vld [vmem:[#allocation14 + $0xb0] sm:$0xff] }
 0x1f5   : > { %v3763_v28 = vpop.f32.mrf.mxu1  ;;  %1833 = vmatpush1.msra.mxu1 %v1602_v15  ;;  %v1593_v20 = vld [vmem:[#allocation14 + $0x88] sm:$0xff]  ;;  %v1674_v9 = vld [vmem:[#allocation14 + $0x310] sm:$0xff]  ;;  %v1667_v15 = vld [vmem:[#allocation14 + $0x2d8] sm:$0xff] }
 0x1f6   : > { %v1024_v29 = vadd.f32 %v3762_v21, %v1001_v24  ;;  %1112 = vadd.xlane.f32.xlu0 %v1084_v25  ;;  %v1062_v30 = vmax.f32 %v1046_v26, 0.0  ;;  %1834 = vmatprep.subr.mxu1 %v1599_v17  ;;  %v1595_v21 = vld [vmem:[#allocation14 + $0x98] sm:$0xff]  ;;  %v1594_v25 = vld [vmem:[#allocation14 + $0x90] sm:$0xff]  ;;  %v1589_v26 = vld [vmem:[#allocation14 + $0x68] sm:$0xff] }
 0x1f7   : > { %v3764_v31 = vpop.f32.mrf.mxu1  ;;  %1835 = vmatpush1.msra.mxu1 %v1598_v19  ;;  %v1670_v13 = vld [vmem:[#allocation14 + $0x2f0] sm:$0xff]  ;;  %v1663_v19 = vld [vmem:[#allocation14 + $0x2b8] sm:$0xff] }
 0x1f8   : > { %v3765_v32 = vadd.f32 %v3764_v31, %v3763_v28  ;;  %v1085_v33 = vmul.f32 %v4813_v46, %v1062_v30  ;;  %v1047_v34 = vadd.f32 %v4806_v38, %v1024_v29  ;;  %v1591_v28 = vld [vmem:[#allocation14 + $0x78] sm:$0xff]  ;;  %1836 = vmatprep.subr.mxu1 %v1595_v21  ;;  %v1588_v29 = vld [vmem:[#allocation14 + $0x60] sm:$0xff]  ;;  %v1590_v30 = vld [vmem:[#allocation14 + $0x70] sm:$0xff] }
 0x1f9   : > { %1837 = vmatpush1.msra.mxu1 %v1594_v25  ;;  %v1585_v31 = vld [vmem:[#allocation14 + $0x48] sm:$0xff]  ;;  %v1666_v17 = vld [vmem:[#allocation14 + $0x2d0] sm:$0xff]  ;;  %v1659_v25 = vld [vmem:[#allocation14 + $0x298] sm:$0xff] }
 0x1fa   : > { %v1025_v35 = vadd.f32 %v3765_v32, %v1001_v24  ;;  %1114 = vadd.xlane.f32.xlu1 %v1085_v33  ;;  %v1063_v36 = vmax.f32 %v1047_v34, 0.0  ;;  %v1592_v24 = vld [vmem:[#allocation14 + $0x80] sm:$0xff]  ;;  %v1587_v32 = vld [vmem:[#allocation14 + $0x58] sm:$0xff]  ;;  %1838 = vmatprep.subr.mxu1 %v1591_v28  ;;  %v1586_v34 = vld [vmem:[#allocation14 + $0x50] sm:$0xff] }
 0x1fb   : > { %v1584_v33 = vld [vmem:[#allocation14 + $0x40] sm:$0xff]  ;;  %1839 = vmatpush1.msra.mxu1 %v1590_v30  ;;  %v1662_v21 = vld [vmem:[#allocation14 + $0x2b0] sm:$0xff]  ;;  %v1655_v30 = vld [vmem:[#allocation14 + $0x278] sm:$0xff] }
 0x1fc   : > { %v1086_v37 = vmul.f32 %v4813_v46, %v1063_v36  ;;  %v1048_v39 = vadd.f32 %v4806_v38, %v1025_v35  ;;  %v1629_v38 = vld [vmem:[#allocation14 + $0x1a8] sm:$0xff]  ;;  %v1583_v36 = vld [vmem:[#allocation14 + $0x38] sm:$0xff]  ;;  %1840 = vmatprep.subr.mxu1 %v1587_v32  ;;  %v1658_v28 = vld [vmem:[#allocation14 + $0x290] sm:$0xff] }
 0x1fd   : > { %1747 = vmatprep.subr.mxu0 %v1629_v38  ;;  %v1581_v35 = vld [vmem:[#allocation14 + $0x28] sm:$0xff]  ;;  %1841 = vmatpush1.msra.mxu1 %v1586_v34  ;;  %v1696_v38 = vld [vmem:[#allocation14 + $0x3c0] sm:$0xff]  ;;  %v1654_v32 = vld [vmem:[#allocation14 + $0x270] sm:$0xff] }
 0x1fe   : > { %1116 = vadd.xlane.f32.xlu0 %v1086_v37  ;;  %v1064_v40 = vmax.f32 %v1048_v39, 0.0  ;;  %v1580_v37 = vld [vmem:[#allocation14 + $0x20] sm:$0xff]  ;;  %v1582_v39 = vld [vmem:[#allocation14 + $0x30] sm:$0xff]  ;;  %1842 = vmatprep.subr.mxu1 %v1583_v36  ;;  %v1651_v34 = vld [vmem:[#allocation14 + $0x258] sm:$0xff] }
 0x1ff   : > { %1843 = vmatpush1.msra.mxu1 %v1582_v39  ;;  %v1650_v36 = vld [vmem:[#allocation14 + $0x250] sm:$0xff]  ;;  %v1647_v39 = vld [vmem:[#allocation14 + $0x238] sm:$0xff] }
 0x200   : > { %v1087_v41 = vmul.f32 %v4813_v46, %v1064_v40  ;;  %v1628_v46 = vld [vmem:[#allocation14 + $0x1a0] sm:$0xff]  ;;  %v1577_v40 = vld [vmem:[#allocation14 + $0x8] sm:$0xff] }
 0x201   : > { %1748 = vmatpush1.msra.mxu0 %v1628_v46  ;;  %v1693_v46 = vld [vmem:[#allocation14 + $0x3a8] sm:$0xff] }
 0x202   : > { %1118 = vadd.xlane.f32.xlu1 %v1087_v41  ;;  %1749 = vmatprep.subr.mxu0 %v1625_v53  ;;  %v1579_v41 = vld [vmem:[#allocation14 + $0x18] sm:$0xff]  ;;  %v1692_v53 = vld [vmem:[#allocation14 + $0x3a0] sm:$0xff] }
 0x203   : > { %1750 = vmatpush1.msra.mxu0 %v1624_v55  ;;  %1844 = vmatprep.subr.mxu1 %v1579_v41  ;;  %v1689_v55 = vld [vmem:[#allocation14 + $0x388] sm:$0xff]  ;;  %v1646_v41 = vld [vmem:[#allocation14 + $0x230] sm:$0xff] }
 0x204   : > { %1751 = vmatprep.subr.mxu0 %v1621_v57  ;;  %1845 = vmatpush1.msra.mxu1 %v1578_v43  ;;  %v1688_v57 = vld [vmem:[#allocation14 + $0x380] sm:$0xff]  ;;  %v1643_v43 = vld [vmem:[#allocation14 + $0x218] sm:$0xff] }
 0x205   : > { %1752 = vmatpush1.msra.mxu0 %v1620_v59  ;;  %1846 = vmatprep.subr.mxu1 %v1703_v45  ;;  %v1685_v59 = vld [vmem:[#allocation14 + $0x368] sm:$0xff]  ;;  %v1642_v45 = vld [vmem:[#allocation14 + $0x210] sm:$0xff] }
 0x206   : > { %1753 = vmatprep.subr.mxu0 %v1617_v61  ;;  %1847 = vmatpush2.msra.mxu1 %v1702_v48  ;;  %v1684_v61 = vld [vmem:[#allocation14 + $0x360] sm:$0xff]  ;;  %v1511_v48 = vld [vmem:[#allocation12 + $0x1f8] sm:$0xff] }
 0x207   : > { %1754 = vmatpush1.msra.mxu0 %v1616_v62  ;;  %1848 = vmatprep.subr.mxu1 %v1699_v50  ;;  %v1681_v62 = vld [vmem:[#allocation14 + $0x348] sm:$0xff] }
 0x208   : > { %1755 = vmatprep.subr.mxu0 %v1613_v0  ;;  %1849 = vmatpush2.msra.mxu1 %v1698_v51  ;;  %v1680_v0 = vld [vmem:[#allocation14 + $0x340] sm:$0xff] }
 0x209   : > { %1756 = vmatpush1.msra.mxu0 %v1612_v2  ;;  %1850 = vmatprep.subr.mxu1 %v1695_v52  ;;  %v1677_v2 = vld [vmem:[#allocation14 + $0x328] sm:$0xff] }
 0x20a   : > { %1757 = vmatprep.subr.mxu0 %v1609_v4  ;;  %1851 = vmatpush2.msra.mxu1 %v1694_v54  ;;  %v1676_v4 = vld [vmem:[#allocation14 + $0x320] sm:$0xff] }
 0x20b   : > { %1758 = vmatpush1.msra.mxu0 %v1608_v6  ;;  %1852 = vmatprep.subr.mxu1 %v1691_v56  ;;  %v1673_v6 = vld [vmem:[#allocation14 + $0x308] sm:$0xff] }
 0x20c   : > { %1759 = vmatprep.subr.mxu0 %v1605_v8  ;;  %1853 = vmatpush2.msra.mxu1 %v1690_v58  ;;  %v1672_v8 = vld [vmem:[#allocation14 + $0x300] sm:$0xff] }
 0x20d   : > { %1760 = vmatpush1.msra.mxu0 %v1604_v10  ;;  %1854 = vmatprep.subr.mxu1 %v1687_v60  ;;  %v1669_v10 = vld [vmem:[#allocation14 + $0x2e8] sm:$0xff] }
 0x20e   : > { %1761 = vmatprep.subr.mxu0 %v1601_v12  ;;  %1855 = vmatpush2.msra.mxu1 %v1686_v23  ;;  %v1668_v12 = vld [vmem:[#allocation14 + $0x2e0] sm:$0xff] }
 0x20f   : > { %1762 = vmatpush1.msra.mxu0 %v1600_v14  ;;  %1856 = vmatprep.subr.mxu1 %v1683_v63  ;;  %v1665_v14 = vld [vmem:[#allocation14 + $0x2c8] sm:$0xff] }
 0x210   : > { %1763 = vmatprep.subr.mxu0 %v1597_v16  ;;  %1857 = vmatpush2.msra.mxu1 %v1682_v1  ;;  %v1664_v16 = vld [vmem:[#allocation14 + $0x2c0] sm:$0xff] }
 0x211   : > { %1764 = vmatpush1.msra.mxu0 %v1596_v18  ;;  %1858 = vmatprep.subr.mxu1 %v1679_v3  ;;  %v1661_v18 = vld [vmem:[#allocation14 + $0x2a8] sm:$0xff] }
 0x212   : > { %1765 = vmatprep.subr.mxu0 %v1593_v20  ;;  %1859 = vmatpush2.msra.mxu1 %v1678_v5  ;;  %v1660_v20 = vld [vmem:[#allocation14 + $0x2a0] sm:$0xff] }
 0x213   : > { %1766 = vmatpush1.msra.mxu0 %v1592_v24  ;;  %1860 = vmatprep.subr.mxu1 %v1675_v7  ;;  %v1657_v24 = vld [vmem:[#allocation14 + $0x288] sm:$0xff] }
 0x214   : > { %1767 = vmatprep.subr.mxu0 %v1589_v26  ;;  %1861 = vmatpush2.msra.mxu1 %v1674_v9  ;;  %v1656_v26 = vld [vmem:[#allocation14 + $0x280] sm:$0xff] }
 0x215   : > { %1768 = vmatpush1.msra.mxu0 %v1588_v29  ;;  %1862 = vmatprep.subr.mxu1 %v1671_v11  ;;  %v1653_v29 = vld [vmem:[#allocation14 + $0x268] sm:$0xff] }
 0x216   : > { %1769 = vmatprep.subr.mxu0 %v1585_v31  ;;  %1863 = vmatpush2.msra.mxu1 %v1670_v13  ;;  %v1652_v31 = vld [vmem:[#allocation14 + $0x260] sm:$0xff] }
 0x217   : > { %1770 = vmatpush1.msra.mxu0 %v1584_v33  ;;  %1864 = vmatprep.subr.mxu1 %v1667_v15  ;;  %v1649_v33 = vld [vmem:[#allocation14 + $0x248] sm:$0xff] }
 0x218   : > { %1771 = vmatprep.subr.mxu0 %v1581_v35  ;;  %1865 = vmatpush2.msra.mxu1 %v1666_v17  ;;  %v1648_v35 = vld [vmem:[#allocation14 + $0x240] sm:$0xff] }
 0x219   : > { %1772 = vmatpush1.msra.mxu0 %v1580_v37  ;;  %1866 = vmatprep.subr.mxu1 %v1663_v19  ;;  %v1645_v37 = vld [vmem:[#allocation14 + $0x228] sm:$0xff] }
 0x21a   : > { %1773 = vmatprep.subr.mxu0 %v1577_v40  ;;  %1867 = vmatpush2.msra.mxu1 %v1662_v21  ;;  %v1644_v40 = vld [vmem:[#allocation14 + $0x220] sm:$0xff] }
 0x21b   : > { %1774 = vmatpush1.msra.mxu0 %v1576_v42  ;;  %1868 = vmatprep.subr.mxu1 %v1659_v25  ;;  %v1641_v42 = vld [vmem:[#allocation14 + $0x208] sm:$0xff] }
 0x21c   : > { %1775 = vmatprep.subr.mxu0 %v1701_v44  ;;  %1869 = vmatpush2.msra.mxu1 %v1658_v28  ;;  %v1640_v44 = vld [vmem:[#allocation14 + $0x200] sm:$0xff] }
 0x21d   : > { %1776 = vmatpush2.msra.mxu0 %v1700_v47  ;;  %1870 = vmatprep.subr.mxu1 %v1655_v30  ;;  %v1509_v47 = vld [vmem:[#allocation12 + $0x1e8] sm:$0xff] }
 0x21e   : > { %1777 = vmatprep.subr.mxu0 %v1697_v49  ;;  %1871 = vmatpush2.msra.mxu1 %v1654_v32 }
 0x21f   : > { %1778 = vmatpush2.msra.mxu0 %v1696_v38  ;;  %1872 = vmatprep.subr.mxu1 %v1651_v34 }
 0x220   : > { %1779 = vmatprep.subr.mxu0 %v1693_v46  ;;  %1873 = vmatpush2.msra.mxu1 %v1650_v36 }
 0x221   : > { %1780 = vmatpush2.msra.mxu0 %v1692_v53  ;;  %1874 = vmatprep.subr.mxu1 %v1647_v39 }
 0x222   : > { %1781 = vmatprep.subr.mxu0 %v1689_v55  ;;  %1875 = vmatpush2.msra.mxu1 %v1646_v41 }
 0x223   : > { %1782 = vmatpush2.msra.mxu0 %v1688_v57  ;;  %1876 = vmatprep.subr.mxu1 %v1643_v43 }
 0x224   : > { %1783 = vmatprep.subr.mxu0 %v1685_v59  ;;  %1877 = vmatpush2.msra.mxu1 %v1642_v45 }
 0x225   : > { %1784 = vmatpush2.msra.mxu0 %v1684_v61  ;;  %1956 = vmatprep.subr.mxu1 %v1511_v48 }
 0x226   : > { %1785 = vmatprep.subr.mxu0 %v1681_v62 }
 0x227   : > { %1786 = vmatpush2.msra.mxu0 %v1680_v0 }
 0x228   : > { %1787 = vmatprep.subr.mxu0 %v1677_v2 }
 0x229   : > { %1788 = vmatpush2.msra.mxu0 %v1676_v4 }
 0x22a   : > { %1789 = vmatprep.subr.mxu0 %v1673_v6 }
 0x22b   : > { %1790 = vmatpush2.msra.mxu0 %v1672_v8 }
 0x22c   : > { %1791 = vmatprep.subr.mxu0 %v1669_v10 }
 0x22d   : > { %1792 = vmatpush2.msra.mxu0 %v1668_v12 }
 0x22e   : > { %1793 = vmatprep.subr.mxu0 %v1665_v14 }
 0x22f   : > { %1794 = vmatpush2.msra.mxu0 %v1664_v16 }
 0x230   : > { %1795 = vmatprep.subr.mxu0 %v1661_v18 }
 0x231   : > { %1796 = vmatpush2.msra.mxu0 %v1660_v20 }
 0x232   : > { %1797 = vmatprep.subr.mxu0 %v1657_v24 }
 0x233   : > { %1798 = vmatpush2.msra.mxu0 %v1656_v26 }
 0x234   : > { %1799 = vmatprep.subr.mxu0 %v1653_v29 }
 0x235   : > { %1800 = vmatpush2.msra.mxu0 %v1652_v31 }
 0x236   : > { %1801 = vmatprep.subr.mxu0 %v1649_v33 }
 0x237   : > { %1802 = vmatpush2.msra.mxu0 %v1648_v35 }
 0x238   : > { %1803 = vmatprep.subr.mxu0 %v1645_v37 }
 0x239   : > { %1804 = vmatpush2.msra.mxu0 %v1644_v40 }
 0x23a   : > { %1805 = vmatprep.subr.mxu0 %v1641_v42 }
 0x23b   : > { %1806 = vmatpush2.msra.mxu0 %v1640_v44 }
 0x23c   : > { %1885 = vmatprep.subr.mxu0 %v1509_v47 }
 0x251   : > { %v1089_v49 = vpop.xlane.xlu0 %1088 }
 0x255   : > { %v1091_v50 = vpop.xlane.xlu0 %1090 }
 0x256   : > { %v1120_v38 = vmax.f32 %v1089_v49, %v1091_v50 }
 0x257   : > { %v1093_v51 = vpop.xlane.xlu1 %1092 }
 0x258   : > { %v1121_v46 = vrot.slane %v1120_v38, 4 }
 0x25a   : > { %v1122_v52 = vmax.f32 %v1120_v38, %v1121_v46 }
 0x25b   : > { %v1095_v53 = vpop.xlane.xlu1 %1094 }
 0x25c   : > { %v1127_v54 = vmax.f32 %v1093_v51, %v1095_v53  ;;  %v1123_v55 = vrot.slane %v1122_v52, 2 }
 0x25e   : > { %v1128_v56 = vrot.slane %v1127_v54, 4  ;;  %v1124_v57 = vmax.f32 %v1122_v52, %v1123_v55 }
 0x25f   : > { %v1097_v23 = vpop.xlane.xlu0 %1096 }
 0x260   : > { %v1129_v58 = vmax.f32 %v1127_v54, %v1128_v56  ;;  %v1125_v59 = vrot.slane %v1124_v57, 1 }
 0x262   : > { %v1130_v60 = vrot.slane %v1129_v58, 2  ;;  %v1126_v61 = vmax.f32 %v1124_v57, %v1125_v59 }
 0x263   : > { %v1099_v62 = vpop.xlane.xlu1 %1098 }
 0x264   : > { %v1131_v63 = vmax.f32 %v1129_v58, %v1130_v60  ;;  %v1134_v0 = vmax.f32 %v1097_v23, %v1099_v62  ;;  %v1176_v3 = vsub.f32 %v1089_v49, %v1126_v61  ;;  %v1177_v4 = vsub.f32 %v1091_v50, %v1126_v61 }
 0x266   : > { %v1132_v1 = vrot.slane %v1131_v63, 1  ;;  %v1135_v2 = vrot.slane %v1134_v0, 4  ;;  %v1192_v8 = vmul.f32 1.442695, %v1176_v3  ;;  %v1194_v11 = vmul.f32 1.442695, %v1177_v4 }
 0x267   : > { %v1101_v9 = vpop.xlane.xlu0 %1100  ;;  %v4014_v3 = vld [vmem:[#allocation8 + $0x8] sm:$0xff] }
 0x268   : > { %v1136_v5 = vmax.f32 %v1134_v0, %v1135_v2  ;;  %v1133_v6 = vmax.f32 %v1131_v63, %v1132_v1  ;;  %3950 = vpow2.f32 %v1192_v8 }
 0x269   : > { %3952 = vpow2.f32 %v1194_v11 }
 0x26a   : > { %v1137_v7 = vrot.slane %v1136_v5, 2  ;;  %v1178_v14 = vsub.f32 %v1093_v51, %v1133_v6  ;;  %v1179_v15 = vsub.f32 %v1095_v53, %v1133_v6 }
 0x26b   : > { %v1103_v10 = vpop.xlane.xlu1 %1102 }
 0x26c   : > { %v1138_v12 = vmax.f32 %v1136_v5, %v1137_v7  ;;  %v1141_v13 = vmax.f32 %v1101_v9, %v1103_v10  ;;  %v1196_v20 = vmul.f32 1.442695, %v1178_v14  ;;  %v1198_v21 = vmul.f32 1.442695, %v1179_v15  ;;  %v4015_v7 = vld [vmem:[#allocation8 + $0x18] sm:$0xff] }
 0x26e   : > { %v1139_v16 = vrot.slane %v1138_v12, 1  ;;  %v1142_v17 = vrot.slane %v1141_v13, 4  ;;  %3954 = vpow2.f32 %v1196_v20  ;;  %v4019_v20 = vld [vmem:[#allocation8 + $0x58] sm:$0xff] }
 0x26f   : > { %v1105_v28 = vpop.xlane.xlu0 %1104  ;;  %3956 = vpow2.f32 %v1198_v21 }
 0x270   : > { %v1140_v18 = vmax.f32 %v1138_v12, %v1139_v16  ;;  %v1143_v19 = vmax.f32 %v1141_v13, %v1142_v17  ;;  %v4017_v12 = vld [vmem:[#allocation8 + $0x38] sm:$0xff] }
 0x272   : > { %v1180_v24 = vsub.f32 %v1097_v23, %v1140_v18  ;;  %v1181_v25 = vsub.f32 %v1099_v62, %v1140_v18  ;;  %v1144_v26 = vrot.slane %v1143_v19, 2  ;;  %v4018_v18 = vld [vmem:[#allocation8 + $0x48] sm:$0xff] }
 0x273   : > { %v1107_v29 = vpop.xlane.xlu1 %1106 }
 0x274   : > { %v1200_v30 = vmul.f32 1.442695, %v1180_v24  ;;  %v1202_v31 = vmul.f32 1.442695, %v1181_v25  ;;  %v1145_v32 = vmax.f32 %v1143_v19, %v1144_v26  ;;  %v1148_v33 = vmax.f32 %v1105_v28, %v1107_v29  ;;  %v4020_v26 = vld [vmem:[#allocation8] sm:$0xff] }
 0x275   : > { %v3951_v43 = vpop.eup %3950 }
 0x276   : > { %v1146_v34 = vrot.slane %v1145_v32, 1  ;;  %v1149_v35 = vrot.slane %v1148_v33, 4  ;;  %3958 = vpow2.f32 %v1200_v30  ;;  %v4857_v49 = vpop.eup %3952  ;;  %v1281_v4 = vmul.f32 %v4014_v3, %v3951_v43 }
 0x277   : > { %3960 = vpow2.f32 %v1202_v31  ;;  %v1109_v48 = vpop.xlane.xlu0 %1108  ;;  %v1224_v46 = vadd.f32 %v4857_v49, %v3951_v43  ;;  %v1283_v8 = vmul.f32 %v4015_v7, %v4857_v49 }
 0x278   : > { %v1147_v36 = vmax.f32 %v1145_v32, %v1146_v34  ;;  %v1150_v37 = vmax.f32 %v1148_v33, %v1149_v35 }
 0x279   : > { %v1225_v23 = vrot.slane %v1224_v46, 4  ;;  %v1319_v25 = vadd.f32 %v1283_v8, %v1281_v4 }
 0x27a   : > { %v1182_v39 = vsub.f32 %v1101_v9, %v1147_v36  ;;  %v1183_v40 = vsub.f32 %v1103_v10, %v1147_v36  ;;  %v1151_v41 = vrot.slane %v1150_v37, 2  ;;  %v4016_v10 = vld [vmem:[#allocation8 + $0x28] sm:$0xff] }
 0x27b   : > { %v4855_v42 = vpop.xlane.xlu1 %1110  ;;  %v4861_v54 = vpop.eup %3954  ;;  %v1226_v14 = vadd.f32 %v1225_v23, %v1224_v46 }
 0x27c   : > { %v1204_v44 = vmul.f32 1.442695, %v1182_v39  ;;  %v1206_v45 = vmul.f32 1.442695, %v1183_v40  ;;  %v1152_v47 = vmax.f32 %v1150_v37, %v1151_v41  ;;  %v1155_v50 = vmax.f32 %v1109_v48, %v4855_v42  ;;  %v4863_v57 = vpop.eup %3956 }
 0x27d   : > { %v1231_v5 = vadd.f32 %v4863_v57, %v4861_v54  ;;  %v1285_v11 = vmul.f32 %v4016_v10, %v4861_v54  ;;  %v1287_v13 = vmul.f32 %v4017_v12, %v4863_v57  ;;  %v1227_v41 = vrot.slane %v1226_v14, 2 }
 0x27e   : > { %3962 = vpow2.f32 %v1204_v44  ;;  %v1153_v38 = vrot.slane %v1152_v47, 1  ;;  %v1156_v51 = vrot.slane %v1155_v50, 4 }
 0x27f   : > { %3964 = vpow2.f32 %v1206_v45  ;;  %v4865_v59 = vpop.xlane.xlu0 %1112  ;;  %v1232_v30 = vrot.slane %v1231_v5, 4  ;;  %v1333_v35 = vadd.f32 %v1287_v13, %v1285_v11  ;;  %v1228_v23 = vadd.f32 %v1227_v41, %v1226_v14 }
 0x280   : > { %v1154_v52 = vmax.f32 %v1152_v47, %v1153_v38  ;;  %v1157_v53 = vmax.f32 %v1155_v50, %v1156_v51  ;;  %v1320_v50 = vrot.slane %v1319_v25, 4  ;;  %v4021_v38 = vld [vmem:[#allocation8 + $0x10] sm:$0xff] }
 0x281   : > { %v1282_v51 = vmul.f32 %v4021_v38, %v4857_v49  ;;  %v1233_v46 = vadd.f32 %v1232_v30, %v1231_v5  ;;  %v4027_v38 = vld [vmem:[#allocation8 + $0x98] sm:$0xff] }
 0x282   : > { %v1184_v55 = vsub.f32 %v1105_v28, %v1154_v52  ;;  %v1185_v56 = vsub.f32 %v1107_v29, %v1154_v52  ;;  %v1158_v58 = vrot.slane %v1157_v53, 2  ;;  %v1280_v28 = vmul.f32 %v4020_v26, %v3951_v43 }
 0x283   : > { %v4867_v60 = vpop.xlane.xlu1 %1114  ;;  %v4869_v61 = vpop.eup %3958  ;;  %v1234_v8 = vrot.slane %v1233_v46, 2 }
 0x284   : > { %v1208_v62 = vmul.f32 1.442695, %v1184_v55  ;;  %v1210_v63 = vmul.f32 1.442695, %v1185_v56  ;;  %v1162_v0 = vmax.f32 %v4865_v59, %v4867_v60  ;;  %v4873_v1 = vpop.eup %3960  ;;  %v1159_v2 = vmax.f32 %v1157_v53, %v1158_v58 }
 0x285   : > { %v1238_v15 = vadd.f32 %v4873_v1, %v4869_v61  ;;  %v1289_v19 = vmul.f32 %v4018_v18, %v4869_v61  ;;  %v1291_v21 = vmul.f32 %v4019_v20, %v4873_v1  ;;  %v1334_v53 = vrot.slane %v1333_v35, 4 }
 0x286   : > { %3966 = vpow2.f32 %v1208_v62  ;;  %v1163_v6 = vrot.slane %v1162_v0, 4  ;;  %v1160_v9 = vrot.slane %v1159_v2, 1  ;;  %v4022_v62 = vld [vmem:[#allocation8 + $0x68] sm:$0xff]  ;;  %v4908_v20 = vadd.f32 %v1282_v51, %v1280_v28 }
 0x287   : > { %3968 = vpow2.f32 %v1210_v63  ;;  %v4887_v33 = vpop.xlane.xlu0 %1116  ;;  %v1239_v37 = vrot.slane %v1238_v15, 4  ;;  %v1347_v47 = vadd.f32 %v1291_v21, %v1289_v19  ;;  %v1335_v10 = vadd.f32 %v1334_v53, %v1333_v35 }
 0x288   : > { %v1164_v16 = vmax.f32 %v1162_v0, %v1163_v6  ;;  %v1161_v17 = vmax.f32 %v1159_v2, %v1160_v9  ;;  %v4023_v0 = vld [vmem:[#allocation8 + $0x78] sm:$0xff]  ;;  %v1321_v9 = vadd.f32 %v1320_v50, %v1319_v25  ;;  %v1235_v21 = vadd.f32 %v1234_v8, %v1233_v46 }
 0x289   : > { %v1240_v58 = vadd.f32 %v1239_v37, %v1238_v15  ;;  %v1348_v3 = vrot.slane %v1347_v47, 4 }
 0x28a   : > { %v1165_v24 = vrot.slane %v1164_v16, 2  ;;  %v1186_v31 = vsub.f32 %v1109_v48, %v1161_v17  ;;  %v1187_v32 = vsub.f32 %v4855_v42, %v1161_v17  ;;  %v1322_v25 = vrot.slane %v1321_v9, 2 }
 0x28b   : > { %v4884_v29 = vpop.eup %3962  ;;  %v4889_v34 = vpop.xlane.xlu1 %1118  ;;  %v1241_v15 = vrot.slane %v1240_v58, 2 }
 0x28c   : > { %v4891_v36 = vpop.eup %3964  ;;  %v1166_v39 = vmax.f32 %v1164_v16, %v1165_v24  ;;  %v1169_v40 = vmax.f32 %v4887_v33, %v4889_v34  ;;  %v1212_v44 = vmul.f32 1.442695, %v1186_v31  ;;  %v1214_v45 = vmul.f32 1.442695, %v1187_v32  ;;  %v4024_v32 = vld [vmem:[#allocation8 + $0x20] sm:$0xff] }
 0x28d   : > { %v1245_v43 = vadd.f32 %v4891_v36, %v4884_v29  ;;  %v1293_v63 = vmul.f32 %v4022_v62, %v4884_v29  ;;  %v1295_v2 = vmul.f32 %v4023_v0, %v4891_v36  ;;  %v1229_v16 = vrot.slane %v1228_v23, 1 }
 0x28e   : > { %v1167_v42 = vrot.slane %v1166_v39, 1  ;;  %v1170_v48 = vrot.slane %v1169_v40, 4  ;;  %3970 = vpow2.f32 %v1212_v44  ;;  %v1242_v30 = vadd.f32 %v1241_v15, %v1240_v58 }
 0x28f   : > { %v1246_v52 = vrot.slane %v1245_v43, 4  ;;  %3972 = vpow2.f32 %v1214_v45  ;;  %v1361_v18 = vadd.f32 %v1295_v2, %v1293_v63  ;;  %v1336_v31 = vrot.slane %v1335_v10, 2  ;;  %v4025_v45 = vld [vmem:[#allocation8 + $0x30] sm:$0xff] }
 0x290   : > { %v1168_v55 = vmax.f32 %v1166_v39, %v1167_v42  ;;  %v1171_v56 = vmax.f32 %v1169_v40, %v1170_v48  ;;  %v1284_v35 = vmul.f32 %v4024_v32, %v4861_v54  ;;  %v1230_v37 = vadd.f32 %v1229_v16, %v1228_v23  ;;  %v4026_v48 = vld [vmem:[#allocation8 + $0x88] sm:$0xff] }
 0x291   : > { %v1247_v6 = vadd.f32 %v1246_v52, %v1245_v43  ;;  %v1362_v41 = vrot.slane %v1361_v18, 4  ;;  %v1236_v42 = vrot.slane %v1235_v21, 1  ;;  %v1323_v54 = vadd.f32 %v1322_v25, %v1321_v9 }
 0x292   : > { %v1188_v4 = vsub.f32 %v4865_v59, %v1168_v55  ;;  %v1189_v49 = vsub.f32 %v4867_v60, %v1168_v55  ;;  %v1172_v5 = vrot.slane %v1171_v56, 2  ;;  %v1349_v59 = vadd.f32 %v1348_v3, %v1347_v47 }
 0x293   : > { %v4902_v7 = vpop.eup %3966  ;;  %v1248_v19 = vrot.slane %v1247_v6, 2  ;;  %v1286_v47 = vmul.f32 %v4025_v45, %v4863_v57  ;;  %v1243_v55 = vrot.slane %v1242_v30, 1  ;;  %v1363_v23 = vadd.f32 %v1362_v41, %v1361_v18  ;;  %v4031_v18 = vld [vmem:[#allocation8 + $0xb8] sm:$0xff] }
 0x294   : > { %v4904_v11 = vpop.eup %3968  ;;  %v1216_v12 = vmul.f32 1.442695, %v1188_v4  ;;  %v1218_v13 = vmul.f32 1.442695, %v1189_v49  ;;  %v1173_v14 = vmax.f32 %v1171_v56, %v1172_v5  ;;  %v1350_v40 = vrot.slane %v1349_v59, 2 }
 0x295   : > { %v1252_v17 = vadd.f32 %v4904_v11, %v4902_v7  ;;  %v1249_v28 = vadd.f32 %v1248_v19, %v1247_v6  ;;  %v1297_v50 = vmul.f32 %v4026_v48, %v4902_v7  ;;  %v1299_v51 = vmul.f32 %v4027_v38, %v4904_v11  ;;  %v4028_v6 = vld [vmem:[#allocation8 + $0x40] sm:$0xff] }
 0x296   : > { %3974 = vpow2.f32 %v1216_v12  ;;  %v1174_v60 = vrot.slane %v1173_v14, 1  ;;  %v1351_v58 = vadd.f32 %v1350_v40, %v1349_v59  ;;  %v1313_v63 = vrot.slane %v4908_v20, 4 }
 0x297   : > { %3976 = vpow2.f32 %v1218_v13  ;;  %v1253_v24 = vrot.slane %v1252_v17, 4  ;;  %v1250_v57 = vrot.slane %v1249_v28, 1  ;;  %v1237_v0 = vadd.f32 %v1236_v42, %v1235_v21  ;;  %v4029_v13 = vld [vmem:[#allocation8 + $0x50] sm:$0xff] }
 0x298   : > { %v1175_v26 = vmax.f32 %v1173_v14, %v1174_v60  ;;  %3978 = vrcp.f32 %v1230_v37  ;;  %v1324_v2 = vrot.slane %v1323_v54, 1  ;;  %v1375_v3 = vadd.f32 %v1299_v51, %v1297_v50  ;;  %v4035_v50 = vld [vmem:[#allocation8 + $0xc8] sm:$0xff]  ;;  %v4036_v51 = vld [vmem:[#allocation8 + $0xd8] sm:$0xff] }
 0x299   : > { %v1254_v39 = vadd.f32 %v1253_v24, %v1252_v17  ;;  %v1244_v4 = vadd.f32 %v1243_v55, %v1242_v30  ;;  %v1288_v8 = vmul.f32 %v4028_v6, %v4869_v61  ;;  %v1364_v12 = vrot.slane %v1363_v23, 2  ;;  %v4030_v17 = vld [vmem:[#allocation8 + $0xa8] sm:$0xff] }
 0x29a   : > { %v1190_v43 = vsub.f32 %v4887_v33, %v1175_v26  ;;  %v1191_v44 = vsub.f32 %v4889_v34, %v1175_v26  ;;  %v1337_v33 = vadd.f32 %v1336_v31, %v1335_v10  ;;  %v1352_v10 = vrot.slane %v1351_v58, 1 }
 0x29b   : > { %v4916_v46 = vpop.eup %3970  ;;  %v1255_v34 = vrot.slane %v1254_v39, 2  ;;  %v1290_v14 = vmul.f32 %v4029_v13, %v4873_v1  ;;  %v1251_v15 = vadd.f32 %v1250_v57, %v1249_v28  ;;  %v4927_v21 = vadd.f32 %v1324_v2, %v1323_v54  ;;  %v4032_v1 = vld [vmem:[#allocation8 + $0x60] sm:$0xff] }
 0x29c   : > { %v1220_v52 = vmul.f32 1.442695, %v1190_v43  ;;  %v1222_v53 = vmul.f32 1.442695, %v1191_v44  ;;  %v4918_v56 = vpop.eup %3972  ;;  %v1338_v5 = vrot.slane %v1337_v33, 1  ;;  %v1301_v59 = vmul.f32 %v4030_v17, %v4916_v46  ;;  %v4033_v43 = vld [vmem:[#allocation8 + $0x70] sm:$0xff] }
 0x29d   : > { %v1259_v62 = vadd.f32 %v4918_v56, %v4916_v46  ;;  %v1256_v9 = vadd.f32 %v1255_v34, %v1254_v39  ;;  %v1303_v60 = vmul.f32 %v4031_v18, %v4918_v56  ;;  %v1376_v24 = vrot.slane %v1375_v3, 4 }
 0x29e   : > { %3980 = vpow2.f32 %v1220_v52  ;;  %v1326_v61 = vadd.f32 %v1286_v47, %v1284_v35  ;;  %v4931_v30 = vadd.f32 %v1338_v5, %v1337_v33  ;;  %v1292_v31 = vmul.f32 %v4032_v1, %v4884_v29  ;;  %v4034_v47 = vld [vmem:[#allocation8 + $0x80] sm:$0xff]  ;;  %v4037_v33 = vld [vmem:[#allocation8 + $0x90] sm:$0xff] }
 0x29f   : > { %3982 = vpow2.f32 %v1222_v53  ;;  %v1260_v49 = vrot.slane %v1259_v62, 4  ;;  %v1257_v32 = vrot.slane %v1256_v9, 1  ;;  %v4935_v39 = vadd.f32 %v1352_v10, %v1351_v58 }
 0x2a0   : > { %3984 = vrcp.f32 %v1237_v0  ;;  %v4937_v40 = vadd.f32 %v1364_v12, %v1363_v23  ;;  %v1389_v41 = vadd.f32 %v1303_v60, %v1301_v59  ;;  %v1294_v35 = vmul.f32 %v4033_v43, %v4891_v36  ;;  %v4038_v23 = vld [vmem:[#allocation8 + $0xa0] sm:$0xff] }
 0x2a1   : > { %v1261_v16 = vadd.f32 %v1260_v49, %v1259_v62  ;;  %3986 = vrcp.f32 %v1244_v4  ;;  %v1340_v44 = vadd.f32 %v1290_v14, %v1288_v8  ;;  %v4940_v45 = vadd.f32 %v1376_v24, %v1375_v3  ;;  %v4040_v8 = vld [vmem:[#allocation8 + $0xe8] sm:$0xff] }
 0x2a2   : > { %3988 = vrcp.f32 %v1251_v15  ;;  %v1296_v42 = vmul.f32 %v4034_v47, %v4902_v7  ;;  %v1327_v29 = vrot.slane %v1326_v61, 4  ;;  %v4945_v52 = vadd.f32 %v1313_v63, %v4908_v20  ;;  %v4039_v63 = vld [vmem:[#allocation8 + $0xb0] sm:$0xff] }
 0x2a3   : > { %v3975_v19 = vpop.eup %3974  ;;  %v1262_v26 = vrot.slane %v1261_v16, 2  ;;  %v1258_v53 = vadd.f32 %v1257_v32, %v1256_v9  ;;  %v1366_v36 = vrot.slane %v4937_v40, 1  ;;  %v1298_v34 = vmul.f32 %v4037_v33, %v4904_v11  ;;  %v4043_v32 = vld [vmem:[#allocation8 + $0xd0] sm:$0xff] }
 0x2a4   : > { %v4929_v25 = vpop.eup %3976  ;;  %v1305_v38 = vmul.f32 %v4035_v50, %v3975_v19  ;;  %v1390_v7 = vrot.slane %v1389_v41, 4  ;;  %v1300_v57 = vmul.f32 %v4038_v23, %v4916_v46  ;;  %v1341_v62 = vrot.slane %v1340_v44, 4  ;;  %v4041_v46 = vld [vmem:[#allocation8 + $0xf8] sm:$0xff] }
 0x2a5   : > { %v1266_v37 = vadd.f32 %v4929_v25, %v3975_v19  ;;  %v1263_v48 = vadd.f32 %v1262_v26, %v1261_v16  ;;  %v1307_v54 = vmul.f32 %v4036_v51, %v4929_v25  ;;  %v4949_v58 = vpop.eup %3978  ;;  %v1354_v0 = vadd.f32 %v1294_v35, %v1292_v31  ;;  %v4042_v16 = vld [vmem:[#allocation8 + $0xc0] sm:$0xff] }
 0x2a6   : > { %v1378_v20 = vrot.slane %v4940_v45, 2  ;;  %v1302_v4 = vmul.f32 %v4039_v63, %v4918_v56  ;;  %v1328_v49 = vadd.f32 %v1327_v29, %v1326_v61  ;;  %v1315_v10 = vrot.slane %v4945_v52, 2 }
 0x2a7   : > { %v1267_v28 = vrot.slane %v1266_v37, 4  ;;  %v1264_v6 = vrot.slane %v1263_v48, 1  ;;  %v1403_v9 = vadd.f32 %v1307_v54, %v1305_v38  ;;  %3990 = vrcp.f32 %v1258_v53 }
 0x2a8   : > { %v1391_v15 = vadd.f32 %v1390_v7, %v1389_v41  ;;  %v1304_v17 = vmul.f32 %v4042_v16, %v3975_v19  ;;  %v1342_v59 = vadd.f32 %v1341_v62, %v1340_v44  ;;  %v1355_v18 = vrot.slane %v1354_v0, 4  ;;  %v4044_v41 = vld [vmem:[#allocation8 + $0xe0] sm:$0xff]  ;;  %v4045_v19 = vld [vmem:[#allocation8 + $0xf0] sm:$0xff] }
 0x2a9   : > { %v1268_v55 = vadd.f32 %v1267_v28, %v1266_v37  ;;  %v1329_v61 = vrot.slane %v1328_v49, 2  ;;  %v1265_v1 = vadd.f32 %v1264_v6, %v1263_v48  ;;  %v1404_v31 = vrot.slane %v1403_v9, 4 }
 0x2aa   : > { %v1306_v37 = vmul.f32 %v4043_v32, %v4929_v25  ;;  %v1368_v43 = vadd.f32 %v1298_v34, %v1296_v42  ;;  %v1356_v29 = vadd.f32 %v1355_v18, %v1354_v0  ;;  %v1382_v54 = vadd.f32 %v1302_v4, %v1300_v57 }
 0x2ab   : > { %v3981_v2 = vpop.eup %3980  ;;  %v1269_v3 = vrot.slane %v1268_v55, 2  ;;  %v1330_v33 = vadd.f32 %v1329_v61, %v1328_v49  ;;  %v1343_v7 = vrot.slane %v1342_v59, 2  ;;  %v1405_v25 = vadd.f32 %v1404_v31, %v1403_v9 }
 0x2ac   : > { %v3983_v5 = vpop.eup %3982  ;;  %v1309_v11 = vmul.f32 %v4040_v8, %v3981_v2  ;;  %v1308_v47 = vmul.f32 %v4044_v41, %v3981_v2  ;;  %v1369_v51 = vrot.slane %v1368_v43, 4  ;;  %3992 = vrcp.f32 %v1265_v1 }
 0x2ad   : > { %v1270_v12 = vadd.f32 %v1269_v3, %v1268_v55  ;;  %v1273_v13 = vadd.f32 %v3983_v5, %v3981_v2  ;;  %v1311_v14 = vmul.f32 %v4041_v46, %v3983_v5  ;;  %v4955_v26 = vpop.eup %3984  ;;  %v1310_v44 = vmul.f32 %v4045_v19, %v3983_v5 }
 0x2ae   : > { %v4958_v35 = vpop.eup %3986  ;;  %v1392_v55 = vrot.slane %v1391_v15, 2  ;;  %v1370_v42 = vadd.f32 %v1369_v51, %v1368_v43  ;;  %v1383_v34 = vrot.slane %v1382_v54, 4  ;;  %v1357_v62 = vrot.slane %v1356_v29, 2 }
 0x2af   : > { %v1271_v60 = vrot.slane %v1270_v12, 1  ;;  %v1274_v56 = vrot.slane %v1273_v13, 4  ;;  %v1417_v24 = vadd.f32 %v1311_v14, %v1309_v11  ;;  %v4960_v53 = vpop.eup %3988  ;;  %v1396_v2 = vadd.f32 %v1306_v37, %v1304_v17 }
 0x2b0   : > { %v1410_v3 = vadd.f32 %v1310_v44, %v1308_v47  ;;  %v1371_v0 = vrot.slane %v1370_v42, 2  ;;  %v1384_v5 = vadd.f32 %v1383_v34, %v1382_v54  ;;  %v1379_v57 = vadd.f32 %v1378_v20, %v4940_v45 }
 0x2b1   : > { %v1275_v28 = vadd.f32 %v1274_v56, %v1273_v13  ;;  %v1272_v50 = vadd.f32 %v1271_v60, %v1270_v12  ;;  %v1418_v38 = vrot.slane %v1417_v24, 4  ;;  %v1397_v4 = vrot.slane %v1396_v2, 4 }
 0x2b2   : > { %v1411_v8 = vrot.slane %v1410_v3, 4  ;;  %v1406_v11 = vrot.slane %v1405_v25, 2  ;;  %v1316_v49 = vadd.f32 %v1315_v10, %v4945_v52  ;;  %v1344_v9 = vadd.f32 %v1343_v7, %v1342_v59 }
 0x2b3   : > { %v1276_v48 = vrot.slane %v1275_v28, 2  ;;  %v1419_v63 = vadd.f32 %v1418_v38, %v1417_v24  ;;  %3994 = vrcp.f32 %v1272_v50  ;;  %v1385_v12 = vrot.slane %v1384_v5, 2 }
 0x2b4   : > { %v1358_v46 = vadd.f32 %v1357_v62, %v1356_v29  ;;  %v1398_v14 = vadd.f32 %v1397_v4, %v1396_v2  ;;  %v1412_v16 = vadd.f32 %v1411_v8, %v1410_v3  ;;  %v3991_v17 = vpop.eup %3990  ;;  %v1393_v18 = vadd.f32 %v1392_v55, %v1391_v15 }
 0x2b5   : > { %v1277_v23 = vadd.f32 %v1276_v48, %v1275_v28  ;;  %v1420_v60 = vrot.slane %v1419_v63, 2  ;;  %v1331_v56 = vrot.slane %v1330_v33, 1  ;;  %v1372_v24 = vadd.f32 %v1371_v0, %v1370_v42 }
 0x2b6   : > { %v1386_v45 = vadd.f32 %v1385_v12, %v1384_v5  ;;  %v1399_v20 = vrot.slane %v1398_v14, 2  ;;  %v1413_v61 = vrot.slane %v1412_v16, 2  ;;  %v1407_v1 = vadd.f32 %v1406_v11, %v1405_v25 }
 0x2b7   : > { %v1278_v6 = vrot.slane %v1277_v23, 1  ;;  %v1433_v52 = vmul.f32 %v4949_v58, %v4927_v21  ;;  %v1317_v10 = vrot.slane %v1316_v49, 1  ;;  %v1345_v59 = vrot.slane %v1344_v9, 1 }
 0x2b8   : > { %v1380_v31 = vrot.slane %v1379_v57, 1  ;;  %v1435_v15 = vmul.f32 %v4955_v26, %v4931_v30  ;;  %v1359_v32 = vrot.slane %v1358_v46, 1  ;;  %v1400_v37 = vadd.f32 %v1399_v20, %v1398_v14 }
 0x2b9   : > { %v1279_v13 = vadd.f32 %v1278_v6, %v1277_v23  ;;  %v1367_v43 = vadd.f32 %v1366_v36, %v4937_v40  ;;  %v1394_v28 = vrot.slane %v1393_v18, 1  ;;  %v1437_v41 = vmul.f32 %v4958_v35, %v4935_v39  ;;  %v3993_v54 = vpop.eup %3992 }
 0x2ba   : > { %v1373_v21 = vrot.slane %v1372_v24, 1  ;;  %v1421_v47 = vadd.f32 %v1420_v60, %v1419_v63  ;;  %v1332_v19 = vadd.f32 %v1331_v56, %v1330_v33  ;;  %v1387_v44 = vrot.slane %v1386_v45, 1 }
 0x2bb   : > { %3996 = vrcp.f32 %v1279_v13  ;;  %v1414_v29 = vadd.f32 %v1413_v61, %v1412_v16  ;;  %v1408_v50 = vrot.slane %v1407_v1, 1  ;;  %v1318_v30 = vadd.f32 %v1317_v10, %v1316_v49  ;;  %v1508_v61 = vld [vmem:[#allocation12 + $0x1e0] sm:$0xff]  ;;  %v1507_v10 = vld [vmem:[#allocation12 + $0x1d8] sm:$0xff] }
 0x2bc   : > { %v1346_v38 = vadd.f32 %v1345_v59, %v1344_v9  ;;  %v1401_v51 = vrot.slane %v1400_v37, 1  ;;  %v1381_v48 = vadd.f32 %v1380_v31, %v1379_v57  ;;  %v1439_v55 = vmul.f32 %v4960_v53, %v1367_v43  ;;  %v1504_v59 = vld [vmem:[#allocation12 + $0x1c0] sm:$0xff]  ;;  %v1506_v31 = vld [vmem:[#allocation12 + $0x1d0] sm:$0xff] }
 0x2bd   : > { %v1360_v40 = vadd.f32 %v1359_v32, %v1358_v46  ;;  %v1434_v36 = vmul.f32 %v4955_v26, %v1332_v19  ;;  %v1395_v7 = vadd.f32 %v1394_v28, %v1393_v18  ;;  %v1374_v39 = vadd.f32 %v1373_v21, %v1372_v24  ;;  %v1503_v32 = vld [vmem:[#allocation12 + $0x1b8] sm:$0xff]  ;;  %v1502_v43 = vld [vmem:[#allocation12 + $0x1b0] sm:$0xff]  ;;  %v1497_v28 = vld [vmem:[#allocation12 + $0x188] sm:$0xff] }
 0x2be   : > { %v1432_v25 = vmul.f32 %v4949_v58, %v1318_v30  ;;  %v1436_v42 = vmul.f32 %v4958_v35, %v1346_v38  ;;  %v1422_v34 = vrot.slane %v1421_v47, 1  ;;  %v1388_v23 = vadd.f32 %v1387_v44, %v1386_v45  ;;  %v1496_v21 = vld [vmem:[#allocation12 + $0x180] sm:$0xff]  ;;  %v1493_v19 = vld [vmem:[#allocation12 + $0x168] sm:$0xff]  ;;  %v1495_v44 = vld [vmem:[#allocation12 + $0x178] sm:$0xff] }
 0x2bf   : > { %v1415_v62 = vrot.slane %v1414_v29, 1  ;;  %v1438_v2 = vmul.f32 %v4960_v53, %v1360_v40  ;;  %v1409_v3 = vadd.f32 %v1408_v50, %v1407_v1  ;;  %v1441_v63 = vmul.f32 %v3991_v17, %v1381_v48  ;;  %v1510_v1 = vld [vmem:[#allocation12 + $0x1f0] sm:$0xff]  ;;  %v1489_v30 = vld [vmem:[#allocation12 + $0x148] sm:$0xff]  ;;  %v1491_v38 = vld [vmem:[#allocation12 + $0x158] sm:$0xff] }
 0x2c0   : > { %v3995_v33 = vpop.eup %3994  ;;  %v1402_v0 = vadd.f32 %v1401_v51, %v1400_v37  ;;  %v1440_v5 = vmul.f32 %v3991_v17, %v1374_v39  ;;  %v1443_v6 = vmul.f32 %v3993_v54, %v1395_v7  ;;  %v1734_v57 = vsel %vm1720_vm1, %v1435_v15, %v1433_v52  ;;  %v1505_v52 = vld [vmem:[#allocation12 + $0x1c8] sm:$0xff]  ;;  %v1500_v37 = vld [vmem:[#allocation12 + $0x1a0] sm:$0xff]  ;;  %v1494_v50 = vld [vmem:[#allocation12 + $0x170] sm:$0xff] }
 0x2c1   : > { %v1442_v26 = vmul.f32 %v3993_v54, %v1388_v23  ;;  %v1721_v4 = vsel %vm1720_vm1, %v1434_v36, %v1432_v25  ;;  %v1445_v8 = vmul.f32 %v3995_v33, %v1409_v3  ;;  %v1735_v58 = vsel %vm1722_vm2, %v1437_v41, %v1734_v57  ;;  %v1501_v15 = vld [vmem:[#allocation12 + $0x1a8] sm:$0xff]  ;;  %v1499_v41 = vld [vmem:[#allocation12 + $0x198] sm:$0xff]  ;;  %v1488_v51 = vld [vmem:[#allocation12 + $0x140] sm:$0xff] }
 0x2c2   : > { %v1444_v35 = vmul.f32 %v3995_v33, %v1402_v0  ;;  %v1723_v11 = vsel %vm1722_vm2, %v1436_v42, %v1721_v4  ;;  %v1423_v49 = vadd.f32 %v1422_v34, %v1421_v47  ;;  %v1736_v9 = vsel %vm1724_vm3, %v1439_v55, %v1735_v58  ;;  %v1498_v47 = vld [vmem:[#allocation12 + $0x190] sm:$0xff]  ;;  %v1485_v48 = vld [vmem:[#allocation12 + $0x128] sm:$0xff]  ;;  %v1487_v55 = vld [vmem:[#allocation12 + $0x138] sm:$0xff] }
 0x2c3   : > { %v1416_v53 = vadd.f32 %v1415_v62, %v1414_v29  ;;  %v1725_v12 = vsel %vm1724_vm3, %v1438_v2, %v1723_v11  ;;  %v1737_v46 = vsel %vm1726_vm4, %v1441_v63, %v1736_v9  ;;  %v1492_v29 = vld [vmem:[#allocation12 + $0x160] sm:$0xff]  ;;  %v1490_v54 = vld [vmem:[#allocation12 + $0x150] sm:$0xff]  ;;  %v1481_v7 = vld [vmem:[#allocation12 + $0x108] sm:$0xff] }
 0x2c4   : > { %v1727_v14 = vsel %vm1726_vm4, %v1440_v5, %v1725_v12  ;;  %v1738_v17 = vsel %vm1728_vm5, %v1443_v6, %v1737_v46  ;;  %v1484_v40 = vld [vmem:[#allocation12 + $0x120] sm:$0xff]  ;;  %v1486_v36 = vld [vmem:[#allocation12 + $0x130] sm:$0xff]  ;;  %v1483_v39 = vld [vmem:[#allocation12 + $0x118] sm:$0xff] }
 0x2c5   : > { %v1729_v60 = vsel %vm1728_vm5, %v1442_v26, %v1727_v14  ;;  %v1739_v56 = vsel %vm1730_vm6, %v1445_v8, %v1738_v17  ;;  %v1480_v25 = vld [vmem:[#allocation12 + $0x100] sm:$0xff]  ;;  %v1482_v42 = vld [vmem:[#allocation12 + $0x110] sm:$0xff]  ;;  %v1477_v33 = vld [vmem:[#allocation12 + $0xe8] sm:$0xff] }
 0x2c6   : > { %v1731_v24 = vsel %vm1730_vm6, %v1444_v35, %v1729_v60  ;;  %v1479_v34 = vld [vmem:[#allocation12 + $0xf8] sm:$0xff]  ;;  %v1476_v23 = vld [vmem:[#allocation12 + $0xe0] sm:$0xff]  ;;  %v1478_v62 = vld [vmem:[#allocation12 + $0xf0] sm:$0xff] }
 0x2c7   : > { %v1473_v2 = vld [vmem:[#allocation12 + $0xc8] sm:$0xff]  ;;  %v1475_v3 = vld [vmem:[#allocation12 + $0xd8] sm:$0xff]  ;;  %v1472_v63 = vld [vmem:[#allocation12 + $0xc0] sm:$0xff] }
 0x2c8   : > { %v3997_v13 = vpop.eup %3996  ;;  %v1474_v0 = vld [vmem:[#allocation12 + $0xd0] sm:$0xff]  ;;  %v1469_v5 = vld [vmem:[#allocation12 + $0xa8] sm:$0xff]  ;;  %v1471_v6 = vld [vmem:[#allocation12 + $0xb8] sm:$0xff] }
 0x2c9   : > { %v1447_v16 = vmul.f32 %v3997_v13, %v1423_v49  ;;  %v1446_v18 = vmul.f32 %v3997_v13, %v1416_v53  ;;  %v1468_v57 = vld [vmem:[#allocation12 + $0xa0] sm:$0xff]  ;;  %v1470_v26 = vld [vmem:[#allocation12 + $0xb0] sm:$0xff]  ;;  %v1465_v4 = vld [vmem:[#allocation12 + $0x88] sm:$0xff] }
 0x2ca   : > { %v1467_v8 = vld [vmem:[#allocation12 + $0x98] sm:$0xff]  ;;  %v1464_v58 = vld [vmem:[#allocation12 + $0x80] sm:$0xff]  ;;  %v1466_v35 = vld [vmem:[#allocation12 + $0x90] sm:$0xff] }
 0x2cb   : > { %v1740_v45 = vsel %vm1732_vm7, %v1447_v16, %v1739_v56  ;;  %v1733_v20 = vsel %vm1732_vm7, %v1446_v18, %v1731_v24  ;;  %v1461_v11 = vld [vmem:[#allocation12 + $0x68] sm:$0xff]  ;;  %v1463_v49 = vld [vmem:[#allocation12 + $0x78] sm:$0xff]  ;;  %v1460_v9 = vld [vmem:[#allocation12 + $0x60] sm:$0xff] }
 0x2cc   : > { %1807 = vmatprep.mubr.f32.mxu0 %v1740_v45  ;;  %1878 = vmatprep.mubr.f32.mxu1 %v1740_v45  ;;  %v1462_v53 = vld [vmem:[#allocation12 + $0x70] sm:$0xff]  ;;  %v1457_v12 = vld [vmem:[#allocation12 + $0x48] sm:$0xff]  ;;  %v1459_v13 = vld [vmem:[#allocation12 + $0x58] sm:$0xff] }
 0x2cd   : > { %1808 = vmatmul.mubr.f32.vlgmr.msra.gmra.mxu0 %v1733_v20  ;;  %1879 = vmatmul.mubr.f32.vlgmr.msra.gmra.mxu1 %v1733_v20  ;;  %v1456_v46 = vld [vmem:[#allocation12 + $0x40] sm:$0xff]  ;;  %v1458_v14 = vld [vmem:[#allocation12 + $0x50] sm:$0xff]  ;;  %v1453_v16 = vld [vmem:[#allocation12 + $0x28] sm:$0xff] }
 0x2ce   : > { %1886 = vmatpush1.msra.mxu0 %v1508_v61  ;;  %1957 = vmatpush1.msra.mxu1 %v1510_v1  ;;  %v1455_v17 = vld [vmem:[#allocation12 + $0x38] sm:$0xff]  ;;  %v1452_v18 = vld [vmem:[#allocation12 + $0x20] sm:$0xff]  ;;  %v1454_v60 = vld [vmem:[#allocation12 + $0x30] sm:$0xff] }
 0x2cf   : > { %1887 = vmatprep.subr.mxu0 %v1505_v52  ;;  %1958 = vmatprep.subr.mxu1 %v1507_v10  ;;  %v1449_v56 = vld [vmem:[#allocation12 + $0x8] sm:$0xff]  ;;  %v1451_v24 = vld [vmem:[#allocation12 + $0x18] sm:$0xff]  ;;  %v1448_v45 = vld [vmem:[#allocation12] sm:$0xff] }
 0x2d0   : > { %1888 = vmatpush1.msra.mxu0 %v1504_v59  ;;  %1959 = vmatpush1.msra.mxu1 %v1506_v31  ;;  %v1450_v20 = vld [vmem:[#allocation12 + $0x10] sm:$0xff]  ;;  %v1573_v61 = vld [vmem:[#allocation12 + $0x3e8] sm:$0xff]  ;;  %v1575_v1 = vld [vmem:[#allocation12 + $0x3f8] sm:$0xff] }
 0x2d1   : > { %1889 = vmatprep.subr.mxu0 %v1501_v15  ;;  %1960 = vmatprep.subr.mxu1 %v1503_v32  ;;  %v1572_v52 = vld [vmem:[#allocation12 + $0x3e0] sm:$0xff]  ;;  %v1574_v10 = vld [vmem:[#allocation12 + $0x3f0] sm:$0xff]  ;;  %v1569_v59 = vld [vmem:[#allocation12 + $0x3c8] sm:$0xff] }
 0x2d2   : > { %1890 = vmatpush1.msra.mxu0 %v1500_v37  ;;  %1961 = vmatpush1.msra.mxu1 %v1502_v43  ;;  %v1571_v31 = vld [vmem:[#allocation12 + $0x3d8] sm:$0xff]  ;;  %v1568_v15 = vld [vmem:[#allocation12 + $0x3c0] sm:$0xff]  ;;  %v1570_v32 = vld [vmem:[#allocation12 + $0x3d0] sm:$0xff] }
 0x2d3   : > { %1891 = vmatprep.subr.mxu0 %v1497_v28  ;;  %1962 = vmatprep.subr.mxu1 %v1499_v41  ;;  %v1565_v37 = vld [vmem:[#allocation12 + $0x3a8] sm:$0xff]  ;;  %v1567_v43 = vld [vmem:[#allocation12 + $0x3b8] sm:$0xff]  ;;  %v1564_v28 = vld [vmem:[#allocation12 + $0x3a0] sm:$0xff] }
 0x2d4   : > { %1892 = vmatpush1.msra.mxu0 %v1496_v21  ;;  %1963 = vmatpush1.msra.mxu1 %v1498_v47  ;;  %v1566_v41 = vld [vmem:[#allocation12 + $0x3b0] sm:$0xff]  ;;  %v1561_v21 = vld [vmem:[#allocation12 + $0x388] sm:$0xff]  ;;  %v1563_v47 = vld [vmem:[#allocation12 + $0x398] sm:$0xff] }
 0x2d5   : > { %1893 = vmatprep.subr.mxu0 %v1493_v19  ;;  %1964 = vmatprep.subr.mxu1 %v1495_v44  ;;  %v1560_v19 = vld [vmem:[#allocation12 + $0x380] sm:$0xff]  ;;  %v1562_v44 = vld [vmem:[#allocation12 + $0x390] sm:$0xff] }
 0x2d6   : > { %1894 = vmatpush1.msra.mxu0 %v1492_v29  ;;  %1965 = vmatpush1.msra.mxu1 %v1494_v50  ;;  %v1557_v29 = vld [vmem:[#allocation12 + $0x368] sm:$0xff]  ;;  %v1559_v50 = vld [vmem:[#allocation12 + $0x378] sm:$0xff] }
 0x2d7   : > { %1895 = vmatprep.subr.mxu0 %v1489_v30  ;;  %1966 = vmatprep.subr.mxu1 %v1491_v38  ;;  %v1556_v30 = vld [vmem:[#allocation12 + $0x360] sm:$0xff]  ;;  %v1558_v38 = vld [vmem:[#allocation12 + $0x370] sm:$0xff] }
 0x2d8   : > { %1896 = vmatpush1.msra.mxu0 %v1488_v51  ;;  %1967 = vmatpush1.msra.mxu1 %v1490_v54  ;;  %v1553_v51 = vld [vmem:[#allocation12 + $0x348] sm:$0xff]  ;;  %v1555_v54 = vld [vmem:[#allocation12 + $0x358] sm:$0xff] }
 0x2d9   : > { %1897 = vmatprep.subr.mxu0 %v1485_v48  ;;  %1968 = vmatprep.subr.mxu1 %v1487_v55  ;;  %v1552_v48 = vld [vmem:[#allocation12 + $0x340] sm:$0xff]  ;;  %v1554_v55 = vld [vmem:[#allocation12 + $0x350] sm:$0xff] }
 0x2da   : > { %1898 = vmatpush1.msra.mxu0 %v1484_v40  ;;  %1969 = vmatpush1.msra.mxu1 %v1486_v36  ;;  %v1549_v40 = vld [vmem:[#allocation12 + $0x328] sm:$0xff]  ;;  %v1551_v36 = vld [vmem:[#allocation12 + $0x338] sm:$0xff] }
 0x2db   : > { %1899 = vmatprep.subr.mxu0 %v1481_v7  ;;  %1970 = vmatprep.subr.mxu1 %v1483_v39  ;;  %v1548_v7 = vld [vmem:[#allocation12 + $0x320] sm:$0xff]  ;;  %v1550_v39 = vld [vmem:[#allocation12 + $0x330] sm:$0xff] }
 0x2dc   : > { %1900 = vmatpush1.msra.mxu0 %v1480_v25  ;;  %1971 = vmatpush1.msra.mxu1 %v1482_v42  ;;  %v1545_v25 = vld [vmem:[#allocation12 + $0x308] sm:$0xff]  ;;  %v1547_v42 = vld [vmem:[#allocation12 + $0x318] sm:$0xff] }
 0x2dd   : > { %1901 = vmatprep.subr.mxu0 %v1477_v33  ;;  %1972 = vmatprep.subr.mxu1 %v1479_v34  ;;  %v1544_v33 = vld [vmem:[#allocation12 + $0x300] sm:$0xff]  ;;  %v1546_v34 = vld [vmem:[#allocation12 + $0x310] sm:$0xff] }
 0x2de   : > { %1902 = vmatpush1.msra.mxu0 %v1476_v23  ;;  %1973 = vmatpush1.msra.mxu1 %v1478_v62  ;;  %v1541_v23 = vld [vmem:[#allocation12 + $0x2e8] sm:$0xff]  ;;  %v1543_v62 = vld [vmem:[#allocation12 + $0x2f8] sm:$0xff] }
 0x2df   : > { %1903 = vmatprep.subr.mxu0 %v1473_v2  ;;  %1974 = vmatprep.subr.mxu1 %v1475_v3  ;;  %v1540_v2 = vld [vmem:[#allocation12 + $0x2e0] sm:$0xff]  ;;  %v1542_v3 = vld [vmem:[#allocation12 + $0x2f0] sm:$0xff] }
 0x2e0   : > { %1904 = vmatpush1.msra.mxu0 %v1472_v63  ;;  %1975 = vmatpush1.msra.mxu1 %v1474_v0  ;;  %v1537_v63 = vld [vmem:[#allocation12 + $0x2c8] sm:$0xff]  ;;  %v1539_v0 = vld [vmem:[#allocation12 + $0x2d8] sm:$0xff] }
 0x2e1   : > { %1905 = vmatprep.subr.mxu0 %v1469_v5  ;;  %1976 = vmatprep.subr.mxu1 %v1471_v6  ;;  %v1536_v5 = vld [vmem:[#allocation12 + $0x2c0] sm:$0xff]  ;;  %v1538_v6 = vld [vmem:[#allocation12 + $0x2d0] sm:$0xff] }
 0x2e2   : > { %1906 = vmatpush1.msra.mxu0 %v1468_v57  ;;  %1977 = vmatpush1.msra.mxu1 %v1470_v26  ;;  %v1533_v57 = vld [vmem:[#allocation12 + $0x2a8] sm:$0xff]  ;;  %v1535_v26 = vld [vmem:[#allocation12 + $0x2b8] sm:$0xff] }
 0x2e3   : > { %1907 = vmatprep.subr.mxu0 %v1465_v4  ;;  %1978 = vmatprep.subr.mxu1 %v1467_v8  ;;  %v1532_v4 = vld [vmem:[#allocation12 + $0x2a0] sm:$0xff]  ;;  %v1534_v8 = vld [vmem:[#allocation12 + $0x2b0] sm:$0xff] }
 0x2e4   : > { %1908 = vmatpush1.msra.mxu0 %v1464_v58  ;;  %1979 = vmatpush1.msra.mxu1 %v1466_v35  ;;  %v1529_v58 = vld [vmem:[#allocation12 + $0x288] sm:$0xff]  ;;  %v1531_v35 = vld [vmem:[#allocation12 + $0x298] sm:$0xff] }
 0x2e5   : > { %1909 = vmatprep.subr.mxu0 %v1461_v11  ;;  %1980 = vmatprep.subr.mxu1 %v1463_v49  ;;  %v1528_v11 = vld [vmem:[#allocation12 + $0x280] sm:$0xff]  ;;  %v1530_v49 = vld [vmem:[#allocation12 + $0x290] sm:$0xff] }
 0x2e6   : > { %1910 = vmatpush1.msra.mxu0 %v1460_v9  ;;  %1981 = vmatpush1.msra.mxu1 %v1462_v53  ;;  %v1525_v9 = vld [vmem:[#allocation12 + $0x268] sm:$0xff]  ;;  %v1527_v53 = vld [vmem:[#allocation12 + $0x278] sm:$0xff] }
 0x2e7   : > { %1911 = vmatprep.subr.mxu0 %v1457_v12  ;;  %1982 = vmatprep.subr.mxu1 %v1459_v13  ;;  %v1524_v12 = vld [vmem:[#allocation12 + $0x260] sm:$0xff]  ;;  %v1526_v13 = vld [vmem:[#allocation12 + $0x270] sm:$0xff] }
 0x2e8   : > { %1912 = vmatpush1.msra.mxu0 %v1456_v46  ;;  %1983 = vmatpush1.msra.mxu1 %v1458_v14  ;;  %v1521_v46 = vld [vmem:[#allocation12 + $0x248] sm:$0xff]  ;;  %v1523_v14 = vld [vmem:[#allocation12 + $0x258] sm:$0xff] }
 0x2e9   : > { %1913 = vmatprep.subr.mxu0 %v1453_v16  ;;  %1984 = vmatprep.subr.mxu1 %v1455_v17  ;;  %v1520_v16 = vld [vmem:[#allocation12 + $0x240] sm:$0xff]  ;;  %v1522_v17 = vld [vmem:[#allocation12 + $0x250] sm:$0xff] }
 0x2ea   : > { %1914 = vmatpush1.msra.mxu0 %v1452_v18  ;;  %1985 = vmatpush1.msra.mxu1 %v1454_v60  ;;  %v1517_v18 = vld [vmem:[#allocation12 + $0x228] sm:$0xff]  ;;  %v1519_v60 = vld [vmem:[#allocation12 + $0x238] sm:$0xff] }
 0x2eb   : > { %1915 = vmatprep.subr.mxu0 %v1449_v56  ;;  %1986 = vmatprep.subr.mxu1 %v1451_v24  ;;  %v1516_v56 = vld [vmem:[#allocation12 + $0x220] sm:$0xff]  ;;  %v1518_v24 = vld [vmem:[#allocation12 + $0x230] sm:$0xff] }
 0x2ec   : > { %1916 = vmatpush1.msra.mxu0 %v1448_v45  ;;  %1987 = vmatpush1.msra.mxu1 %v1450_v20  ;;  %v1513_v45 = vld [vmem:[#allocation12 + $0x208] sm:$0xff]  ;;  %v1515_v20 = vld [vmem:[#allocation12 + $0x218] sm:$0xff] }
 0x2ed   : > { %1917 = vmatprep.subr.mxu0 %v1573_v61  ;;  %1988 = vmatprep.subr.mxu1 %v1575_v1  ;;  %v1512_v61 = vld [vmem:[#allocation12 + $0x200] sm:$0xff]  ;;  %v624_v1 = vld [vmem:[#allocation3 + $0x8] sm:$0xff] }
 0x2ee   : > { %1918 = vmatpush2.msra.mxu0 %v1572_v52  ;;  %1989 = vmatpush2.msra.mxu1 %v1574_v10  ;;  %v1514_v52 = vld [vmem:[#allocation12 + $0x210] sm:$0xff]  ;;  %v4046_v10 = vld [vmem:[#allocation3] sm:$0xff] }
 0x2ef   : > { %1919 = vmatprep.subr.mxu0 %v1569_v59  ;;  %1990 = vmatprep.subr.mxu1 %v1571_v31  ;;  %v2027_v31 = vld [vmem:[%s5246_s9] sm:$0xf] }
 0x2f0   : > { %1920 = vmatpush2.msra.mxu0 %v1568_v15  ;;  %1991 = vmatpush2.msra.mxu1 %v1570_v32  ;;  %v2035_v32 = vsub.s32 1, %v4791_v22 }
 0x2f1   : > { %1921 = vmatprep.subr.mxu0 %v1565_v37  ;;  %1992 = vmatprep.subr.mxu1 %v1567_v43  ;;  %v2032_v43 = vrot.slane %v2027_v31, %v4798_v27  ;;  %v2039_v27 = vsub.s32 2, %v4791_v22 }
 0x2f2   : > { %1922 = vmatpush2.msra.mxu0 %v1564_v28  ;;  %1993 = vmatpush2.msra.mxu1 %v1566_v41 }
 0x2f3   : > { %1923 = vmatprep.subr.mxu0 %v1561_v21  ;;  %1994 = vmatprep.subr.mxu1 %v1563_v47  ;;  %v2036_v47 = vrot.slane %v2027_v31, %v2035_v32 }
 0x2f4   : > { %1924 = vmatpush2.msra.mxu0 %v1560_v19  ;;  %1995 = vmatpush2.msra.mxu1 %v1562_v44 }
 0x2f5   : > { %1925 = vmatprep.subr.mxu0 %v1557_v29  ;;  %1996 = vmatprep.subr.mxu1 %v1559_v50 }
 0x2f6   : > { %1926 = vmatpush2.msra.mxu0 %v1556_v30  ;;  %1997 = vmatpush2.msra.mxu1 %v1558_v38 }
 0x2f7   : > { %1927 = vmatprep.subr.mxu0 %v1553_v51  ;;  %1998 = vmatprep.subr.mxu1 %v1555_v54  ;;  %v2043_v51 = vsub.s32 3, %v4791_v22 }
 0x2f8   : > { %1928 = vmatpush2.msra.mxu0 %v1552_v48  ;;  %1999 = vmatpush2.msra.mxu1 %v1554_v55 }
 0x2f9   : > { %1929 = vmatprep.subr.mxu0 %v1549_v40  ;;  %2000 = vmatprep.subr.mxu1 %v1551_v36  ;;  %v2044_v40 = vrot.slane %v2027_v31, %v2043_v51 }
 0x2fa   : > { %1930 = vmatpush2.msra.mxu0 %v1548_v7  ;;  %2001 = vmatpush2.msra.mxu1 %v1550_v39  ;;  %v2040_v39 = vrot.slane %v2027_v31, %v2039_v27 }
 0x2fb   : > { %1931 = vmatprep.subr.mxu0 %v1545_v25  ;;  %2002 = vmatprep.subr.mxu1 %v1547_v42 }
 0x2fc   : > { %1932 = vmatpush2.msra.mxu0 %v1544_v33  ;;  %2003 = vmatpush2.msra.mxu1 %v1546_v34 }
 0x2fd   : > { %1933 = vmatprep.subr.mxu0 %v1541_v23  ;;  %2004 = vmatprep.subr.mxu1 %v1543_v62 }
 0x2fe   : > { %1934 = vmatpush2.msra.mxu0 %v1540_v2  ;;  %2005 = vmatpush2.msra.mxu1 %v1542_v3 }
 0x2ff   : > { %1935 = vmatprep.subr.mxu0 %v1537_v63  ;;  %2006 = vmatprep.subr.mxu1 %v1539_v0  ;;  %v2072_v63 = vld [vmem:[#allocation6] sm:$0xff] }
 0x300   : > { %1936 = vmatpush2.msra.mxu0 %v1536_v5  ;;  %2007 = vmatpush2.msra.mxu1 %v1538_v6 }
 0x301   : > { %1937 = vmatprep.subr.mxu0 %v1533_v57  ;;  %2008 = vmatprep.subr.mxu1 %v1535_v26 }
 0x302   : > { %1938 = vmatpush2.msra.mxu0 %v1532_v4  ;;  %2009 = vmatpush2.msra.mxu1 %v1534_v8 }
 0x303   : > { %1939 = vmatprep.subr.mxu0 %v1529_v58  ;;  %2010 = vmatprep.subr.mxu1 %v1531_v35 }
 0x304   : > { %1940 = vmatpush2.msra.mxu0 %v1528_v11  ;;  %2011 = vmatpush2.msra.mxu1 %v1530_v49 }
 0x305   : > { %1941 = vmatprep.subr.mxu0 %v1525_v9  ;;  %2012 = vmatprep.subr.mxu1 %v1527_v53 }
 0x306   : > { %1942 = vmatpush2.msra.mxu0 %v1524_v12  ;;  %2013 = vmatpush2.msra.mxu1 %v1526_v13 }
 0x307   : > { %1943 = vmatprep.subr.mxu0 %v1521_v46  ;;  %2014 = vmatprep.subr.mxu1 %v1523_v14 }
 0x308   : > { %1944 = vmatpush2.msra.mxu0 %v1520_v16  ;;  %2015 = vmatpush2.msra.mxu1 %v1522_v17 }
 0x309   : > { %1945 = vmatprep.subr.mxu0 %v1517_v18  ;;  %2016 = vmatprep.subr.mxu1 %v1519_v60 }
 0x30a   : > { %1946 = vmatpush2.msra.mxu0 %v1516_v56  ;;  %2017 = vmatpush2.msra.mxu1 %v1518_v24 }
 0x30b   : > { %1947 = vmatprep.subr.mxu0 %v1513_v45  ;;  %2018 = vmatprep.subr.mxu1 %v1515_v20 }
 0x30c   : > { %1948 = vmatpush2.msra.mxu0 %v1512_v61  ;;  %1949 = vmatprep.mubr.f32.mxu0 %v624_v1 }
 0x30d   : > { %2019 = vmatpush2.msra.mxu1 %v1514_v52  ;;  %2020 = vmatprep.mubr.f32.mxu1 %v624_v1 }
 0x30e   : > { %1950 = vmatmul.mubr.f32.vlgmr.msra.gmra.mxu0 %v4046_v10  ;;  %2021 = vmatmul.mubr.f32.vlgmr.msra.gmra.mxu1 %v4046_v10 }
 0x38d   : > { %v1809_v59 = vpop.f32.mrf.mxu0  ;;  %v1880_v15 = vpop.f32.mrf.mxu1 }
 0x38f   : > { %v1811_v37 = vpop.f32.mrf.mxu0  ;;  %v1882_v41 = vpop.f32.mrf.mxu1 }
 0x3ce   : > { %v1951_v28 = vpop.f32.mrf.mxu0  ;;  %v2022_v29 = vpop.f32.mrf.mxu1 }
 0x3cf   : > { %v1952_v21 = vadd.f32 %v1951_v28, %v1809_v59  ;;  %v2023_v7 = vadd.f32 %v2022_v29, %v1880_v15 }
 0x3d0   : > { %v1953_v19 = vpop.f32.mrf.mxu0  ;;  %v2024_v48 = vpop.f32.mrf.mxu1 }
 0x3d1   : > { %v2049_v44 = vadd.f32 %v2032_v43, %v1952_v21  ;;  %v1954_v50 = vadd.f32 %v1953_v19, %v1811_v37  ;;  %v2025_v55 = vadd.f32 %v2024_v48, %v1882_v41  ;;  %v2051_v33 = vadd.f32 %v2040_v39, %v2023_v7 }
 0x3d3   : > { %v3526_v30 = vmul.f32 -1.442695, %v2049_v44  ;;  %v2050_v38 = vadd.f32 %v2036_v47, %v1954_v50  ;;  %v2052_v36 = vadd.f32 %v2044_v40, %v2025_v55 }
 0x3d5   : > { %3998 = vpow2.f32 %v3526_v30  ;;  %v3527_v54 = vmul.f32 -1.442695, %v2050_v38  ;;  %v3528_v25 = vmul.f32 -1.442695, %v2052_v36 }
 0x3d7   : > { %4000 = vpow2.f32 %v3527_v54 }
 0x3d8   : > { %4002 = vpow2.f32 %v3528_v25 }
 0x3e2   : > { %v3999_v42 = vpop.eup %3998 }
 0x3e3   : > { %v2056_v34 = vadd.f32 1.0, %v3999_v42 }
 0x3e4   : > { %v4001_v23 = vpop.eup %4000 }
 0x3e5   : > { %4004 = vrcp.f32 %v2056_v34  ;;  %v2062_v62 = vadd.f32 1.0, %v4001_v23  ;;  %v4003_v2 = vpop.eup %4002 }
 0x3e6   : > { %4006 = vtanh.f32 %v2051_v33  ;;  %v2069_v6 = vadd.f32 1.0, %v4003_v2 }
 0x3e7   : > { %4008 = vrcp.f32 %v2062_v62 }
 0x3e8   : > { %4010 = vrcp.f32 %v2069_v6 }
 0x3f2   : > { %v4005_v3 = vpop.eup %4004 }
 0x3f3   : > { %v4007_v0 = vpop.eup %4006 }
 0x3f4   : > { %v4009_v5 = vpop.eup %4008  ;;  %v2074_v22 = vmul.f32 %v4007_v0, %v4005_v3 }
 0x3f5   : > { %v2073_v57 = vmul.f32 %v4009_v5, %v2072_v63  ;;  %v4011_v4 = vpop.eup %4010 }
 0x3f7   : > { %v2075_v26 = vadd.f32 %v2074_v22, %v2073_v57 }
 0x3f9   : > { %4012 = vtanh.f32 %v2075_v26  ;;  %2079 = vst [vmem:[#allocation21] sm:$0xff] %v2075_v26 }
 0x406   : > { %v4013_v8 = vpop.eup %4012 }
 0x407   : > { %v2077_v58 = vmul.f32 %v4013_v8, %v4011_v4 }
 0x409   : > { %2078 = vst [vmem:[#allocation19] sm:$0xff] %v2077_v58  ;;  %v2080_v35 = vpack.c.bf16 %v2077_v58, %v2077_v58 }
 0x40b   : > { %2081 = vst [vmem:[#allocation2] sm:$0xf] %v2080_v35 }
 0x40c PF: > { %v2195_v11 = vld [vmem:[%s4760_s1 + $0x380] sm:$0xff]  ;;  %v2196_v9 = vld [vmem:[%s4760_s1 + $0x388] sm:$0xff]  ;;  %v4440_v16 = vmov 0   ;;  %v2197_v35 = vld [vmem:[%s4760_s1 + $0x390] sm:$0xff]  ;;  %s4441_s21 = smov [#allocation19]   ;;  %p5316_p2 = scmp.eq.s32.totalorder %s4540_s19, 1 }
 0x40d   : > { %v2203_v49 = vld [vmem:[%s4760_s1 + $0x3c0] sm:$0xff]  ;;  %v2204_v12 = vld [vmem:[%s4760_s1 + $0x3c8] sm:$0xff]  ;;  %2967 = vmatprep.mubr.bf16.mxu0 %v4440_v16  ;;  %3008 = vmatprep.mubr.bf16.mxu1 %v4440_v16  ;;  %s3305_s28 = sshll.u32 %s4441_s21, 4  ;;  %s3306_s28 = int_to_ptr.vmem [resolvable:$true] %s3305_s28 }
 0x40e   : > { %v3642_v53 = vcombine.high %v2195_v11, %v2203_v49  ;;  %v3641_v13 = vcombine.low %v2195_v11, %v2203_v49  ;;  %v2179_v46 = vld [vmem:[%s4760_s1 + $0x300] sm:$0xff]  ;;  %v3644_v17 = vcombine.high %v2196_v9, %v2204_v12  ;;  %v3643_v18 = vcombine.low %v2196_v9, %v2204_v12  ;;  %v2180_v56 = vld [vmem:[%s4760_s1 + $0x308] sm:$0xff]  ;;  %v2205_v11 = vld [vmem:[%s4760_s1 + $0x3d0] sm:$0xff]  ;;  %s4285_s24 = scalar_lea.vmem %s3306_s28, 128  ;;  %p4292_p6 = scmp.lt.s32.totalorder %s3306_s28, %s3306_s28 }
 0x40f   : > { %v2187_v14 = vld [vmem:[%s4760_s1 + $0x340] sm:$0xff]  ;;  %v2188_v24 = vld [vmem:[%s4760_s1 + $0x348] sm:$0xff]  ;;  %v2198_v49 = vld [vmem:[%s4760_s1 + $0x398] sm:$0xff]  ;;  %p4286_p8 = scmp.ne.s32.totalorder %s3306_s28, %s4285_s24  ;;  %p4293_p12 = scmp.lt.s32.totalorder %s4285_s24, %s4285_s24 }
 0x410   : > { %v3626_v60 = vcombine.high %v2179_v46, %v2187_v14  ;;  %v2163_v45 = vld [vmem:[%s4760_s1 + $0x280] sm:$0xff]  ;;  %2935 = vmatprep.subr.bf16.mxu0 %v3642_v53  ;;  %v3628_v20 = vcombine.high %v2180_v56, %v2188_v24  ;;  %v2164_v1 = vld [vmem:[%s4760_s1 + $0x288] sm:$0xff]  ;;  %2976 = vmatprep.subr.bf16.mxu1 %v3644_v17  ;;  %v3625_v10 = vcombine.low %v2179_v46, %v2187_v14  ;;  %v2206_v9 = vld [vmem:[%s4760_s1 + $0x3d8] sm:$0xff] }
 0x411   : > { %v2171_v61 = vld [vmem:[%s4760_s1 + $0x2c0] sm:$0xff]  ;;  %v2172_v52 = vld [vmem:[%s4760_s1 + $0x2c8] sm:$0xff]  ;;  %2936 = vmatpush1.bf16.msra.mxu0 %v3641_v13  ;;  %2977 = vmatpush1.bf16.msra.mxu1 %v3643_v18  ;;  %v3627_v59 = vcombine.low %v2180_v56, %v2188_v24  ;;  %v3646_v13 = vcombine.high %v2197_v35, %v2205_v11  ;;  %v3648_v46 = vcombine.high %v2198_v49, %v2206_v9  ;;  %v2181_v14 = vld [vmem:[%s4760_s1 + $0x310] sm:$0xff]  ;;  %p4287_p9 = pnand %p4286_p8, %p5316_p2  ;;  %p4294_p13 = por %p4293_p12, %p4292_p6 }
 0x412   : > { %2937 = vmatprep.subr.bf16.mxu0 %v3626_v60  ;;  %v3610_v31 = vcombine.high %v2163_v45, %v2171_v61  ;;  %2978 = vmatprep.subr.bf16.mxu1 %v3628_v20  ;;  %v3612_v15 = vcombine.high %v2164_v1, %v2172_v52  ;;  %v2147_v32 = vld [vmem:[%s4760_s1 + $0x200] sm:$0xff]  ;;  %v2148_v43 = vld [vmem:[%s4760_s1 + $0x208] sm:$0xff]  ;;  %v3609_v41 = vcombine.low %v2163_v45, %v2171_v61  ;;  %v2189_v17 = vld [vmem:[%s4760_s1 + $0x350] sm:$0xff] }
 0x413   : > { %v2155_v37 = vld [vmem:[%s4760_s1 + $0x240] sm:$0xff]  ;;  %v2156_v28 = vld [vmem:[%s4760_s1 + $0x248] sm:$0xff]  ;;  %v3611_v21 = vcombine.low %v2164_v1, %v2172_v52  ;;  %v2182_v18 = vld [vmem:[%s4760_s1 + $0x318] sm:$0xff]  ;;  %v3645_v24 = vcombine.low %v2197_v35, %v2205_v11  ;;  %v3647_v45 = vcombine.low %v2198_v49, %v2206_v9  ;;  %v3630_v20 = vcombine.high %v2181_v14, %v2189_v17  ;;  %p4288_p10 = pneg %p4287_p9 }
 0x414   : > { %v3594_v47 = vcombine.high %v2147_v32, %v2155_v37  ;;  %v3596_v19 = vcombine.high %v2148_v43, %v2156_v28  ;;  %v2131_v44 = vld [vmem:[%s4760_s1 + $0x180] sm:$0xff]  ;;  %v2132_v50 = vld [vmem:[%s4760_s1 + $0x188] sm:$0xff]  ;;  %v3593_v38 = vcombine.low %v2147_v32, %v2155_v37  ;;  %v3595_v51 = vcombine.low %v2148_v43, %v2156_v28  ;;  %v2190_v60 = vld [vmem:[%s4760_s1 + $0x358] sm:$0xff] }
 0x415   : > { %2938 = vmatpush1.bf16.msra.mxu0 %v3625_v10  ;;  %2979 = vmatpush1.bf16.msra.mxu1 %v3627_v59  ;;  %v2139_v29 = vld [vmem:[%s4760_s1 + $0x1c0] sm:$0xff]  ;;  %v2140_v30 = vld [vmem:[%s4760_s1 + $0x1c8] sm:$0xff]  ;;  %v3632_v61 = vcombine.high %v2182_v18, %v2190_v60  ;;  %v2165_v1 = vld [vmem:[%s4760_s1 + $0x290] sm:$0xff]  ;;  %p4295_p0 = pnand %p4294_p13, %p4288_p10 }
 0x416   : > { %2939 = vmatprep.subr.bf16.mxu0 %v3610_v31  ;;  %2980 = vmatprep.subr.bf16.mxu1 %v3612_v15  ;;  %v3578_v54 = vcombine.high %v2131_v44, %v2139_v29  ;;  %v3580_v48 = vcombine.high %v2132_v50, %v2140_v30  ;;  %v2115_v55 = vld [vmem:[%s4760_s1 + $0x100] sm:$0xff]  ;;  %v2116_v27 = vld [vmem:[%s4760_s1 + $0x108] sm:$0xff]  ;;  %v3577_v7 = vcombine.low %v2131_v44, %v2139_v29  ;;  %v2173_v52 = vld [vmem:[%s4760_s1 + $0x2d0] sm:$0xff] }
 0x417   : > { %v2123_v40 = vld [vmem:[%s4760_s1 + $0x140] sm:$0xff]  ;;  %v2124_v36 = vld [vmem:[%s4760_s1 + $0x148] sm:$0xff]  ;;  %v3579_v39 = vcombine.low %v2132_v50, %v2140_v30  ;;  %v2166_v10 = vld [vmem:[%s4760_s1 + $0x298] sm:$0xff]  ;;  %v3629_v31 = vcombine.low %v2181_v14, %v2189_v17  ;;  %v3631_v15 = vcombine.low %v2182_v18, %v2190_v60  ;;  %v3614_v32 = vcombine.high %v2165_v1, %v2173_v52 }
 0x418   : > { %v3562_v25 = vcombine.high %v2115_v55, %v2123_v40  ;;  %v3564_v42 = vcombine.high %v2116_v27, %v2124_v36  ;;  %v2099_v33 = vld [vmem:[%s4760_s1 + $0x80] sm:$0xff]  ;;  %v2100_v23 = vld [vmem:[%s4760_s1 + $0x88] sm:$0xff]  ;;  %v3561_v2 = vcombine.low %v2115_v55, %v2123_v40  ;;  %v3563_v3 = vcombine.low %v2116_v27, %v2124_v36  ;;  %v2174_v59 = vld [vmem:[%s4760_s1 + $0x2d8] sm:$0xff] }
 0x419   : > { %2940 = vmatpush1.bf16.msra.mxu0 %v3609_v41  ;;  %2981 = vmatpush1.bf16.msra.mxu1 %v3611_v21  ;;  %v2107_v34 = vld [vmem:[%s4760_s1 + $0xc0] sm:$0xff]  ;;  %v2108_v62 = vld [vmem:[%s4760_s1 + $0xc8] sm:$0xff]  ;;  %v3616_v37 = vcombine.high %v2166_v10, %v2174_v59  ;;  %v2149_v43 = vld [vmem:[%s4760_s1 + $0x210] sm:$0xff] }
 0x41a   : > { %2941 = vmatprep.subr.bf16.mxu0 %v3594_v47  ;;  %2982 = vmatprep.subr.bf16.mxu1 %v3596_v19  ;;  %v3546_v63 = vcombine.high %v2099_v33, %v2107_v34  ;;  %v3548_v0 = vcombine.high %v2100_v23, %v2108_v62  ;;  %v2083_v5 = vld [vmem:[%s4760_s1] sm:$0xff]  ;;  %v2084_v22 = vld [vmem:[%s4760_s1 + $0x8] sm:$0xff]  ;;  %v3545_v26 = vcombine.low %v2099_v33, %v2107_v34  ;;  %v2157_v28 = vld [vmem:[%s4760_s1 + $0x250] sm:$0xff] }
 0x41b   : > { %v2091_v6 = vld [vmem:[%s4760_s1 + $0x40] sm:$0xff]  ;;  %v2092_v57 = vld [vmem:[%s4760_s1 + $0x48] sm:$0xff]  ;;  %v3547_v4 = vcombine.low %v2100_v23, %v2108_v62  ;;  %v2150_v41 = vld [vmem:[%s4760_s1 + $0x218] sm:$0xff]  ;;  %v3613_v47 = vcombine.low %v2165_v1, %v2173_v52  ;;  %v3615_v19 = vcombine.low %v2166_v10, %v2174_v59  ;;  %v3598_v44 = vcombine.high %v2149_v43, %v2157_v28 }
 0x41c   : > { %v3530_v8 = vcombine.high %v2083_v5, %v2091_v6  ;;  %v3532_v58 = vcombine.high %v2084_v22, %v2092_v57  ;;  %v3529_v53 = vcombine.low %v2083_v5, %v2091_v6  ;;  %v3531_v12 = vcombine.low %v2084_v22, %v2092_v57  ;;  %v5039_v56 = vld [vmem:[#allocation2] sm:$0xf]  ;;  %v2158_v21 = vld [vmem:[%s4760_s1 + $0x258] sm:$0xff]  ;;  %v2133_v50 = vld [vmem:[%s4760_s1 + $0x190] sm:$0xff] }
 0x41d   : > { %2942 = vmatpush1.bf16.msra.mxu0 %v3593_v38  ;;  %2983 = vmatpush1.bf16.msra.mxu1 %v3595_v51  ;;  %v3600_v29 = vcombine.high %v2150_v41, %v2158_v21  ;;  %v2141_v30 = vld [vmem:[%s4760_s1 + $0x1d0] sm:$0xff]  ;;  %v2134_v38 = vld [vmem:[%s4760_s1 + $0x198] sm:$0xff]  ;;  %v2199_v49 = vld [vmem:[%s4760_s1 + $0x3a0] sm:$0xff] }
 0x41e   : > { %2943 = vmatprep.subr.bf16.mxu0 %v3578_v54  ;;  %2984 = vmatprep.subr.bf16.mxu1 %v3580_v48  ;;  %v2142_v51 = vld [vmem:[%s4760_s1 + $0x1d8] sm:$0xff]  ;;  %v3597_v54 = vcombine.low %v2149_v43, %v2157_v28  ;;  %v3599_v48 = vcombine.low %v2150_v41, %v2158_v21  ;;  %v3582_v55 = vcombine.high %v2133_v50, %v2141_v30  ;;  %v2117_v27 = vld [vmem:[%s4760_s1 + $0x110] sm:$0xff]  ;;  %v2207_v9 = vld [vmem:[%s4760_s1 + $0x3e0] sm:$0xff] }
 0x41f   : > { %v3584_v40 = vcombine.high %v2134_v38, %v2142_v51  ;;  %v2125_v36 = vld [vmem:[%s4760_s1 + $0x150] sm:$0xff]  ;;  %v3650_v14 = vcombine.high %v2199_v49, %v2207_v9  ;;  %v2183_v18 = vld [vmem:[%s4760_s1 + $0x320] sm:$0xff] }
 0x420   : > { %v3566_v33 = vcombine.high %v2117_v27, %v2125_v36  ;;  %v2101_v23 = vld [vmem:[%s4760_s1 + $0x90] sm:$0xff]  ;;  %v2191_v60 = vld [vmem:[%s4760_s1 + $0x360] sm:$0xff] }
 0x421   : > { %2944 = vmatpush1.bf16.msra.mxu0 %v3577_v7  ;;  %2985 = vmatpush1.bf16.msra.mxu1 %v3579_v39  ;;  %v2118_v7 = vld [vmem:[%s4760_s1 + $0x118] sm:$0xff]  ;;  %v2109_v62 = vld [vmem:[%s4760_s1 + $0xd0] sm:$0xff]  ;;  %v3634_v1 = vcombine.high %v2183_v18, %v2191_v60  ;;  %v2167_v10 = vld [vmem:[%s4760_s1 + $0x2a0] sm:$0xff] }
 0x422   : > { %2945 = vmatprep.subr.bf16.mxu0 %v3562_v25  ;;  %2986 = vmatprep.subr.bf16.mxu1 %v3564_v42  ;;  %v2126_v39 = vld [vmem:[%s4760_s1 + $0x158] sm:$0xff]  ;;  %v3581_v25 = vcombine.low %v2133_v50, %v2141_v30  ;;  %v3583_v42 = vcombine.low %v2134_v38, %v2142_v51  ;;  %v3550_v5 = vcombine.high %v2101_v23, %v2109_v62  ;;  %v2085_v22 = vld [vmem:[%s4760_s1 + $0x10] sm:$0xff]  ;;  %v2175_v59 = vld [vmem:[%s4760_s1 + $0x2e0] sm:$0xff] }
 0x423   : > { %v3568_v34 = vcombine.high %v2118_v7, %v2126_v39  ;;  %v2093_v57 = vld [vmem:[%s4760_s1 + $0x50] sm:$0xff]  ;;  %v3618_v43 = vcombine.high %v2167_v10, %v2175_v59  ;;  %v2151_v41 = vld [vmem:[%s4760_s1 + $0x220] sm:$0xff] }
 0x424   : > { %v3534_v35 = vcombine.high %v2085_v22, %v2093_v57  ;;  %v2159_v21 = vld [vmem:[%s4760_s1 + $0x260] sm:$0xff] }
 0x425   : > { %2946 = vmatpush1.bf16.msra.mxu0 %v3561_v2  ;;  %2987 = vmatpush1.bf16.msra.mxu1 %v3563_v3  ;;  %v2102_v2 = vld [vmem:[%s4760_s1 + $0x98] sm:$0xff]  ;;  %v3602_v50 = vcombine.high %v2151_v41, %v2159_v21  ;;  %v2135_v38 = vld [vmem:[%s4760_s1 + $0x1a0] sm:$0xff] }
 0x426   : > { %2947 = vmatprep.subr.bf16.mxu0 %v3546_v63  ;;  %2988 = vmatprep.subr.bf16.mxu1 %v3548_v0  ;;  %v2110_v3 = vld [vmem:[%s4760_s1 + $0xd8] sm:$0xff]  ;;  %v3565_v63 = vcombine.low %v2117_v27, %v2125_v36  ;;  %v3567_v0 = vcombine.low %v2118_v7, %v2126_v39  ;;  %v2143_v51 = vld [vmem:[%s4760_s1 + $0x1e0] sm:$0xff] }
 0x427   : > { %v3552_v6 = vcombine.high %v2102_v2, %v2110_v3  ;;  %v3586_v27 = vcombine.high %v2135_v38, %v2143_v51  ;;  %v2119_v7 = vld [vmem:[%s4760_s1 + $0x120] sm:$0xff] }
 0x428   : > { %v2127_v39 = vld [vmem:[%s4760_s1 + $0x160] sm:$0xff] }
 0x429   : > { %2948 = vmatpush1.bf16.msra.mxu0 %v3545_v26  ;;  %2989 = vmatpush1.bf16.msra.mxu1 %v3547_v4  ;;  %v2086_v26 = vld [vmem:[%s4760_s1 + $0x18] sm:$0xff] }
 0x42a   : > { %2949 = vmatprep.subr.bf16.mxu0 %v3530_v8  ;;  %2990 = vmatprep.subr.bf16.mxu1 %v3532_v58  ;;  %v2094_v4 = vld [vmem:[%s4760_s1 + $0x58] sm:$0xff]  ;;  %v3549_v8 = vcombine.low %v2101_v23, %v2109_v62  ;;  %v3551_v58 = vcombine.low %v2102_v2, %v2110_v3  ;;  %v3570_v23 = vcombine.high %v2119_v7, %v2127_v39  ;;  %v2103_v2 = vld [vmem:[%s4760_s1 + $0xa0] sm:$0xff] }
 0x42b   : > { %v3536_v11 = vcombine.high %v2086_v26, %v2094_v4  ;;  %v2111_v3 = vld [vmem:[%s4760_s1 + $0xe0] sm:$0xff] }
 0x42d   : > { %2950 = vmatpush1.bf16.msra.mxu0 %v3529_v53  ;;  %2991 = vmatpush1.bf16.msra.mxu1 %v3531_v12  ;;  %v2200_v53 = vld [vmem:[%s4760_s1 + $0x3a8] sm:$0xff] }
 0x42e   : > { %3017 = vmatprep.subr.bf16.mxu0 %v3646_v13  ;;  %3058 = vmatprep.subr.bf16.mxu1 %v3648_v46  ;;  %v2208_v12 = vld [vmem:[%s4760_s1 + $0x3e8] sm:$0xff]  ;;  %v3533_v13 = vcombine.low %v2085_v22, %v2093_v57  ;;  %v3535_v46 = vcombine.low %v2086_v26, %v2094_v4  ;;  %v3554_v22 = vcombine.high %v2103_v2, %v2111_v3  ;;  %v2087_v26 = vld [vmem:[%s4760_s1 + $0x20] sm:$0xff] }
 0x42f   : > { %v3652_v17 = vcombine.high %v2200_v53, %v2208_v12  ;;  %v2095_v4 = vld [vmem:[%s4760_s1 + $0x60] sm:$0xff] }
 0x430   : > { %2968 = vmatmul.mubr.bf16.vlgmr.msra.gmra.mxu0 %v5039_v56  ;;  %3009 = vmatmul.mubr.bf16.vlgmr.msra.gmra.mxu1 %v5039_v56 }
 0x431   : > { %3018 = vmatpush1.bf16.msra.mxu0 %v3645_v24  ;;  %3059 = vmatpush1.bf16.msra.mxu1 %v3647_v45  ;;  %v2184_v24 = vld [vmem:[%s4760_s1 + $0x328] sm:$0xff] }
 0x432   : > { %3019 = vmatprep.subr.bf16.mxu0 %v3630_v20  ;;  %3060 = vmatprep.subr.bf16.mxu1 %v3632_v61  ;;  %v2192_v45 = vld [vmem:[%s4760_s1 + $0x368] sm:$0xff]  ;;  %v3649_v20 = vcombine.low %v2199_v49, %v2207_v9  ;;  %v3651_v61 = vcombine.low %v2200_v53, %v2208_v12  ;;  %v3538_v49 = vcombine.high %v2087_v26, %v2095_v4  ;;  %v2201_v53 = vld [vmem:[%s4760_s1 + $0x3b0] sm:$0xff] }
 0x433   : > { %3049 = vmatprep.mubr.bf16.mxu0 %v4440_v16  ;;  %3090 = vmatprep.mubr.bf16.mxu1 %v4440_v16  ;;  %v3636_v52 = vcombine.high %v2184_v24, %v2192_v45  ;;  %v2209_v12 = vld [vmem:[%s4760_s1 + $0x3f0] sm:$0xff] }
 0x435   : > { %3020 = vmatpush1.bf16.msra.mxu0 %v3629_v31  ;;  %3061 = vmatpush1.bf16.msra.mxu1 %v3631_v15  ;;  %v2168_v31 = vld [vmem:[%s4760_s1 + $0x2a8] sm:$0xff] }
 0x436   : > { %3021 = vmatprep.subr.bf16.mxu0 %v3614_v32  ;;  %3062 = vmatprep.subr.bf16.mxu1 %v3616_v37  ;;  %v2176_v15 = vld [vmem:[%s4760_s1 + $0x2e8] sm:$0xff]  ;;  %v3633_v32 = vcombine.low %v2183_v18, %v2191_v60  ;;  %v3635_v37 = vcombine.low %v2184_v24, %v2192_v45  ;;  %v3654_v18 = vcombine.high %v2201_v53, %v2209_v12  ;;  %v2185_v24 = vld [vmem:[%s4760_s1 + $0x330] sm:$0xff] }
 0x437   : > { %v3620_v28 = vcombine.high %v2168_v31, %v2176_v15  ;;  %v2193_v45 = vld [vmem:[%s4760_s1 + $0x370] sm:$0xff] }
 0x439   : > { %3022 = vmatpush1.bf16.msra.mxu0 %v3613_v47  ;;  %3063 = vmatpush1.bf16.msra.mxu1 %v3615_v19  ;;  %v2152_v47 = vld [vmem:[%s4760_s1 + $0x228] sm:$0xff] }
 0x43a   : > { %3023 = vmatprep.subr.bf16.mxu0 %v3598_v44  ;;  %3064 = vmatprep.subr.bf16.mxu1 %v3600_v29  ;;  %v2160_v19 = vld [vmem:[%s4760_s1 + $0x268] sm:$0xff]  ;;  %v3617_v44 = vcombine.low %v2167_v10, %v2175_v59  ;;  %v3619_v29 = vcombine.low %v2168_v31, %v2176_v15  ;;  %v3638_v10 = vcombine.high %v2185_v24, %v2193_v45  ;;  %v2169_v31 = vld [vmem:[%s4760_s1 + $0x2b0] sm:$0xff] }
 0x43b   : > { %v3604_v30 = vcombine.high %v2152_v47, %v2160_v19  ;;  %v2177_v15 = vld [vmem:[%s4760_s1 + $0x2f0] sm:$0xff] }
 0x43d   : > { %3024 = vmatpush1.bf16.msra.mxu0 %v3597_v54  ;;  %3065 = vmatpush1.bf16.msra.mxu1 %v3599_v48  ;;  %v2136_v54 = vld [vmem:[%s4760_s1 + $0x1a8] sm:$0xff] }
 0x43e   : > { %3025 = vmatprep.subr.bf16.mxu0 %v3582_v55  ;;  %3066 = vmatprep.subr.bf16.mxu1 %v3584_v40  ;;  %v2144_v48 = vld [vmem:[%s4760_s1 + $0x1e8] sm:$0xff]  ;;  %v3601_v55 = vcombine.low %v2151_v41, %v2159_v21  ;;  %v3603_v40 = vcombine.low %v2152_v47, %v2160_v19  ;;  %v3622_v41 = vcombine.high %v2169_v31, %v2177_v15  ;;  %v2153_v47 = vld [vmem:[%s4760_s1 + $0x230] sm:$0xff] }
 0x43f   : > { %v3588_v36 = vcombine.high %v2136_v54, %v2144_v48  ;;  %v2161_v19 = vld [vmem:[%s4760_s1 + $0x270] sm:$0xff] }
 0x441   : > { %3026 = vmatpush1.bf16.msra.mxu0 %v3581_v25  ;;  %3067 = vmatpush1.bf16.msra.mxu1 %v3583_v42  ;;  %v2120_v25 = vld [vmem:[%s4760_s1 + $0x128] sm:$0xff] }
 0x442   : > { %3027 = vmatprep.subr.bf16.mxu0 %v3566_v33  ;;  %3068 = vmatprep.subr.bf16.mxu1 %v3568_v34  ;;  %v2128_v42 = vld [vmem:[%s4760_s1 + $0x168] sm:$0xff]  ;;  %v3585_v33 = vcombine.low %v2135_v38, %v2143_v51  ;;  %v3587_v34 = vcombine.low %v2136_v54, %v2144_v48  ;;  %v3606_v38 = vcombine.high %v2153_v47, %v2161_v19  ;;  %v2137_v54 = vld [vmem:[%s4760_s1 + $0x1b0] sm:$0xff] }
 0x443   : > { %v3572_v62 = vcombine.high %v2120_v25, %v2128_v42  ;;  %v2145_v48 = vld [vmem:[%s4760_s1 + $0x1f0] sm:$0xff] }
 0x445   : > { %3028 = vmatpush1.bf16.msra.mxu0 %v3565_v63  ;;  %3069 = vmatpush1.bf16.msra.mxu1 %v3567_v0  ;;  %v2104_v63 = vld [vmem:[%s4760_s1 + $0xa8] sm:$0xff] }
 0x446   : > { %3029 = vmatprep.subr.bf16.mxu0 %v3550_v5  ;;  %3070 = vmatprep.subr.bf16.mxu1 %v3552_v6  ;;  %v2112_v0 = vld [vmem:[%s4760_s1 + $0xe8] sm:$0xff]  ;;  %v3569_v5 = vcombine.low %v2119_v7, %v2127_v39  ;;  %v3571_v6 = vcombine.low %v2120_v25, %v2128_v42  ;;  %v2121_v39 = vld [vmem:[%s4760_s1 + $0x130] sm:$0xff]  ;;  %v2122_v42 = vld [vmem:[%s4760_s1 + $0x138] sm:$0xff] }
 0x447   : > { %v3556_v57 = vcombine.high %v2104_v63, %v2112_v0  ;;  %v2129_v25 = vld [vmem:[%s4760_s1 + $0x170] sm:$0xff] }
 0x449   : > { %3030 = vmatpush1.bf16.msra.mxu0 %v3549_v8  ;;  %3071 = vmatpush1.bf16.msra.mxu1 %v3551_v58  ;;  %v2088_v8 = vld [vmem:[%s4760_s1 + $0x28] sm:$0xff] }
 0x44a   : > { %3031 = vmatprep.subr.bf16.mxu0 %v3534_v35  ;;  %3072 = vmatprep.subr.bf16.mxu1 %v3536_v11  ;;  %v2096_v58 = vld [vmem:[%s4760_s1 + $0x68] sm:$0xff]  ;;  %v3553_v35 = vcombine.low %v2103_v2, %v2111_v3  ;;  %v3555_v11 = vcombine.low %v2104_v63, %v2112_v0  ;;  %v2105_v3 = vld [vmem:[%s4760_s1 + $0xb0] sm:$0xff]  ;;  %v2106_v0 = vld [vmem:[%s4760_s1 + $0xb8] sm:$0xff] }
 0x44b   : > { %v3540_v9 = vcombine.high %v2088_v8, %v2096_v58  ;;  %v2113_v63 = vld [vmem:[%s4760_s1 + $0xf0] sm:$0xff] }
 0x44d   : > { %3032 = vmatpush1.bf16.msra.mxu0 %v3533_v13  ;;  %3073 = vmatpush1.bf16.msra.mxu1 %v3535_v46  ;;  %v2202_v13 = vld [vmem:[%s4760_s1 + $0x3b8] sm:$0xff] }
 0x44e   : > { %3099 = vmatprep.subr.bf16.mxu0 %v3650_v14  ;;  %3140 = vmatprep.subr.bf16.mxu1 %v3652_v17  ;;  %v2210_v46 = vld [vmem:[%s4760_s1 + $0x3f8] sm:$0xff]  ;;  %v3537_v14 = vcombine.low %v2087_v26, %v2095_v4  ;;  %v3539_v17 = vcombine.low %v2088_v8, %v2096_v58  ;;  %v2089_v4 = vld [vmem:[%s4760_s1 + $0x30] sm:$0xff] }
 0x44f   : > { %v3656_v60 = vcombine.high %v2202_v13, %v2210_v46  ;;  %v2097_v8 = vld [vmem:[%s4760_s1 + $0x70] sm:$0xff]  ;;  %v2090_v58 = vld [vmem:[%s4760_s1 + $0x38] sm:$0xff] }
 0x450   : > { %3050 = vmatmul.mubr.bf16.vlgmr.msra.gmra.mxu0 %v5039_v56  ;;  %3091 = vmatmul.mubr.bf16.vlgmr.msra.gmra.mxu1 %v5039_v56 }
 0x451   : > { %3100 = vmatpush1.bf16.msra.mxu0 %v3649_v20  ;;  %3141 = vmatpush1.bf16.msra.mxu1 %v3651_v61  ;;  %v2186_v20 = vld [vmem:[%s4760_s1 + $0x338] sm:$0xff] }
 0x452   : > { %3101 = vmatprep.subr.bf16.mxu0 %v3634_v1  ;;  %3142 = vmatprep.subr.bf16.mxu1 %v3636_v52  ;;  %v2194_v61 = vld [vmem:[%s4760_s1 + $0x378] sm:$0xff]  ;;  %v3653_v1 = vcombine.low %v2201_v53, %v2209_v12  ;;  %v3655_v52 = vcombine.low %v2202_v13, %v2210_v46  ;;  %v3541_v12 = vcombine.low %v2089_v4, %v2097_v8 }
 0x453   : > { %3131 = vmatprep.mubr.bf16.mxu0 %v4440_v16  ;;  %3172 = vmatprep.mubr.bf16.mxu1 %v4440_v16  ;;  %v3640_v59 = vcombine.high %v2186_v20, %v2194_v61 }
 0x455   : > { %3102 = vmatpush1.bf16.msra.mxu0 %v3633_v32  ;;  %3143 = vmatpush1.bf16.msra.mxu1 %v3635_v37  ;;  %v2170_v32 = vld [vmem:[%s4760_s1 + $0x2b8] sm:$0xff] }
 0x456   : > { %3103 = vmatprep.subr.bf16.mxu0 %v3618_v43  ;;  %3144 = vmatprep.subr.bf16.mxu1 %v3620_v28  ;;  %v2178_v37 = vld [vmem:[%s4760_s1 + $0x2f8] sm:$0xff]  ;;  %v3637_v43 = vcombine.low %v2185_v24, %v2193_v45  ;;  %v3639_v28 = vcombine.low %v2186_v20, %v2194_v61 }
 0x457   : > { %v3624_v21 = vcombine.high %v2170_v32, %v2178_v37 }
 0x459   : > { %3104 = vmatpush1.bf16.msra.mxu0 %v3617_v44  ;;  %3145 = vmatpush1.bf16.msra.mxu1 %v3619_v29  ;;  %v2154_v44 = vld [vmem:[%s4760_s1 + $0x238] sm:$0xff] }
 0x45a   : > { %3105 = vmatprep.subr.bf16.mxu0 %v3602_v50  ;;  %3146 = vmatprep.subr.bf16.mxu1 %v3604_v30  ;;  %v2162_v29 = vld [vmem:[%s4760_s1 + $0x278] sm:$0xff]  ;;  %v3621_v50 = vcombine.low %v2169_v31, %v2177_v15  ;;  %v3623_v30 = vcombine.low %v2170_v32, %v2178_v37 }
 0x45b   : > { %v3608_v51 = vcombine.high %v2154_v44, %v2162_v29 }
 0x45d   : > { %3106 = vmatpush1.bf16.msra.mxu0 %v3601_v55  ;;  %3147 = vmatpush1.bf16.msra.mxu1 %v3603_v40  ;;  %v2138_v55 = vld [vmem:[%s4760_s1 + $0x1b8] sm:$0xff] }
 0x45e   : > { %3107 = vmatprep.subr.bf16.mxu0 %v3586_v27  ;;  %3148 = vmatprep.subr.bf16.mxu1 %v3588_v36  ;;  %v2146_v40 = vld [vmem:[%s4760_s1 + $0x1f8] sm:$0xff]  ;;  %v3605_v27 = vcombine.low %v2153_v47, %v2161_v19  ;;  %v3590_v36 = vcombine.high %v2137_v54, %v2145_v48 }
 0x45f   : > { %v3592_v7 = vcombine.high %v2138_v55, %v2146_v40 }
 0x461   : > { %3108 = vmatpush1.bf16.msra.mxu0 %v3585_v33  ;;  %3149 = vmatpush1.bf16.msra.mxu1 %v3587_v34  ;;  %v2130_v33 = vld [vmem:[%s4760_s1 + $0x178] sm:$0xff]  ;;  %v3589_v34 = vcombine.low %v2137_v54, %v2145_v48 }
 0x462   : > { %3109 = vmatprep.subr.bf16.mxu0 %v3570_v23  ;;  %3150 = vmatprep.subr.bf16.mxu1 %v3572_v62  ;;  %v3591_v23 = vcombine.low %v2138_v55, %v2146_v40  ;;  %v3574_v62 = vcombine.high %v2121_v39, %v2129_v25  ;;  %v3576_v2 = vcombine.high %v2122_v42, %v2130_v33 }
 0x465   : > { %3110 = vmatpush1.bf16.msra.mxu0 %v3569_v5  ;;  %3151 = vmatpush1.bf16.msra.mxu1 %v3571_v6  ;;  %v2114_v5 = vld [vmem:[%s4760_s1 + $0xf8] sm:$0xff]  ;;  %v3573_v6 = vcombine.low %v2121_v39, %v2129_v25 }
 0x466   : > { %3111 = vmatprep.subr.bf16.mxu0 %v3554_v22  ;;  %3152 = vmatprep.subr.bf16.mxu1 %v3556_v57  ;;  %v3575_v22 = vcombine.low %v2122_v42, %v2130_v33  ;;  %v3558_v57 = vcombine.high %v2105_v3, %v2113_v63  ;;  %v3560_v26 = vcombine.high %v2106_v0, %v2114_v5 }
 0x469   : > { %3112 = vmatpush1.bf16.msra.mxu0 %v3553_v35  ;;  %3153 = vmatpush1.bf16.msra.mxu1 %v3555_v11  ;;  %v2098_v35 = vld [vmem:[%s4760_s1 + $0x78] sm:$0xff]  ;;  %v3557_v11 = vcombine.low %v2105_v3, %v2113_v63 }
 0x46a   : > { %3113 = vmatprep.subr.bf16.mxu0 %v3538_v49  ;;  %3154 = vmatprep.subr.bf16.mxu1 %v3540_v9  ;;  %v3559_v49 = vcombine.low %v2106_v0, %v2114_v5  ;;  %v3542_v9 = vcombine.high %v2089_v4, %v2097_v8  ;;  %v3544_v53 = vcombine.high %v2090_v58, %v2098_v35 }
 0x46b   : > { %v3543_v13 = vcombine.low %v2090_v58, %v2098_v35 }
 0x46d   : > { %3114 = vmatpush1.bf16.msra.mxu0 %v3537_v14  ;;  %3155 = vmatpush1.bf16.msra.mxu1 %v3539_v17 }
 0x46e   : > { %3181 = vmatprep.subr.bf16.mxu0 %v3654_v18  ;;  %3222 = vmatprep.subr.bf16.mxu1 %v3656_v60 }
 0x470   : > { %3132 = vmatmul.mubr.bf16.vlgmr.msra.gmra.mxu0 %v5039_v56  ;;  %3173 = vmatmul.mubr.bf16.vlgmr.msra.gmra.mxu1 %v5039_v56 }
 0x471   : > { %3182 = vmatpush1.bf16.msra.mxu0 %v3653_v1  ;;  %3223 = vmatpush1.bf16.msra.mxu1 %v3655_v52 }
 0x472   : > { %3183 = vmatprep.subr.bf16.mxu0 %v3638_v10  ;;  %3224 = vmatprep.subr.bf16.mxu1 %v3640_v59 }
 0x473   : > { %3213 = vmatprep.mubr.bf16.mxu0 %v4440_v16  ;;  %3254 = vmatprep.mubr.bf16.mxu1 %v4440_v16  ;;  %v3607_v16 = vcombine.low %v2154_v44, %v2162_v29 }
 0x475   : > { %3184 = vmatpush1.bf16.msra.mxu0 %v3637_v43  ;;  %3225 = vmatpush1.bf16.msra.mxu1 %v3639_v28 }
 0x476   : > { %3185 = vmatprep.subr.bf16.mxu0 %v3622_v41  ;;  %3226 = vmatprep.subr.bf16.mxu1 %v3624_v21 }
 0x479   : > { %3186 = vmatpush1.bf16.msra.mxu0 %v3621_v50  ;;  %3227 = vmatpush1.bf16.msra.mxu1 %v3623_v30 }
 0x47a   : > { %3187 = vmatprep.subr.bf16.mxu0 %v3606_v38  ;;  %3228 = vmatprep.subr.bf16.mxu1 %v3608_v51 }
 0x47d   : > { %3188 = vmatpush1.bf16.msra.mxu0 %v3605_v27  ;;  %3229 = vmatpush1.bf16.msra.mxu1 %v3607_v16 }
 0x47e   : > { %3189 = vmatprep.subr.bf16.mxu0 %v3590_v36  ;;  %3230 = vmatprep.subr.bf16.mxu1 %v3592_v7 }
 0x481   : > { %3190 = vmatpush1.bf16.msra.mxu0 %v3589_v34  ;;  %3231 = vmatpush1.bf16.msra.mxu1 %v3591_v23 }
 0x482   : > { %3191 = vmatprep.subr.bf16.mxu0 %v3574_v62  ;;  %3232 = vmatprep.subr.bf16.mxu1 %v3576_v2 }
 0x485   : > { %3192 = vmatpush1.bf16.msra.mxu0 %v3573_v6  ;;  %3233 = vmatpush1.bf16.msra.mxu1 %v3575_v22 }
 0x486   : > { %3193 = vmatprep.subr.bf16.mxu0 %v3558_v57  ;;  %3234 = vmatprep.subr.bf16.mxu1 %v3560_v26 }
 0x489   : > { %3194 = vmatpush1.bf16.msra.mxu0 %v3557_v11  ;;  %3235 = vmatpush1.bf16.msra.mxu1 %v3559_v49 }
 0x48a   : > { %3195 = vmatprep.subr.bf16.mxu0 %v3542_v9  ;;  %3236 = vmatprep.subr.bf16.mxu1 %v3544_v53 }
 0x48d   : > { %3196 = vmatpush1.bf16.msra.mxu0 %v3541_v12  ;;  %3237 = vmatpush1.bf16.msra.mxu1 %v3543_v13 }
 0x490   : > { %3214 = vmatmul.mubr.bf16.vlgmr.msra.gmra.mxu0 %v5039_v56  ;;  %3255 = vmatmul.mubr.bf16.vlgmr.msra.gmra.mxu1 %v5039_v56 }
 0x491   : > { %4298 = shalt.err (!%p4295_p0)
}
 0x492   : > { %p5317_p3 = pmov %p5316_p2  ;;  %s4442_s10 = smov [#allocation21]  }
 0x493   : > { %s3316_s1 = sshll.u32 %s4442_s10, 4  ;;  %p5318_p1 = pmov %p5316_p2  ;;  %s3317_s1 = int_to_ptr.vmem [resolvable:$true] %s3316_s1 }
 0x494   : > { %3835 = dma.vmem_to_hbm [thread:$0]  (%p5317_p3), %s3306_s28, 128, %s5250_s13, [#allocation20]  }
 0x495   : > { %s4309_s3 = scalar_lea.vmem %s3317_s1, 128  ;;  %p4316_p5 = scmp.lt.s32.totalorder %s3317_s1, %s3317_s1 }
 0x496   : > { %p4310_p11 = scmp.ne.s32.totalorder %s3317_s1, %s4309_s3  ;;  %p4317_p8 = scmp.lt.s32.totalorder %s4309_s3, %s4309_s3 }
 0x498   : > { %p4311_p4 = pnand %p4310_p11, %p5318_p1  ;;  %p4318_p2 = por %p4317_p8, %p4316_p5 }
 0x49a   : > { %p4312_p7 = pneg %p4311_p4 }
 0x49c   : > { %p4319_p9 = pnand %p4318_p2, %p4312_p7 }
 0x49e   : > { %4322 = shalt.err (!%p4319_p9)
}
 0x49f   : > { %p5319_p10 = pmov %p5318_p1  ;;  %s5320_s22 = sld [smem:[#allocation39_spill]]  ;;  %v2215_v56 = vlaneseq  ;;  %v2211_v17 = vld [vmem:[%s4768_s23] sm:$0xff]  ;;  %v2212_v23 = vld [vmem:[%s4768_s23 + $0x8] sm:$0xff] }
 0x4a0   : > { %s3668_s23 = sshll.u32 %s4540_s19, 11  ;;  %s3294_s29 = sshll.u32 %s4770_s7, 4  ;;  %s5190_s29 = int_to_ptr.vmem [resolvable:$true] %s3294_s29 }
 0x4a1   : > { %v5157_v46 = vshrl.u32 %v2215_v56, 7  ;;  %s5321_s18 = sld [smem:[#allocation32_spill]]  ;;  %s3280_s24 = scalar_lea.sflag [#allocation5], %s4757_s20 }
 0x4a2   : > { %s5322_s21 = sld [smem:[#allocation38_spill]]  ;;  %s4333_s12 = scalar_lea.vmem %s5190_s29, 2048 }
 0x4a3   : > { %v2217_v14 = vsub.s32 0, %v5157_v46  ;;  %v2225_v18 = vsub.s32 2, %v5157_v46  ;;  %v2221_v60 = vsub.s32 1, %v5157_v46  ;;  %v2229_v24 = vsub.s32 3, %v5157_v46  ;;  %p4334_p6 = scmp.ne.s32.totalorder %s5190_s29, %s4333_s12  ;;  %s4443_s17 = smov [#allocation18]  }
 0x4a4   : > { %v2233_v19 = vsub.s32 4, %v5157_v46  ;;  %v2241_v44 = vsub.s32 6, %v5157_v46  ;;  %v2237_v29 = vsub.s32 5, %v5157_v46  ;;  %v2245_v50 = vsub.s32 7, %v5157_v46  ;;  %s4337_s10 = sshll.u32 %s4443_s17, 4  ;;  %s4338_s10 = int_to_ptr.vmem [resolvable:$false] %s4337_s10 }
 0x4a5   : > { %3837 = dma.vmem_to_hbm [thread:$0]  (%p5319_p10), %s3317_s1, 128, %s5320_s22, [#allocation20]   ;;  %v2218_v45 = vrot.slane %v2211_v17, %v2217_v14  ;;  %v2226_v20 = vrot.slane %v2211_v17, %v2225_v18  ;;  %v2222_v61 = vrot.slane %v2211_v17, %v2221_v60  ;;  %v2230_v52 = vrot.slane %v2211_v17, %v2229_v24 }
 0x4a6   : > { %v2234_v30 = vrot.slane %v2211_v17, %v2233_v19  ;;  %v2242_v38 = vrot.slane %v2211_v17, %v2241_v44  ;;  %v2238_v51 = vrot.slane %v2211_v17, %v2237_v29  ;;  %v2246_v48 = vrot.slane %v2211_v17, %v2245_v50  ;;  %s4339_s1 = scalar_lea.vmem %s4338_s10, 4096  ;;  %p4340_p3 = scmp.lt.s32.totalorder %s5190_s29, %s4338_s10 }
 0x4a7   : > { %v2250_v62 = vrot.slane %v2212_v23, %v2217_v14  ;;  %v2258_v2 = vrot.slane %v2212_v23, %v2225_v18  ;;  %v2254_v3 = vrot.slane %v2212_v23, %v2221_v60  ;;  %v2262_v0 = vrot.slane %v2212_v23, %v2229_v24  ;;  %p5323_p12 = scmp.ne.s32.totalorder %s5321_s18, 0  ;;  %p4341_p11 = scmp.lt.s32.totalorder %s4339_s1, %s4333_s12 }
 0x4a8   : > { %v2266_v9 = vrot.slane %v2212_v23, %v2233_v19  ;;  %v2274_v53 = vrot.slane %v2212_v23, %v2241_v44  ;;  %v2270_v12 = vrot.slane %v2212_v23, %v2237_v29  ;;  %v2278_v56 = vrot.slane %v2212_v23, %v2245_v50  ;;  %s5188_s28 = scalar_lea.hbm %s5322_s21, %s3668_s23 }
 0x4a9   : > { %p4335_p13 = pnand %p4334_p6, %p5323_p12  ;;  %p4342_p1 = por %p4341_p11, %p4340_p3 }
 0x4ab   : > { %p4336_p0 = pneg %p4335_p13 }
 0x4ad   : > { %p4343_p4 = pnand %p4342_p1, %p4336_p0 }
 0x4f0   : > { %v2969_v1 = vpop.f32.mrf.mxu0  ;;  %v3010_v59 = vpop.f32.mrf.mxu1 }
 0x4f1   : > { %v2970_v10 = vadd.f32 %v2969_v1, %v2218_v45  ;;  %v3011_v31 = vadd.f32 %v3010_v59, %v2226_v20 }
 0x4f2   : > { %v2971_v15 = vpop.f32.mrf.mxu0  ;;  %v3012_v37 = vpop.f32.mrf.mxu1 }
 0x4f3   : > { %3263 = vst [vmem:[%s4770_s7] sm:$0xff] %v2970_v10  ;;  %v2972_v32 = vadd.f32 %v2971_v15, %v2222_v61  ;;  %3265 = vst [vmem:[%s4770_s7 + $0x10] sm:$0xff] %v3011_v31  ;;  %v3013_v43 = vadd.f32 %v3012_v37, %v2230_v52 }
 0x4f4   : > { %v2973_v28 = vpop.f32.mrf.mxu0  ;;  %v3014_v41 = vpop.f32.mrf.mxu1 }
 0x4f5   : > { %3264 = vst [vmem:[%s4770_s7 + $0x8] sm:$0xff] %v2972_v32  ;;  %3266 = vst [vmem:[%s4770_s7 + $0x18] sm:$0xff] %v3013_v43 }
 0x4f6   : > { %v2974_v21 = vpop.f32.mrf.mxu0  ;;  %v3015_v47 = vpop.f32.mrf.mxu1 }
 0x510   : > { %v3051_v54 = vpop.f32.mrf.mxu0  ;;  %v3092_v40 = vpop.f32.mrf.mxu1 }
 0x511   : > { %v3052_v55 = vadd.f32 %v3051_v54, %v2234_v30  ;;  %v3093_v27 = vadd.f32 %v3092_v40, %v2242_v38 }
 0x512   : > { %v3053_v16 = vpop.f32.mrf.mxu0  ;;  %v3094_v7 = vpop.f32.mrf.mxu1 }
 0x513   : > { %3267 = vst [vmem:[%s4770_s7 + $0x20] sm:$0xff] %v3052_v55  ;;  %v3054_v36 = vadd.f32 %v3053_v16, %v2238_v51  ;;  %3269 = vst [vmem:[%s4770_s7 + $0x30] sm:$0xff] %v3093_v27  ;;  %v3095_v39 = vadd.f32 %v3094_v7, %v2246_v48 }
 0x514   : > { %v3055_v25 = vpop.f32.mrf.mxu0  ;;  %v3096_v42 = vpop.f32.mrf.mxu1 }
 0x515   : > { %3268 = vst [vmem:[%s4770_s7 + $0x28] sm:$0xff] %v3054_v36  ;;  %3270 = vst [vmem:[%s4770_s7 + $0x38] sm:$0xff] %v3095_v39 }
 0x516   : > { %v3056_v33 = vpop.f32.mrf.mxu0  ;;  %v3097_v34 = vpop.f32.mrf.mxu1 }
 0x530   : > { %v3133_v63 = vpop.f32.mrf.mxu0  ;;  %v3174_v6 = vpop.f32.mrf.mxu1 }
 0x531   : > { %v3134_v5 = vadd.f32 %v3133_v63, %v2250_v62  ;;  %v3175_v22 = vadd.f32 %v3174_v6, %v2258_v2 }
 0x532   : > { %v3135_v57 = vpop.f32.mrf.mxu0  ;;  %v3176_v4 = vpop.f32.mrf.mxu1 }
 0x533   : > { %3271 = vst [vmem:[%s4770_s7 + $0x40] sm:$0xff] %v3134_v5  ;;  %v3136_v26 = vadd.f32 %v3135_v57, %v2254_v3  ;;  %3273 = vst [vmem:[%s4770_s7 + $0x50] sm:$0xff] %v3175_v22  ;;  %v3177_v8 = vadd.f32 %v3176_v4, %v2262_v0 }
 0x534   : > { %v3137_v58 = vpop.f32.mrf.mxu0  ;;  %v3178_v35 = vpop.f32.mrf.mxu1 }
 0x535   : > { %3272 = vst [vmem:[%s4770_s7 + $0x48] sm:$0xff] %v3136_v26  ;;  %3274 = vst [vmem:[%s4770_s7 + $0x58] sm:$0xff] %v3177_v8 }
 0x536   : > { %v3138_v11 = vpop.f32.mrf.mxu0  ;;  %v3179_v49 = vpop.f32.mrf.mxu1 }
 0x550   : > { %v3215_v13 = vpop.f32.mrf.mxu0  ;;  %v3256_v14 = vpop.f32.mrf.mxu1 }
 0x551   : > { %v3216_v46 = vadd.f32 %v3215_v13, %v2266_v9  ;;  %v3257_v17 = vadd.f32 %v3256_v14, %v2274_v53 }
 0x552   : > { %v3217_v18 = vpop.f32.mrf.mxu0  ;;  %v3258_v24 = vpop.f32.mrf.mxu1 }
 0x553   : > { %3275 = vst [vmem:[%s4770_s7 + $0x60] sm:$0xff] %v3216_v46  ;;  %v3218_v60 = vadd.f32 %v3217_v18, %v2270_v12  ;;  %3277 = vst [vmem:[%s4770_s7 + $0x70] sm:$0xff] %v3257_v17  ;;  %v3259_v45 = vadd.f32 %v3258_v24, %v2278_v56 }
 0x554   : > { %v3219_v20 = vpop.f32.mrf.mxu0  ;;  %v3260_v61 = vpop.f32.mrf.mxu1 }
 0x555   : > { %3276 = vst [vmem:[%s4770_s7 + $0x68] sm:$0xff] %v3218_v60  ;;  %3278 = vst [vmem:[%s4770_s7 + $0x78] sm:$0xff] %v3259_v45 }
 0x556   : > { %v3220_v1 = vpop.f32.mrf.mxu0  ;;  %v3261_v52 = vpop.f32.mrf.mxu1 }
 0x557   : > { %4346 = shalt.err (!%p4343_p4)
}
 0x558   : > { %s4347_s7 = scalar_lea.hbm %s5188_s28, 2048  ;;  %s4351_s14 = scalar_lea.hbm %s5322_s21, 4096 }
 0x559   : > { %p4348_p7 = scmp.ne.s32.totalorder %s5188_s28, %s4347_s7  ;;  %p4352_p2 = scmp.lt.s32.totalorder %s5188_s28, %s5322_s21 }
 0x55a   : > { %p4353_p9 = scmp.lt.s32.totalorder %s4351_s14, %s4347_s7 }
 0x55b   : > { %p4349_p5 = pnand %p4348_p7, %p5323_p12 }
 0x55c   : > { %p4354_p10 = por %p4353_p9, %p4352_p2 }
 0x55d   : > { %p4350_p8 = pneg %p4349_p5 }
 0x55f   : > { %p4355_p6 = pnand %p4354_p10, %p4350_p8 }
 0x561   : > { %4358 = shalt.err (!%p4355_p6)
}
 0x562   : > { %3833 = dma.vmem_to_hbm [thread:$0]  (%p5323_p12), %s5190_s29, 2048, %s5188_s28, %s3280_s24  }
 0x563   : > { %p5324_p13 = scmp.eq.s32.totalorder %s4540_s19, 1 }
 0x565   : > { %4396 = dma.done.wait (%p5324_p13), [#allocation20], 256   ;;  %p5325_p0 = pmov %p5324_p13 }
 0x567   : > { %4398 = vsyncadd (%p5325_p0), [#allocation20], 4294967040 }
 0x568 PF: > { %s5326_s23 = sld [smem:[#allocation29_spill]]  ;;  %p5329_p11 = scmp.ge.s32.totalorder %s4417_s16, 2 }
 0x569   : > { %s5327_s27 = sld [smem:[#allocation33_spill]] }
 0x56e   : > { %s3336_s26 = sand.u32 1, %s5326_s23  }
 0x56f   : > { %p5328_p3 = scmp.ne.s32.totalorder %s5327_s27, 0  ;;  %s3337_s12 = scalar_lea.sflag [#allocation5], %s3336_s26 }
 0x571   : > { %p3873_p1 = pnand %p5329_p11, %p5328_p3 }
 0x573   : > { %p3874_p4 = pneg %p3873_p1 }
 0x575   : > { %4400 = dma.done.wait (%p3874_p4), %s3337_s12, 2048  }
 0x576   : > { %4402 = vsyncadd (%p3874_p4), %s3337_s12, 4294965248  ;;  %s5330_s16 = sld [smem:[#allocation30_spill]]  ;;  %s5332_s29 = smov %s4409_s30 }
 0x577   : > { %s5331_s18 = sld [smem:[#allocation31_spill]]  ;;  %s5333_s30 = smov %s4413_s15 }
 0x57c   : > { %p33_p12 = scmp.ge.s32.totalorder %s5330_s16, 4  }
 0x57d   : > { %s5334_s15 = smov %s5331_s18 }
 0x57e   :  { %35 = sbr.rel (!%p33_p12) target bundleno = 17 (0x11), region = 173 }
 0x583   :  { %3342 = vsyncpa [#allocation4], 1 }
 0x584   :  { %3344 = vsyncpa [#allocation4 + $0x1], 1 }
 0x585   :  { %3345 = vsyncpa [#allocation7], 1 }
 0x586   :  { %3346 = vsyncpa [#allocation10], 1 }
 0x587   :  { %3347 = vsyncpa [#allocation13], 1 }
 0x588   :  { %3348 = vsyncpa [#allocation16], 1 }
 0x589   :  { %3350 = vsyncpa [#allocation16 + $0x1], 1 }
 0x58a   :  { %3351 = vsyncpa [#allocation5], 1 }
 0x58b   :  { %3353 = vsyncpa [#allocation5 + $0x1], 1 }
 0x58c   :  { %3354 = vsyncpa [#allocation20], 1 }

</bundles_post_ra>
